<compile_context>
chip_gen: v7x
topology: tpu7x:2x2x1
jax: 0.10.0
libtpu: 0.0.40
codegen_flags: <defaults>
</compile_context>

<pallas_src>
import functools
import math

import jax
import jax.numpy as jnp
from jax.experimental import pallas as pl
from jax.experimental.pallas import tpu as pltpu

# ----------------------- model hyper-parameters (small) ----------------------
BATCH = 2
SEQ = 8           # decoder sequence length
SEQ_ENC = 8       # encoder output sequence length
MODEL_DIM = 32
NUM_HEADS = 4
HEAD_DIM = MODEL_DIM // NUM_HEADS
FF_DIM = 64
VOCAB = 64
NUM_LAYERS = 2
EPS = 1e-6


# =============================== Pallas kernel ===============================
def decoder_kernel(
    ids_ref,     # VMEM (B*S, 1)        int32
    emb_ref,     # VMEM (V, D)          f32   (pre-scaled by sqrt(D))
    pe_ref,      # VMEM (B*S, D)        f32   (tiled over batch)
    enc_ref,     # VMEM (B*S_enc, D)    f32
    wqkv_ref,    # VMEM (L, D, 3D)      bf16  fused self-attn QKV (Q pre-scaled)
    bqkv_ref,    # VMEM (L, 3D)         f32
    wqc_ref,     # VMEM (L, D, D)       bf16  cross-attn Q (pre-scaled)
    bqc_ref,     # VMEM (L, D)          f32
    wkvc_ref,    # VMEM (D, L*2*D)      bf16  cross-attn K/V, all layers fused
    bkvc_ref,    # VMEM (1, L*2*D)      f32
    wo_ref,      # VMEM (2L, D, D)      bf16
    bo_ref,      # VMEM (2L, D)         f32
    w1_ref,      # VMEM (L, D, FF)      bf16
    b1_ref,      # VMEM (L, FF)         f32
    w2_ref,      # VMEM (L, FF, D)      bf16
    b2_ref,      # VMEM (L, D)          f32
    lng_ref,     # VMEM (3L, D)         f32
    lnb_ref,     # VMEM (3L, D)         f32
    o_ref,       # VMEM (B*S, D)        f32
    *, num_layers, num_heads, batch, seq, seq_enc,
):
    B, S, Se = batch, seq, seq_enc
    V, D = emb_ref.shape
    H = num_heads
    hd = D // H
    L = num_layers
    cdt = jnp.bfloat16

    def layer_norm(h, gamma, beta):
        mean = jnp.mean(h, axis=-1, keepdims=True)
        var = jnp.mean(jnp.square(h - mean), axis=-1, keepdims=True)
        return (h - mean) * jax.lax.rsqrt(var + EPS) * gamma + beta

    def attend(q, k, v, Sk):
        """q: (B*S, D); k, v: (B*Sk, D).  Per-(batch, head) score / AV matmuls
        (inherently small), softmax batched over all B*H heads on sublanes."""
        qb16 = q.astype(cdt)
        kb16 = k.astype(cdt)
        vb16 = v.astype(cdt)
        scores = []
        for b in range(B):
            qb = qb16[b * S:(b + 1) * S, :]
            kb = kb16[b * Sk:(b + 1) * Sk, :]
            for h in range(H):
                qh = qb[:, h * hd:(h + 1) * hd]
                kh = kb[:, h * hd:(h + 1) * hd]
                # contraction over last dims of both -> no explicit kh.T
                scores.append(jax.lax.dot_general(
                    qh, kh, dimension_numbers=(((1,), (1,)), ((), ())),
                    preferred_element_type=jnp.float32))          # (S, Sk)
        s_all = jnp.concatenate(scores, axis=0)                    # (B*H*S, Sk)
        s_max = jnp.max(s_all, axis=-1, keepdims=True)
        p = jnp.exp(s_all - s_max)
        p = p * pl.reciprocal(jnp.sum(p, axis=-1, keepdims=True), approx=True)
        p = p.astype(cdt)
        outs = []
        for b in range(B):
            vb = vb16[b * Sk:(b + 1) * Sk, :]
            heads = []
            for h in range(H):
                row = (b * H + h) * S
                heads.append(jnp.dot(p[row:row + S, :],
                                     vb[:, h * hd:(h + 1) * hd],
                                     preferred_element_type=jnp.float32))
            outs.append(jnp.concatenate(heads, axis=-1))           # (S, D)
        return jnp.concatenate(outs, axis=0)                       # (B*S, D)

    # ---- embedding lookup as one-hot f32 matmul (bit-exact gather) ----------
    ids = ids_ref[...]                                             # (B*S, 1)
    vocab_iota = jax.lax.broadcasted_iota(jnp.int32, (B * S, V), 1)
    one_hot = (ids == vocab_iota).astype(jnp.float32)
    # emb_ref is pre-scaled by sqrt(D); dropout == identity (inference).
    x = jnp.dot(one_hot, emb_ref[...],
                preferred_element_type=jnp.float32) + pe_ref[...]

    # ---- cross-attention K/V for ALL layers in one lane-dense matmul --------
    kv_cross = jnp.dot(enc_ref[...].astype(cdt), wkvc_ref[...],
                       preferred_element_type=jnp.float32) + bkvc_ref[...]
    # kv_cross: (B*Se, L*2*D); per layer l: [.., 2lD:(2l+1)D]=K, next D cols=V

    for l in range(L):
        # -- self-attention: single fused QKV projection --
        x_b = x.astype(cdt)
        qkv = jnp.dot(x_b, wqkv_ref[l],
                      preferred_element_type=jnp.float32) + bqkv_ref[l]
        a = attend(qkv[:, 0 * D:1 * D], qkv[:, 1 * D:2 * D],
                   qkv[:, 2 * D:3 * D], S)
        a = jnp.dot(a.astype(cdt), wo_ref[2 * l + 0],
                    preferred_element_type=jnp.float32) + bo_ref[2 * l + 0]
        x = layer_norm(x + a, lng_ref[3 * l + 0], lnb_ref[3 * l + 0])

        # -- cross-attention: only the Q projection is on the x path --
        x_b = x.astype(cdt)
        q2 = jnp.dot(x_b, wqc_ref[l],
                     preferred_element_type=jnp.float32) + bqc_ref[l]
        k2 = kv_cross[:, (2 * l + 0) * D:(2 * l + 1) * D]
        v2 = kv_cross[:, (2 * l + 1) * D:(2 * l + 2) * D]
        a = attend(q2, k2, v2, Se)
        a = jnp.dot(a.astype(cdt), wo_ref[2 * l + 1],
                    preferred_element_type=jnp.float32) + bo_ref[2 * l + 1]
        x = layer_norm(x + a, lng_ref[3 * l + 1], lnb_ref[3 * l + 1])

        # -- feed-forward --
        x_b = x.astype(cdt)
        h1 = jnp.maximum(
            jnp.dot(x_b, w1_ref[l],
                    preferred_element_type=jnp.float32) + b1_ref[l], 0.0)
        h2 = jnp.dot(h1.astype(cdt), w2_ref[l],
                     preferred_element_type=jnp.float32) + b2_ref[l]
        x = layer_norm(x + h2, lng_ref[3 * l + 2], lnb_ref[3 * l + 2])

    o_ref[...] = x.astype(o_ref.dtype)


# ================================ wrapper =====================================
def decoder_forward(ids, enc_out, emb_scaled, pe, packed, *, num_layers, num_heads):
    (wqkv_self, bqkv_self, wq_cross, bq_cross, wkv_cross, bkv_cross,
     wo, bo, w1, b1, w2, b2, lng, lnb) = packed
    B, S = ids.shape
    V, D = emb_scaled.shape
    S_enc = enc_out.shape[1]

    ids_col = ids.reshape(B * S, 1).astype(jnp.int32)
    pe_tiled = jnp.tile(pe, (B, 1))                 # (B*S, D)
    enc_flat = enc_out.reshape(B * S_enc, D)        # (B*S_enc, D)

    args = (ids_col, emb_scaled, pe_tiled, enc_flat,
            wqkv_self, bqkv_self, wq_cross, bq_cross, wkv_cross, bkv_cross,
            wo, bo, w1, b1, w2, b2, lng, lnb)

    def full_spec(a):
        nd = a.ndim
        return pl.BlockSpec(a.shape, lambda i, nd=nd: (0,) * nd)

    kernel = functools.partial(
        decoder_kernel, num_layers=num_layers, num_heads=num_heads,
        batch=B, seq=S, seq_enc=S_enc)

    out = pl.pallas_call(
        kernel,
        out_shape=jax.ShapeDtypeStruct((B * S, D), jnp.float32),
        grid=(1,),                                  # batch folded into sublanes
        in_specs=[full_spec(a) for a in args],
        out_specs=pl.BlockSpec((B * S, D), lambda i: (0, 0)),
        compiler_params=pltpu.CompilerParams(
            dimension_semantics=("arbitrary",)),
    )(*args)
    return out.reshape(B, S, D)


# =========================== parameter construction ===========================
def positional_encoding(seq_len, model_dim):
    pos = jnp.arange(seq_len, dtype=jnp.float32)[:, None]
    i = jnp.arange(model_dim, dtype=jnp.float32)[None, :]
    angle_rates = 1.0 / jnp.power(10000.0,
                                  (2.0 * jnp.floor(i / 2.0)) / float(model_dim))
    ang = pos * angle_rates
    even = (jnp.arange(model_dim) % 2) == 0
    return jnp.where(even[None, :], jnp.sin(ang), jnp.cos(ang)).astype(jnp.float32)


def init_decoder_params(key, *, num_layers, model_dim, num_heads, ff_dim, vocab):
    keys = jax.random.split(key, 1 + num_layers * 10)
    emb = jax.random.normal(keys[0], (vocab, model_dim), jnp.float32)  # nn.Embedding ~ N(0,1)

    def linear(k, fan_in, fan_out):
        bound = 1.0 / math.sqrt(fan_in)
        kw, kb = jax.random.split(k)
        w = jax.random.uniform(kw, (fan_in, fan_out), jnp.float32, -bound, bound)
        b = jax.random.uniform(kb, (fan_out,), jnp.float32, -bound, bound)
        return w, b

    layers = []
    ki = 1
    for _ in range(num_layers):
        attn = []
        for _m in range(2):                      # m=0 self-attn, m=1 cross-attn
            p = {}
            for name in ("q", "k", "v", "o"):
                w, b = linear(keys[ki], model_dim, model_dim); ki += 1
                p["w" + name] = w
                p["b" + name] = b
            attn.append(p)
        w1, b1 = linear(keys[ki], model_dim, ff_dim); ki += 1
        w2, b2 = linear(keys[ki], ff_dim, model_dim); ki += 1
        layers.append(dict(
            attn=attn, w1=w1, b1=b1, w2=w2, b2=b2,
            ln_g=jnp.ones((3, model_dim), jnp.float32),
            ln_b=jnp.zeros((3, model_dim), jnp.float32),
        ))
    return emb, layers


def pack_params(emb, layers, *, model_dim, num_heads):
    """Fold constants and consolidate parameters into lane-dense stacks.

    * emb pre-scaled by sqrt(D); 1/sqrt(hd) folded into wq/bq (self & cross).
    * Self-attn Q/K/V fused column-wise to (D, 3D) per layer.
    * Cross-attn K/V for all layers fused column-wise to (D, L*2*D).
    * Weight matrices bf16 (MXU operands); biases / LN params / emb stay f32.
    """
    D = model_dim
    H = num_heads
    hd = D // H
    scale = 1.0 / math.sqrt(float(hd))
    wdt = jnp.bfloat16

    emb_scaled = (emb * math.sqrt(float(D))).astype(jnp.float32)

    wqkv_self, bqkv_self, wq_cross, bq_cross = [], [], [], []
    wkv_cols, bkv_cols = [], []
    wo_l, bo_l = [], []
    w1_l, b1_l, w2_l, b2_l, lng_l, lnb_l = [], [], [], [], [], []

    for layer in layers:
        ps, pc = layer["attn"][0], layer["attn"][1]
        # fused self-attention QKV (Q pre-scaled)
        wqkv_self.append(jnp.concatenate(
            [ps["wq"] * scale, ps["wk"], ps["wv"]], axis=1))        # (D, 3D)
        bqkv_self.append(jnp.concatenate(
            [ps["bq"] * scale, ps["bk"], ps["bv"]], axis=0))        # (3D,)
        # cross-attention: Q per layer, K/V fused across layers
        wq_cross.append(pc["wq"] * scale)
        bq_cross.append(pc["bq"] * scale)
        wkv_cols.extend([pc["wk"], pc["wv"]])
        bkv_cols.extend([pc["bk"], pc["bv"]])
        # output projections (self, cross)
        wo_l.extend([ps["wo"], pc["wo"]])
        bo_l.extend([ps["bo"], pc["bo"]])
        # feed-forward + LayerNorms
        w1_l.append(layer["w1"]); b1_l.append(layer["b1"])
        w2_l.append(layer["w2"]); b2_l.append(layer["b2"])
        lng_l.append(layer["ln_g"]); lnb_l.append(layer["ln_b"])

    packed = (
        jnp.stack(wqkv_self).astype(wdt),                  # (L, D, 3D)
        jnp.stack(bqkv_self),                              # (L, 3D)
        jnp.stack(wq_cross).astype(wdt),                   # (L, D, D)
        jnp.stack(bq_cross),                               # (L, D)
        jnp.concatenate(wkv_cols, axis=1).astype(wdt),     # (D, L*2*D)
        jnp.concatenate(bkv_cols, axis=0)[None, :],        # (1, L*2*D)
        jnp.stack(wo_l).astype(wdt),                       # (2L, D, D)
        jnp.stack(bo_l),                                   # (2L, D)
        jnp.stack(w1_l).astype(wdt),                       # (L, D, FF)
        jnp.stack(b1_l),                                   # (L, FF)
        jnp.stack(w2_l).astype(wdt),                       # (L, FF, D)
        jnp.stack(b2_l),                                   # (L, D)
        jnp.concatenate(lng_l, axis=0),                    # (3L, D)
        jnp.concatenate(lnb_l, axis=0),                    # (3L, D)
    )
    return emb_scaled, packed


# ============================ pure-JAX reference ==============================
def decoder_ref(ids, enc_out, emb, pe, layers, *, num_heads):
    D = emb.shape[1]
    H = num_heads
    hd = D // H

    def layer_norm(h, g, b):
        mean = jnp.mean(h, axis=-1, keepdims=True)
        var = jnp.mean(jnp.square(h - mean), axis=-1, keepdims=True)
        return (h - mean) * jax.lax.rsqrt(var + EPS) * g + b

    def mha(xq, xkv, p):
        B, Sq, _ = xq.shape
        Sk = xkv.shape[1]
        q = (xq @ p["wq"] + p["bq"]).reshape(B, Sq, H, hd).transpose(0, 2, 1, 3)
        k = (xkv @ p["wk"] + p["bk"]).reshape(B, Sk, H, hd).transpose(0, 2, 1, 3)
        v = (xkv @ p["wv"] + p["bv"]).reshape(B, Sk, H, hd).transpose(0, 2, 1, 3)
        s = jnp.einsum("bhqd,bhkd->bhqk", q, k) / math.sqrt(hd)
        w = jax.nn.softmax(s, axis=-1)
        a = jnp.einsum("bhqk,bhkd->bhqd", w, v)
        a = a.transpose(0, 2, 1, 3).reshape(B, Sq, D)
        return a @ p["wo"] + p["bo"]

    x = emb[ids] * math.sqrt(float(D)) + pe[None, :, :]
    for layer in layers:
        a1 = mha(x, x, layer["attn"][0])
        x = layer_norm(x + a1, layer["ln_g"][0], layer["ln_b"][0])
        a2 = mha(x, enc_out, layer["attn"][1])
        x = layer_norm(x + a2, layer["ln_g"][1], layer["ln_b"][1])
        h = jnp.maximum(x @ layer["w1"] + layer["b1"], 0.0)
        h = h @ layer["w2"] + layer["b2"]
        x = layer_norm(x + h, layer["ln_g"][2], layer["ln_b"][2])
    return x


# ==================================== main ====================================
if __name__ == "__main__":
    key = jax.random.PRNGKey(0)
    k_ids, k_enc, k_par = jax.random.split(key, 3)

    ids = jax.random.randint(k_ids, (BATCH, SEQ), 0, VOCAB, dtype=jnp.int32)
    enc_out = jax.random.normal(k_enc, (BATCH, SEQ_ENC, MODEL_DIM), jnp.float32)
    emb, layers = init_decoder_params(
        k_par, num_layers=NUM_LAYERS, model_dim=MODEL_DIM,
        num_heads=NUM_HEADS, ff_dim=FF_DIM, vocab=VOCAB)
    pe = positional_encoding(SEQ, MODEL_DIM)
    emb_scaled, packed = pack_params(emb, layers, model_dim=MODEL_DIM,
                                     num_heads=NUM_HEADS)

    out = decoder_forward(ids, enc_out, emb_scaled, pe, packed,
                          num_layers=NUM_LAYERS, num_heads=NUM_HEADS)
    out = jax.block_until_ready(out)

    ref = decoder_ref(ids, enc_out, emb, pe, layers, num_heads=NUM_HEADS)
    assert out.shape == (BATCH, SEQ, MODEL_DIM)
    # bf16 MXU operands + approx softmax reciprocal -> relaxed tolerance.
    assert jnp.allclose(out, ref, atol=3e-2, rtol=3e-2), "mismatch vs reference"
    print("KERNEL_OK")
</pallas_src>

<mosaic_0001>
module attributes {stable_mosaic.version = 11 : i64} {
  func.func @decoder_kernel(%arg0: i32, %arg1: memref<16x1xi32, #tpu.memory_space<vmem>>, %arg2: memref<64x32xf32, #tpu.memory_space<vmem>>, %arg3: memref<16x32xf32, #tpu.memory_space<vmem>>, %arg4: memref<16x32xf32, #tpu.memory_space<vmem>>, %arg5: memref<2x32x96xbf16, #tpu.memory_space<vmem>>, %arg6: memref<2x96xf32, #tpu.memory_space<vmem>>, %arg7: memref<2x32x32xbf16, #tpu.memory_space<vmem>>, %arg8: memref<2x32xf32, #tpu.memory_space<vmem>>, %arg9: memref<32x128xbf16, #tpu.memory_space<vmem>>, %arg10: memref<1x128xf32, #tpu.memory_space<vmem>>, %arg11: memref<4x32x32xbf16, #tpu.memory_space<vmem>>, %arg12: memref<4x32xf32, #tpu.memory_space<vmem>>, %arg13: memref<2x32x64xbf16, #tpu.memory_space<vmem>>, %arg14: memref<2x64xf32, #tpu.memory_space<vmem>>, %arg15: memref<2x64x32xbf16, #tpu.memory_space<vmem>>, %arg16: memref<2x32xf32, #tpu.memory_space<vmem>>, %arg17: memref<6x32xf32, #tpu.memory_space<vmem>>, %arg18: memref<6x32xf32, #tpu.memory_space<vmem>>, %arg19: memref<16x32xf32, #tpu.memory_space<vmem>>) attributes {dimension_semantics = [#tpu.dimension_semantics<arbitrary>], iteration_bounds = array<i64: 1>, scalar_prefetch = 0 : i64, scratch_operands = 0 : i64, tpu.core_type = #tpu.core_type<tc>, window_params = [{pipeline_mode = #tpu.pipeline_mode<synchronous>, transform_indices = @transform_0, window_bounds = array<i64: 16, 1>}, {pipeline_mode = #tpu.pipeline_mode<synchronous>, transform_indices = @transform_1, window_bounds = array<i64: 64, 32>}, {pipeline_mode = #tpu.pipeline_mode<synchronous>, transform_indices = @transform_2, window_bounds = array<i64: 16, 32>}, {pipeline_mode = #tpu.pipeline_mode<synchronous>, transform_indices = @transform_3, window_bounds = array<i64: 16, 32>}, {pipeline_mode = #tpu.pipeline_mode<synchronous>, transform_indices = @transform_4, window_bounds = array<i64: 2, 32, 96>}, {pipeline_mode = #tpu.pipeline_mode<synchronous>, transform_indices = @transform_5, window_bounds = array<i64: 2, 96>}, {pipeline_mode = #tpu.pipeline_mode<synchronous>, transform_indices = @transform_6, window_bounds = array<i64: 2, 32, 32>}, {pipeline_mode = #tpu.pipeline_mode<synchronous>, transform_indices = @transform_7, window_bounds = array<i64: 2, 32>}, {pipeline_mode = #tpu.pipeline_mode<synchronous>, transform_indices = @transform_8, window_bounds = array<i64: 32, 128>}, {pipeline_mode = #tpu.pipeline_mode<synchronous>, transform_indices = @transform_9, window_bounds = array<i64: 1, 128>}, {pipeline_mode = #tpu.pipeline_mode<synchronous>, transform_indices = @transform_10, window_bounds = array<i64: 4, 32, 32>}, {pipeline_mode = #tpu.pipeline_mode<synchronous>, transform_indices = @transform_11, window_bounds = array<i64: 4, 32>}, {pipeline_mode = #tpu.pipeline_mode<synchronous>, transform_indices = @transform_12, window_bounds = array<i64: 2, 32, 64>}, {pipeline_mode = #tpu.pipeline_mode<synchronous>, transform_indices = @transform_13, window_bounds = array<i64: 2, 64>}, {pipeline_mode = #tpu.pipeline_mode<synchronous>, transform_indices = @transform_14, window_bounds = array<i64: 2, 64, 32>}, {pipeline_mode = #tpu.pipeline_mode<synchronous>, transform_indices = @transform_15, window_bounds = array<i64: 2, 32>}, {pipeline_mode = #tpu.pipeline_mode<synchronous>, transform_indices = @transform_16, window_bounds = array<i64: 6, 32>}, {pipeline_mode = #tpu.pipeline_mode<synchronous>, transform_indices = @transform_17, window_bounds = array<i64: 6, 32>}, {pipeline_mode = #tpu.pipeline_mode<synchronous>, transform_indices = @transform_18, window_bounds = array<i64: 16, 32>}]} {
    %c0 = arith.constant 0 : index
    %c0_0 = arith.constant 0 : index
    %0 = vector.load %arg1[%c0, %c0_0] : memref<16x1xi32, #tpu.memory_space<vmem>>, vector<16x1xi32>
    %1 = tpu.iota {dimensions = array<i32: 1>} : vector<16x64xi32>
    %2 = vector.broadcast %0 : vector<16x1xi32> to vector<16x64xi32>
    %3 = arith.cmpi eq, %2, %1 : vector<16x64xi32>
    %4 = arith.extui %3 : vector<16x64xi1> to vector<16x64xi32>
    %5 = arith.sitofp %4 : vector<16x64xi32> to vector<16x64xf32>
    %c0_1 = arith.constant 0 : index
    %c0_2 = arith.constant 0 : index
    %6 = vector.load %arg2[%c0_1, %c0_2] : memref<64x32xf32, #tpu.memory_space<vmem>>, vector<64x32xf32>
    %cst = arith.constant dense<0.000000e+00> : vector<16x32xf32>
    %7 = tpu.matmul %5, %6, %cst {dimension_numbers = #tpu.dot_dimension_numbers<[1], [0], [0], [1], [0, 0, 1, 1], [], []>} : vector<16x64xf32>, vector<64x32xf32>, vector<16x32xf32> -> vector<16x32xf32>
    %c0_3 = arith.constant 0 : index
    %c0_4 = arith.constant 0 : index
    %8 = vector.load %arg3[%c0_3, %c0_4] : memref<16x32xf32, #tpu.memory_space<vmem>>, vector<16x32xf32>
    %9 = arith.addf %7, %8 : vector<16x32xf32>
    %c0_5 = arith.constant 0 : index
    %c0_6 = arith.constant 0 : index
    %10 = vector.load %arg4[%c0_5, %c0_6] : memref<16x32xf32, #tpu.memory_space<vmem>>, vector<16x32xf32>
    %11 = arith.truncf %10 : vector<16x32xf32> to vector<16x32xbf16>
    %c0_7 = arith.constant 0 : index
    %c0_8 = arith.constant 0 : index
    %12 = vector.load %arg9[%c0_7, %c0_8] : memref<32x128xbf16, #tpu.memory_space<vmem>>, vector<32x128xbf16>
    %cst_9 = arith.constant dense<0.000000e+00> : vector<16x128xf32>
    %13 = tpu.matmul %11, %12, %cst_9 {dimension_numbers = #tpu.dot_dimension_numbers<[1], [0], [0], [1], [0, 0, 1, 1], [], []>} : vector<16x32xbf16>, vector<32x128xbf16>, vector<16x128xf32> -> vector<16x128xf32>
    %c0_10 = arith.constant 0 : index
    %c0_11 = arith.constant 0 : index
    %14 = vector.load %arg10[%c0_10, %c0_11] : memref<1x128xf32, #tpu.memory_space<vmem>>, vector<1x128xf32>
    %15 = vector.broadcast %14 : vector<1x128xf32> to vector<16x128xf32>
    %16 = arith.addf %13, %15 : vector<16x128xf32>
    %17 = arith.truncf %9 : vector<16x32xf32> to vector<16x32xbf16>
    %c0_12 = arith.constant 0 : index
    %c0_13 = arith.constant 0 : index
    %c0_14 = arith.constant 0 : index
    %18 = vector.load %arg5[%c0_12, %c0_13, %c0_14] : memref<2x32x96xbf16, #tpu.memory_space<vmem>>, vector<1x32x96xbf16>
    %19 = vector.shape_cast %18 : vector<1x32x96xbf16> to vector<32x96xbf16>
    %cst_15 = arith.constant dense<0.000000e+00> : vector<16x96xf32>
    %20 = tpu.matmul %17, %19, %cst_15 {dimension_numbers = #tpu.dot_dimension_numbers<[1], [0], [0], [1], [0, 0, 1, 1], [], []>} : vector<16x32xbf16>, vector<32x96xbf16>, vector<16x96xf32> -> vector<16x96xf32>
    %c0_16 = arith.constant 0 : index
    %c0_17 = arith.constant 0 : index
    %21 = vector.load %arg6[%c0_16, %c0_17] : memref<2x96xf32, #tpu.memory_space<vmem>>, vector<1x96xf32>
    %22 = vector.shape_cast %21 : vector<1x96xf32> to vector<96xf32>
    %23 = vector.shape_cast %22 : vector<96xf32> to vector<1x96xf32>
    %24 = vector.broadcast %23 : vector<1x96xf32> to vector<16x96xf32>
    %25 = arith.addf %20, %24 : vector<16x96xf32>
    %26 = vector.extract_strided_slice %25 {offsets = [0, 0], sizes = [16, 32], strides = [1, 1]} : vector<16x96xf32> to vector<16x32xf32>
    %27 = vector.extract_strided_slice %25 {offsets = [0, 32], sizes = [16, 32], strides = [1, 1]} : vector<16x96xf32> to vector<16x32xf32>
    %28 = vector.extract_strided_slice %25 {offsets = [0, 64], sizes = [16, 32], strides = [1, 1]} : vector<16x96xf32> to vector<16x32xf32>
    %29 = arith.truncf %26 : vector<16x32xf32> to vector<16x32xbf16>
    %30 = arith.truncf %27 : vector<16x32xf32> to vector<16x32xbf16>
    %31 = arith.truncf %28 : vector<16x32xf32> to vector<16x32xbf16>
    %32 = vector.extract_strided_slice %29 {offsets = [0, 0], sizes = [8, 32], strides = [1, 1]} : vector<16x32xbf16> to vector<8x32xbf16>
    %33 = vector.extract_strided_slice %30 {offsets = [0, 0], sizes = [8, 32], strides = [1, 1]} : vector<16x32xbf16> to vector<8x32xbf16>
    %34 = vector.extract_strided_slice %32 {offsets = [0, 0], sizes = [8, 8], strides = [1, 1]} : vector<8x32xbf16> to vector<8x8xbf16>
    %35 = vector.extract_strided_slice %33 {offsets = [0, 0], sizes = [8, 8], strides = [1, 1]} : vector<8x32xbf16> to vector<8x8xbf16>
    %cst_18 = arith.constant dense<0.000000e+00> : vector<8x8xf32>
    %36 = tpu.matmul %34, %35, %cst_18 {dimension_numbers = #tpu.dot_dimension_numbers<[1], [1], [0], [0], [0, 0, 1, 0], [], []>} : vector<8x8xbf16>, vector<8x8xbf16>, vector<8x8xf32> -> vector<8x8xf32>
    %37 = vector.extract_strided_slice %32 {offsets = [0, 8], sizes = [8, 8], strides = [1, 1]} : vector<8x32xbf16> to vector<8x8xbf16>
    %38 = vector.extract_strided_slice %33 {offsets = [0, 8], sizes = [8, 8], strides = [1, 1]} : vector<8x32xbf16> to vector<8x8xbf16>
    %cst_19 = arith.constant dense<0.000000e+00> : vector<8x8xf32>
    %39 = tpu.matmul %37, %38, %cst_19 {dimension_numbers = #tpu.dot_dimension_numbers<[1], [1], [0], [0], [0, 0, 1, 0], [], []>} : vector<8x8xbf16>, vector<8x8xbf16>, vector<8x8xf32> -> vector<8x8xf32>
    %40 = vector.extract_strided_slice %32 {offsets = [0, 16], sizes = [8, 8], strides = [1, 1]} : vector<8x32xbf16> to vector<8x8xbf16>
    %41 = vector.extract_strided_slice %33 {offsets = [0, 16], sizes = [8, 8], strides = [1, 1]} : vector<8x32xbf16> to vector<8x8xbf16>
    %cst_20 = arith.constant dense<0.000000e+00> : vector<8x8xf32>
    %42 = tpu.matmul %40, %41, %cst_20 {dimension_numbers = #tpu.dot_dimension_numbers<[1], [1], [0], [0], [0, 0, 1, 0], [], []>} : vector<8x8xbf16>, vector<8x8xbf16>, vector<8x8xf32> -> vector<8x8xf32>
    %43 = vector.extract_strided_slice %32 {offsets = [0, 24], sizes = [8, 8], strides = [1, 1]} : vector<8x32xbf16> to vector<8x8xbf16>
    %44 = vector.extract_strided_slice %33 {offsets = [0, 24], sizes = [8, 8], strides = [1, 1]} : vector<8x32xbf16> to vector<8x8xbf16>
    %cst_21 = arith.constant dense<0.000000e+00> : vector<8x8xf32>
    %45 = tpu.matmul %43, %44, %cst_21 {dimension_numbers = #tpu.dot_dimension_numbers<[1], [1], [0], [0], [0, 0, 1, 0], [], []>} : vector<8x8xbf16>, vector<8x8xbf16>, vector<8x8xf32> -> vector<8x8xf32>
    %46 = vector.extract_strided_slice %29 {offsets = [8, 0], sizes = [8, 32], strides = [1, 1]} : vector<16x32xbf16> to vector<8x32xbf16>
    %47 = vector.extract_strided_slice %30 {offsets = [8, 0], sizes = [8, 32], strides = [1, 1]} : vector<16x32xbf16> to vector<8x32xbf16>
    %48 = vector.extract_strided_slice %46 {offsets = [0, 0], sizes = [8, 8], strides = [1, 1]} : vector<8x32xbf16> to vector<8x8xbf16>
    %49 = vector.extract_strided_slice %47 {offsets = [0, 0], sizes = [8, 8], strides = [1, 1]} : vector<8x32xbf16> to vector<8x8xbf16>
    %cst_22 = arith.constant dense<0.000000e+00> : vector<8x8xf32>
    %50 = tpu.matmul %48, %49, %cst_22 {dimension_numbers = #tpu.dot_dimension_numbers<[1], [1], [0], [0], [0, 0, 1, 0], [], []>} : vector<8x8xbf16>, vector<8x8xbf16>, vector<8x8xf32> -> vector<8x8xf32>
    %51 = vector.extract_strided_slice %46 {offsets = [0, 8], sizes = [8, 8], strides = [1, 1]} : vector<8x32xbf16> to vector<8x8xbf16>
    %52 = vector.extract_strided_slice %47 {offsets = [0, 8], sizes = [8, 8], strides = [1, 1]} : vector<8x32xbf16> to vector<8x8xbf16>
    %cst_23 = arith.constant dense<0.000000e+00> : vector<8x8xf32>
    %53 = tpu.matmul %51, %52, %cst_23 {dimension_numbers = #tpu.dot_dimension_numbers<[1], [1], [0], [0], [0, 0, 1, 0], [], []>} : vector<8x8xbf16>, vector<8x8xbf16>, vector<8x8xf32> -> vector<8x8xf32>
    %54 = vector.extract_strided_slice %46 {offsets = [0, 16], sizes = [8, 8], strides = [1, 1]} : vector<8x32xbf16> to vector<8x8xbf16>
    %55 = vector.extract_strided_slice %47 {offsets = [0, 16], sizes = [8, 8], strides = [1, 1]} : vector<8x32xbf16> to vector<8x8xbf16>
    %cst_24 = arith.constant dense<0.000000e+00> : vector<8x8xf32>
    %56 = tpu.matmul %54, %55, %cst_24 {dimension_numbers = #tpu.dot_dimension_numbers<[1], [1], [0], [0], [0, 0, 1, 0], [], []>} : vector<8x8xbf16>, vector<8x8xbf16>, vector<8x8xf32> -> vector<8x8xf32>
    %57 = vector.extract_strided_slice %46 {offsets = [0, 24], sizes = [8, 8], strides = [1, 1]} : vector<8x32xbf16> to vector<8x8xbf16>
    %58 = vector.extract_strided_slice %47 {offsets = [0, 24], sizes = [8, 8], strides = [1, 1]} : vector<8x32xbf16> to vector<8x8xbf16>
    %cst_25 = arith.constant dense<0.000000e+00> : vector<8x8xf32>
    %59 = tpu.matmul %57, %58, %cst_25 {dimension_numbers = #tpu.dot_dimension_numbers<[1], [1], [0], [0], [0, 0, 1, 0], [], []>} : vector<8x8xbf16>, vector<8x8xbf16>, vector<8x8xf32> -> vector<8x8xf32>
    %60 = tpu.concatenate %36, %39, %42, %45, %50, %53, %56, %59 in 0 : vector<8x8xf32>, vector<8x8xf32>, vector<8x8xf32>, vector<8x8xf32>, vector<8x8xf32>, vector<8x8xf32>, vector<8x8xf32>, vector<8x8xf32> -> vector<64x8xf32>
    %cst_26 = arith.constant dense<0xFF800000> : vector<64xf32>
    %61 = vector.multi_reduction <maximumf>, %60, %cst_26 [1] : vector<64x8xf32> to vector<64xf32>
    %62 = vector.shape_cast %61 : vector<64xf32> to vector<64x1xf32>
    %63 = vector.broadcast %62 : vector<64x1xf32> to vector<64x8xf32>
    %64 = arith.subf %60, %63 : vector<64x8xf32>
    %65 = math.exp %64 : vector<64x8xf32>
    %cst_27 = arith.constant dense<0.000000e+00> : vector<64xf32>
    %66 = vector.multi_reduction <add>, %65, %cst_27 [1] : vector<64x8xf32> to vector<64xf32>
    %67 = vector.shape_cast %66 : vector<64xf32> to vector<64x1xf32>
    %68 = tpu.reciprocal %67 {approx = true} : vector<64x1xf32> -> vector<64x1xf32>
    %69 = vector.broadcast %68 : vector<64x1xf32> to vector<64x8xf32>
    %70 = arith.mulf %65, %69 : vector<64x8xf32>
    %71 = arith.truncf %70 : vector<64x8xf32> to vector<64x8xbf16>
    %72 = vector.extract_strided_slice %31 {offsets = [0, 0], sizes = [8, 32], strides = [1, 1]} : vector<16x32xbf16> to vector<8x32xbf16>
    %73 = vector.extract_strided_slice %71 {offsets = [0, 0], sizes = [8, 8], strides = [1, 1]} : vector<64x8xbf16> to vector<8x8xbf16>
    %74 = vector.extract_strided_slice %72 {offsets = [0, 0], sizes = [8, 8], strides = [1, 1]} : vector<8x32xbf16> to vector<8x8xbf16>
    %cst_28 = arith.constant dense<0.000000e+00> : vector<8x8xf32>
    %75 = tpu.matmul %73, %74, %cst_28 {dimension_numbers = #tpu.dot_dimension_numbers<[1], [0], [0], [1], [0, 0, 1, 1], [], []>} : vector<8x8xbf16>, vector<8x8xbf16>, vector<8x8xf32> -> vector<8x8xf32>
    %76 = vector.extract_strided_slice %71 {offsets = [8, 0], sizes = [8, 8], strides = [1, 1]} : vector<64x8xbf16> to vector<8x8xbf16>
    %77 = vector.extract_strided_slice %72 {offsets = [0, 8], sizes = [8, 8], strides = [1, 1]} : vector<8x32xbf16> to vector<8x8xbf16>
    %cst_29 = arith.constant dense<0.000000e+00> : vector<8x8xf32>
    %78 = tpu.matmul %76, %77, %cst_29 {dimension_numbers = #tpu.dot_dimension_numbers<[1], [0], [0], [1], [0, 0, 1, 1], [], []>} : vector<8x8xbf16>, vector<8x8xbf16>, vector<8x8xf32> -> vector<8x8xf32>
    %79 = vector.extract_strided_slice %71 {offsets = [16, 0], sizes = [8, 8], strides = [1, 1]} : vector<64x8xbf16> to vector<8x8xbf16>
    %80 = vector.extract_strided_slice %72 {offsets = [0, 16], sizes = [8, 8], strides = [1, 1]} : vector<8x32xbf16> to vector<8x8xbf16>
    %cst_30 = arith.constant dense<0.000000e+00> : vector<8x8xf32>
    %81 = tpu.matmul %79, %80, %cst_30 {dimension_numbers = #tpu.dot_dimension_numbers<[1], [0], [0], [1], [0, 0, 1, 1], [], []>} : vector<8x8xbf16>, vector<8x8xbf16>, vector<8x8xf32> -> vector<8x8xf32>
    %82 = vector.extract_strided_slice %71 {offsets = [24, 0], sizes = [8, 8], strides = [1, 1]} : vector<64x8xbf16> to vector<8x8xbf16>
    %83 = vector.extract_strided_slice %72 {offsets = [0, 24], sizes = [8, 8], strides = [1, 1]} : vector<8x32xbf16> to vector<8x8xbf16>
    %cst_31 = arith.constant dense<0.000000e+00> : vector<8x8xf32>
    %84 = tpu.matmul %82, %83, %cst_31 {dimension_numbers = #tpu.dot_dimension_numbers<[1], [0], [0], [1], [0, 0, 1, 1], [], []>} : vector<8x8xbf16>, vector<8x8xbf16>, vector<8x8xf32> -> vector<8x8xf32>
    %85 = tpu.concatenate %75, %78, %81, %84 in 1 : vector<8x8xf32>, vector<8x8xf32>, vector<8x8xf32>, vector<8x8xf32> -> vector<8x32xf32>
    %86 = vector.extract_strided_slice %31 {offsets = [8, 0], sizes = [8, 32], strides = [1, 1]} : vector<16x32xbf16> to vector<8x32xbf16>
    %87 = vector.extract_strided_slice %71 {offsets = [32, 0], sizes = [8, 8], strides = [1, 1]} : vector<64x8xbf16> to vector<8x8xbf16>
    %88 = vector.extract_strided_slice %86 {offsets = [0, 0], sizes = [8, 8], strides = [1, 1]} : vector<8x32xbf16> to vector<8x8xbf16>
    %cst_32 = arith.constant dense<0.000000e+00> : vector<8x8xf32>
    %89 = tpu.matmul %87, %88, %cst_32 {dimension_numbers = #tpu.dot_dimension_numbers<[1], [0], [0], [1], [0, 0, 1, 1], [], []>} : vector<8x8xbf16>, vector<8x8xbf16>, vector<8x8xf32> -> vector<8x8xf32>
    %90 = vector.extract_strided_slice %71 {offsets = [40, 0], sizes = [8, 8], strides = [1, 1]} : vector<64x8xbf16> to vector<8x8xbf16>
    %91 = vector.extract_strided_slice %86 {offsets = [0, 8], sizes = [8, 8], strides = [1, 1]} : vector<8x32xbf16> to vector<8x8xbf16>
    %cst_33 = arith.constant dense<0.000000e+00> : vector<8x8xf32>
    %92 = tpu.matmul %90, %91, %cst_33 {dimension_numbers = #tpu.dot_dimension_numbers<[1], [0], [0], [1], [0, 0, 1, 1], [], []>} : vector<8x8xbf16>, vector<8x8xbf16>, vector<8x8xf32> -> vector<8x8xf32>
    %93 = vector.extract_strided_slice %71 {offsets = [48, 0], sizes = [8, 8], strides = [1, 1]} : vector<64x8xbf16> to vector<8x8xbf16>
    %94 = vector.extract_strided_slice %86 {offsets = [0, 16], sizes = [8, 8], strides = [1, 1]} : vector<8x32xbf16> to vector<8x8xbf16>
    %cst_34 = arith.constant dense<0.000000e+00> : vector<8x8xf32>
    %95 = tpu.matmul %93, %94, %cst_34 {dimension_numbers = #tpu.dot_dimension_numbers<[1], [0], [0], [1], [0, 0, 1, 1], [], []>} : vector<8x8xbf16>, vector<8x8xbf16>, vector<8x8xf32> -> vector<8x8xf32>
    %96 = vector.extract_strided_slice %71 {offsets = [56, 0], sizes = [8, 8], strides = [1, 1]} : vector<64x8xbf16> to vector<8x8xbf16>
    %97 = vector.extract_strided_slice %86 {offsets = [0, 24], sizes = [8, 8], strides = [1, 1]} : vector<8x32xbf16> to vector<8x8xbf16>
    %cst_35 = arith.constant dense<0.000000e+00> : vector<8x8xf32>
    %98 = tpu.matmul %96, %97, %cst_35 {dimension_numbers = #tpu.dot_dimension_numbers<[1], [0], [0], [1], [0, 0, 1, 1], [], []>} : vector<8x8xbf16>, vector<8x8xbf16>, vector<8x8xf32> -> vector<8x8xf32>
    %99 = tpu.concatenate %89, %92, %95, %98 in 1 : vector<8x8xf32>, vector<8x8xf32>, vector<8x8xf32>, vector<8x8xf32> -> vector<8x32xf32>
    %100 = tpu.concatenate %85, %99 in 0 : vector<8x32xf32>, vector<8x32xf32> -> vector<16x32xf32>
    %101 = arith.truncf %100 : vector<16x32xf32> to vector<16x32xbf16>
    %c0_36 = arith.constant 0 : index
    %c0_37 = arith.constant 0 : index
    %c0_38 = arith.constant 0 : index
    %102 = vector.load %arg11[%c0_36, %c0_37, %c0_38] : memref<4x32x32xbf16, #tpu.memory_space<vmem>>, vector<1x32x32xbf16>
    %103 = vector.shape_cast %102 : vector<1x32x32xbf16> to vector<32x32xbf16>
    %cst_39 = arith.constant dense<0.000000e+00> : vector<16x32xf32>
    %104 = tpu.matmul %101, %103, %cst_39 {dimension_numbers = #tpu.dot_dimension_numbers<[1], [0], [0], [1], [0, 0, 1, 1], [], []>} : vector<16x32xbf16>, vector<32x32xbf16>, vector<16x32xf32> -> vector<16x32xf32>
    %c0_40 = arith.constant 0 : index
    %c0_41 = arith.constant 0 : index
    %105 = vector.load %arg12[%c0_40, %c0_41] : memref<4x32xf32, #tpu.memory_space<vmem>>, vector<1x32xf32>
    %106 = vector.shape_cast %105 : vector<1x32xf32> to vector<32xf32>
    %107 = vector.shape_cast %106 : vector<32xf32> to vector<1x32xf32>
    %108 = vector.broadcast %107 : vector<1x32xf32> to vector<16x32xf32>
    %109 = arith.addf %104, %108 : vector<16x32xf32>
    %110 = arith.addf %9, %109 : vector<16x32xf32>
    %c0_42 = arith.constant 0 : index
    %c0_43 = arith.constant 0 : index
    %111 = vector.load %arg17[%c0_42, %c0_43] : memref<6x32xf32, #tpu.memory_space<vmem>>, vector<1x32xf32>
    %112 = vector.shape_cast %111 : vector<1x32xf32> to vector<32xf32>
    %c0_44 = arith.constant 0 : index
    %c0_45 = arith.constant 0 : index
    %113 = vector.load %arg18[%c0_44, %c0_45] : memref<6x32xf32, #tpu.memory_space<vmem>>, vector<1x32xf32>
    %114 = vector.shape_cast %113 : vector<1x32xf32> to vector<32xf32>
    %cst_46 = arith.constant dense<0.000000e+00> : vector<16xf32>
    %115 = vector.multi_reduction <add>, %110, %cst_46 [1] : vector<16x32xf32> to vector<16xf32>
    %116 = vector.shape_cast %115 : vector<16xf32> to vector<16x1xf32>
    %cst_47 = arith.constant 3.200000e+01 : f32
    %117 = vector.broadcast %cst_47 : f32 to vector<16x1xf32>
    %118 = arith.divf %116, %117 : vector<16x1xf32>
    %119 = vector.broadcast %118 : vector<16x1xf32> to vector<16x32xf32>
    %120 = arith.subf %110, %119 : vector<16x32xf32>
    %121 = arith.mulf %120, %120 : vector<16x32xf32>
    %cst_48 = arith.constant dense<0.000000e+00> : vector<16xf32>
    %122 = vector.multi_reduction <add>, %121, %cst_48 [1] : vector<16x32xf32> to vector<16xf32>
    %123 = vector.shape_cast %122 : vector<16xf32> to vector<16x1xf32>
    %cst_49 = arith.constant 3.200000e+01 : f32
    %124 = vector.broadcast %cst_49 : f32 to vector<16x1xf32>
    %125 = arith.divf %123, %124 : vector<16x1xf32>
    %126 = vector.broadcast %118 : vector<16x1xf32> to vector<16x32xf32>
    %127 = arith.subf %110, %126 : vector<16x32xf32>
    %cst_50 = arith.constant 9.99999997E-7 : f32
    %128 = vector.broadcast %cst_50 : f32 to vector<16x1xf32>
    %129 = arith.addf %125, %128 : vector<16x1xf32>
    %130 = math.rsqrt %129 : vector<16x1xf32>
    %131 = vector.broadcast %130 : vector<16x1xf32> to vector<16x32xf32>
    %132 = arith.mulf %127, %131 : vector<16x32xf32>
    %133 = vector.shape_cast %112 : vector<32xf32> to vector<1x32xf32>
    %134 = vector.broadcast %133 : vector<1x32xf32> to vector<16x32xf32>
    %135 = arith.mulf %132, %134 : vector<16x32xf32>
    %136 = vector.shape_cast %114 : vector<32xf32> to vector<1x32xf32>
    %137 = vector.broadcast %136 : vector<1x32xf32> to vector<16x32xf32>
    %138 = arith.addf %135, %137 : vector<16x32xf32>
    %139 = arith.truncf %138 : vector<16x32xf32> to vector<16x32xbf16>
    %c0_51 = arith.constant 0 : index
    %c0_52 = arith.constant 0 : index
    %c0_53 = arith.constant 0 : index
    %140 = vector.load %arg7[%c0_51, %c0_52, %c0_53] : memref<2x32x32xbf16, #tpu.memory_space<vmem>>, vector<1x32x32xbf16>
    %141 = vector.shape_cast %140 : vector<1x32x32xbf16> to vector<32x32xbf16>
    %cst_54 = arith.constant dense<0.000000e+00> : vector<16x32xf32>
    %142 = tpu.matmul %139, %141, %cst_54 {dimension_numbers = #tpu.dot_dimension_numbers<[1], [0], [0], [1], [0, 0, 1, 1], [], []>} : vector<16x32xbf16>, vector<32x32xbf16>, vector<16x32xf32> -> vector<16x32xf32>
    %c0_55 = arith.constant 0 : index
    %c0_56 = arith.constant 0 : index
    %143 = vector.load %arg8[%c0_55, %c0_56] : memref<2x32xf32, #tpu.memory_space<vmem>>, vector<1x32xf32>
    %144 = vector.shape_cast %143 : vector<1x32xf32> to vector<32xf32>
    %145 = vector.shape_cast %144 : vector<32xf32> to vector<1x32xf32>
    %146 = vector.broadcast %145 : vector<1x32xf32> to vector<16x32xf32>
    %147 = arith.addf %142, %146 : vector<16x32xf32>
    %148 = vector.extract_strided_slice %16 {offsets = [0, 0], sizes = [16, 32], strides = [1, 1]} : vector<16x128xf32> to vector<16x32xf32>
    %149 = vector.extract_strided_slice %16 {offsets = [0, 32], sizes = [16, 32], strides = [1, 1]} : vector<16x128xf32> to vector<16x32xf32>
    %150 = arith.truncf %147 : vector<16x32xf32> to vector<16x32xbf16>
    %151 = arith.truncf %148 : vector<16x32xf32> to vector<16x32xbf16>
    %152 = arith.truncf %149 : vector<16x32xf32> to vector<16x32xbf16>
    %153 = vector.extract_strided_slice %150 {offsets = [0, 0], sizes = [8, 32], strides = [1, 1]} : vector<16x32xbf16> to vector<8x32xbf16>
    %154 = vector.extract_strided_slice %151 {offsets = [0, 0], sizes = [8, 32], strides = [1, 1]} : vector<16x32xbf16> to vector<8x32xbf16>
    %155 = vector.extract_strided_slice %153 {offsets = [0, 0], sizes = [8, 8], strides = [1, 1]} : vector<8x32xbf16> to vector<8x8xbf16>
    %156 = vector.extract_strided_slice %154 {offsets = [0, 0], sizes = [8, 8], strides = [1, 1]} : vector<8x32xbf16> to vector<8x8xbf16>
    %cst_57 = arith.constant dense<0.000000e+00> : vector<8x8xf32>
    %157 = tpu.matmul %155, %156, %cst_57 {dimension_numbers = #tpu.dot_dimension_numbers<[1], [1], [0], [0], [0, 0, 1, 0], [], []>} : vector<8x8xbf16>, vector<8x8xbf16>, vector<8x8xf32> -> vector<8x8xf32>
    %158 = vector.extract_strided_slice %153 {offsets = [0, 8], sizes = [8, 8], strides = [1, 1]} : vector<8x32xbf16> to vector<8x8xbf16>
    %159 = vector.extract_strided_slice %154 {offsets = [0, 8], sizes = [8, 8], strides = [1, 1]} : vector<8x32xbf16> to vector<8x8xbf16>
    %cst_58 = arith.constant dense<0.000000e+00> : vector<8x8xf32>
    %160 = tpu.matmul %158, %159, %cst_58 {dimension_numbers = #tpu.dot_dimension_numbers<[1], [1], [0], [0], [0, 0, 1, 0], [], []>} : vector<8x8xbf16>, vector<8x8xbf16>, vector<8x8xf32> -> vector<8x8xf32>
    %161 = vector.extract_strided_slice %153 {offsets = [0, 16], sizes = [8, 8], strides = [1, 1]} : vector<8x32xbf16> to vector<8x8xbf16>
    %162 = vector.extract_strided_slice %154 {offsets = [0, 16], sizes = [8, 8], strides = [1, 1]} : vector<8x32xbf16> to vector<8x8xbf16>
    %cst_59 = arith.constant dense<0.000000e+00> : vector<8x8xf32>
    %163 = tpu.matmul %161, %162, %cst_59 {dimension_numbers = #tpu.dot_dimension_numbers<[1], [1], [0], [0], [0, 0, 1, 0], [], []>} : vector<8x8xbf16>, vector<8x8xbf16>, vector<8x8xf32> -> vector<8x8xf32>
    %164 = vector.extract_strided_slice %153 {offsets = [0, 24], sizes = [8, 8], strides = [1, 1]} : vector<8x32xbf16> to vector<8x8xbf16>
    %165 = vector.extract_strided_slice %154 {offsets = [0, 24], sizes = [8, 8], strides = [1, 1]} : vector<8x32xbf16> to vector<8x8xbf16>
    %cst_60 = arith.constant dense<0.000000e+00> : vector<8x8xf32>
    %166 = tpu.matmul %164, %165, %cst_60 {dimension_numbers = #tpu.dot_dimension_numbers<[1], [1], [0], [0], [0, 0, 1, 0], [], []>} : vector<8x8xbf16>, vector<8x8xbf16>, vector<8x8xf32> -> vector<8x8xf32>
    %167 = vector.extract_strided_slice %150 {offsets = [8, 0], sizes = [8, 32], strides = [1, 1]} : vector<16x32xbf16> to vector<8x32xbf16>
    %168 = vector.extract_strided_slice %151 {offsets = [8, 0], sizes = [8, 32], strides = [1, 1]} : vector<16x32xbf16> to vector<8x32xbf16>
    %169 = vector.extract_strided_slice %167 {offsets = [0, 0], sizes = [8, 8], strides = [1, 1]} : vector<8x32xbf16> to vector<8x8xbf16>
    %170 = vector.extract_strided_slice %168 {offsets = [0, 0], sizes = [8, 8], strides = [1, 1]} : vector<8x32xbf16> to vector<8x8xbf16>
    %cst_61 = arith.constant dense<0.000000e+00> : vector<8x8xf32>
    %171 = tpu.matmul %169, %170, %cst_61 {dimension_numbers = #tpu.dot_dimension_numbers<[1], [1], [0], [0], [0, 0, 1, 0], [], []>} : vector<8x8xbf16>, vector<8x8xbf16>, vector<8x8xf32> -> vector<8x8xf32>
    %172 = vector.extract_strided_slice %167 {offsets = [0, 8], sizes = [8, 8], strides = [1, 1]} : vector<8x32xbf16> to vector<8x8xbf16>
    %173 = vector.extract_strided_slice %168 {offsets = [0, 8], sizes = [8, 8], strides = [1, 1]} : vector<8x32xbf16> to vector<8x8xbf16>
    %cst_62 = arith.constant dense<0.000000e+00> : vector<8x8xf32>
    %174 = tpu.matmul %172, %173, %cst_62 {dimension_numbers = #tpu.dot_dimension_numbers<[1], [1], [0], [0], [0, 0, 1, 0], [], []>} : vector<8x8xbf16>, vector<8x8xbf16>, vector<8x8xf32> -> vector<8x8xf32>
    %175 = vector.extract_strided_slice %167 {offsets = [0, 16], sizes = [8, 8], strides = [1, 1]} : vector<8x32xbf16> to vector<8x8xbf16>
    %176 = vector.extract_strided_slice %168 {offsets = [0, 16], sizes = [8, 8], strides = [1, 1]} : vector<8x32xbf16> to vector<8x8xbf16>
    %cst_63 = arith.constant dense<0.000000e+00> : vector<8x8xf32>
    %177 = tpu.matmul %175, %176, %cst_63 {dimension_numbers = #tpu.dot_dimension_numbers<[1], [1], [0], [0], [0, 0, 1, 0], [], []>} : vector<8x8xbf16>, vector<8x8xbf16>, vector<8x8xf32> -> vector<8x8xf32>
    %178 = vector.extract_strided_slice %167 {offsets = [0, 24], sizes = [8, 8], strides = [1, 1]} : vector<8x32xbf16> to vector<8x8xbf16>
    %179 = vector.extract_strided_slice %168 {offsets = [0, 24], sizes = [8, 8], strides = [1, 1]} : vector<8x32xbf16> to vector<8x8xbf16>
    %cst_64 = arith.constant dense<0.000000e+00> : vector<8x8xf32>
    %180 = tpu.matmul %178, %179, %cst_64 {dimension_numbers = #tpu.dot_dimension_numbers<[1], [1], [0], [0], [0, 0, 1, 0], [], []>} : vector<8x8xbf16>, vector<8x8xbf16>, vector<8x8xf32> -> vector<8x8xf32>
    %181 = tpu.concatenate %157, %160, %163, %166, %171, %174, %177, %180 in 0 : vector<8x8xf32>, vector<8x8xf32>, vector<8x8xf32>, vector<8x8xf32>, vector<8x8xf32>, vector<8x8xf32>, vector<8x8xf32>, vector<8x8xf32> -> vector<64x8xf32>
    %cst_65 = arith.constant dense<0xFF800000> : vector<64xf32>
    %182 = vector.multi_reduction <maximumf>, %181, %cst_65 [1] : vector<64x8xf32> to vector<64xf32>
    %183 = vector.shape_cast %182 : vector<64xf32> to vector<64x1xf32>
    %184 = vector.broadcast %183 : vector<64x1xf32> to vector<64x8xf32>
    %185 = arith.subf %181, %184 : vector<64x8xf32>
    %186 = math.exp %185 : vector<64x8xf32>
    %cst_66 = arith.constant dense<0.000000e+00> : vector<64xf32>
    %187 = vector.multi_reduction <add>, %186, %cst_66 [1] : vector<64x8xf32> to vector<64xf32>
    %188 = vector.shape_cast %187 : vector<64xf32> to vector<64x1xf32>
    %189 = tpu.reciprocal %188 {approx = true} : vector<64x1xf32> -> vector<64x1xf32>
    %190 = vector.broadcast %189 : vector<64x1xf32> to vector<64x8xf32>
    %191 = arith.mulf %186, %190 : vector<64x8xf32>
    %192 = arith.truncf %191 : vector<64x8xf32> to vector<64x8xbf16>
    %193 = vector.extract_strided_slice %152 {offsets = [0, 0], sizes = [8, 32], strides = [1, 1]} : vector<16x32xbf16> to vector<8x32xbf16>
    %194 = vector.extract_strided_slice %192 {offsets = [0, 0], sizes = [8, 8], strides = [1, 1]} : vector<64x8xbf16> to vector<8x8xbf16>
    %195 = vector.extract_strided_slice %193 {offsets = [0, 0], sizes = [8, 8], strides = [1, 1]} : vector<8x32xbf16> to vector<8x8xbf16>
    %cst_67 = arith.constant dense<0.000000e+00> : vector<8x8xf32>
    %196 = tpu.matmul %194, %195, %cst_67 {dimension_numbers = #tpu.dot_dimension_numbers<[1], [0], [0], [1], [0, 0, 1, 1], [], []>} : vector<8x8xbf16>, vector<8x8xbf16>, vector<8x8xf32> -> vector<8x8xf32>
    %197 = vector.extract_strided_slice %192 {offsets = [8, 0], sizes = [8, 8], strides = [1, 1]} : vector<64x8xbf16> to vector<8x8xbf16>
    %198 = vector.extract_strided_slice %193 {offsets = [0, 8], sizes = [8, 8], strides = [1, 1]} : vector<8x32xbf16> to vector<8x8xbf16>
    %cst_68 = arith.constant dense<0.000000e+00> : vector<8x8xf32>
    %199 = tpu.matmul %197, %198, %cst_68 {dimension_numbers = #tpu.dot_dimension_numbers<[1], [0], [0], [1], [0, 0, 1, 1], [], []>} : vector<8x8xbf16>, vector<8x8xbf16>, vector<8x8xf32> -> vector<8x8xf32>
    %200 = vector.extract_strided_slice %192 {offsets = [16, 0], sizes = [8, 8], strides = [1, 1]} : vector<64x8xbf16> to vector<8x8xbf16>
    %201 = vector.extract_strided_slice %193 {offsets = [0, 16], sizes = [8, 8], strides = [1, 1]} : vector<8x32xbf16> to vector<8x8xbf16>
    %cst_69 = arith.constant dense<0.000000e+00> : vector<8x8xf32>
    %202 = tpu.matmul %200, %201, %cst_69 {dimension_numbers = #tpu.dot_dimension_numbers<[1], [0], [0], [1], [0, 0, 1, 1], [], []>} : vector<8x8xbf16>, vector<8x8xbf16>, vector<8x8xf32> -> vector<8x8xf32>
    %203 = vector.extract_strided_slice %192 {offsets = [24, 0], sizes = [8, 8], strides = [1, 1]} : vector<64x8xbf16> to vector<8x8xbf16>
    %204 = vector.extract_strided_slice %193 {offsets = [0, 24], sizes = [8, 8], strides = [1, 1]} : vector<8x32xbf16> to vector<8x8xbf16>
    %cst_70 = arith.constant dense<0.000000e+00> : vector<8x8xf32>
    %205 = tpu.matmul %203, %204, %cst_70 {dimension_numbers = #tpu.dot_dimension_numbers<[1], [0], [0], [1], [0, 0, 1, 1], [], []>} : vector<8x8xbf16>, vector<8x8xbf16>, vector<8x8xf32> -> vector<8x8xf32>
    %206 = tpu.concatenate %196, %199, %202, %205 in 1 : vector<8x8xf32>, vector<8x8xf32>, vector<8x8xf32>, vector<8x8xf32> -> vector<8x32xf32>
    %207 = vector.extract_strided_slice %152 {offsets = [8, 0], sizes = [8, 32], strides = [1, 1]} : vector<16x32xbf16> to vector<8x32xbf16>
    %208 = vector.extract_strided_slice %192 {offsets = [32, 0], sizes = [8, 8], strides = [1, 1]} : vector<64x8xbf16> to vector<8x8xbf16>
    %209 = vector.extract_strided_slice %207 {offsets = [0, 0], sizes = [8, 8], strides = [1, 1]} : vector<8x32xbf16> to vector<8x8xbf16>
    %cst_71 = arith.constant dense<0.000000e+00> : vector<8x8xf32>
    %210 = tpu.matmul %208, %209, %cst_71 {dimension_numbers = #tpu.dot_dimension_numbers<[1], [0], [0], [1], [0, 0, 1, 1], [], []>} : vector<8x8xbf16>, vector<8x8xbf16>, vector<8x8xf32> -> vector<8x8xf32>
    %211 = vector.extract_strided_slice %192 {offsets = [40, 0], sizes = [8, 8], strides = [1, 1]} : vector<64x8xbf16> to vector<8x8xbf16>
    %212 = vector.extract_strided_slice %207 {offsets = [0, 8], sizes = [8, 8], strides = [1, 1]} : vector<8x32xbf16> to vector<8x8xbf16>
    %cst_72 = arith.constant dense<0.000000e+00> : vector<8x8xf32>
    %213 = tpu.matmul %211, %212, %cst_72 {dimension_numbers = #tpu.dot_dimension_numbers<[1], [0], [0], [1], [0, 0, 1, 1], [], []>} : vector<8x8xbf16>, vector<8x8xbf16>, vector<8x8xf32> -> vector<8x8xf32>
    %214 = vector.extract_strided_slice %192 {offsets = [48, 0], sizes = [8, 8], strides = [1, 1]} : vector<64x8xbf16> to vector<8x8xbf16>
    %215 = vector.extract_strided_slice %207 {offsets = [0, 16], sizes = [8, 8], strides = [1, 1]} : vector<8x32xbf16> to vector<8x8xbf16>
    %cst_73 = arith.constant dense<0.000000e+00> : vector<8x8xf32>
    %216 = tpu.matmul %214, %215, %cst_73 {dimension_numbers = #tpu.dot_dimension_numbers<[1], [0], [0], [1], [0, 0, 1, 1], [], []>} : vector<8x8xbf16>, vector<8x8xbf16>, vector<8x8xf32> -> vector<8x8xf32>
    %217 = vector.extract_strided_slice %192 {offsets = [56, 0], sizes = [8, 8], strides = [1, 1]} : vector<64x8xbf16> to vector<8x8xbf16>
    %218 = vector.extract_strided_slice %207 {offsets = [0, 24], sizes = [8, 8], strides = [1, 1]} : vector<8x32xbf16> to vector<8x8xbf16>
    %cst_74 = arith.constant dense<0.000000e+00> : vector<8x8xf32>
    %219 = tpu.matmul %217, %218, %cst_74 {dimension_numbers = #tpu.dot_dimension_numbers<[1], [0], [0], [1], [0, 0, 1, 1], [], []>} : vector<8x8xbf16>, vector<8x8xbf16>, vector<8x8xf32> -> vector<8x8xf32>
    %220 = tpu.concatenate %210, %213, %216, %219 in 1 : vector<8x8xf32>, vector<8x8xf32>, vector<8x8xf32>, vector<8x8xf32> -> vector<8x32xf32>
    %221 = tpu.concatenate %206, %220 in 0 : vector<8x32xf32>, vector<8x32xf32> -> vector<16x32xf32>
    %222 = arith.truncf %221 : vector<16x32xf32> to vector<16x32xbf16>
    %c1 = arith.constant 1 : index
    %c0_75 = arith.constant 0 : index
    %c0_76 = arith.constant 0 : index
    %223 = vector.load %arg11[%c1, %c0_75, %c0_76] : memref<4x32x32xbf16, #tpu.memory_space<vmem>>, vector<1x32x32xbf16>
    %224 = vector.shape_cast %223 : vector<1x32x32xbf16> to vector<32x32xbf16>
    %cst_77 = arith.constant dense<0.000000e+00> : vector<16x32xf32>
    %225 = tpu.matmul %222, %224, %cst_77 {dimension_numbers = #tpu.dot_dimension_numbers<[1], [0], [0], [1], [0, 0, 1, 1], [], []>} : vector<16x32xbf16>, vector<32x32xbf16>, vector<16x32xf32> -> vector<16x32xf32>
    %c1_78 = arith.constant 1 : index
    %c0_79 = arith.constant 0 : index
    %226 = vector.load %arg12[%c1_78, %c0_79] : memref<4x32xf32, #tpu.memory_space<vmem>>, vector<1x32xf32>
    %227 = vector.shape_cast %226 : vector<1x32xf32> to vector<32xf32>
    %228 = vector.shape_cast %227 : vector<32xf32> to vector<1x32xf32>
    %229 = vector.broadcast %228 : vector<1x32xf32> to vector<16x32xf32>
    %230 = arith.addf %225, %229 : vector<16x32xf32>
    %231 = arith.addf %138, %230 : vector<16x32xf32>
    %c1_80 = arith.constant 1 : index
    %c0_81 = arith.constant 0 : index
    %232 = vector.load %arg17[%c1_80, %c0_81] : memref<6x32xf32, #tpu.memory_space<vmem>>, vector<1x32xf32>
    %233 = vector.shape_cast %232 : vector<1x32xf32> to vector<32xf32>
    %c1_82 = arith.constant 1 : index
    %c0_83 = arith.constant 0 : index
    %234 = vector.load %arg18[%c1_82, %c0_83] : memref<6x32xf32, #tpu.memory_space<vmem>>, vector<1x32xf32>
    %235 = vector.shape_cast %234 : vector<1x32xf32> to vector<32xf32>
    %cst_84 = arith.constant dense<0.000000e+00> : vector<16xf32>
    %236 = vector.multi_reduction <add>, %231, %cst_84 [1] : vector<16x32xf32> to vector<16xf32>
    %237 = vector.shape_cast %236 : vector<16xf32> to vector<16x1xf32>
    %cst_85 = arith.constant 3.200000e+01 : f32
    %238 = vector.broadcast %cst_85 : f32 to vector<16x1xf32>
    %239 = arith.divf %237, %238 : vector<16x1xf32>
    %240 = vector.broadcast %239 : vector<16x1xf32> to vector<16x32xf32>
    %241 = arith.subf %231, %240 : vector<16x32xf32>
    %242 = arith.mulf %241, %241 : vector<16x32xf32>
    %cst_86 = arith.constant dense<0.000000e+00> : vector<16xf32>
    %243 = vector.multi_reduction <add>, %242, %cst_86 [1] : vector<16x32xf32> to vector<16xf32>
    %244 = vector.shape_cast %243 : vector<16xf32> to vector<16x1xf32>
    %cst_87 = arith.constant 3.200000e+01 : f32
    %245 = vector.broadcast %cst_87 : f32 to vector<16x1xf32>
    %246 = arith.divf %244, %245 : vector<16x1xf32>
    %247 = vector.broadcast %239 : vector<16x1xf32> to vector<16x32xf32>
    %248 = arith.subf %231, %247 : vector<16x32xf32>
    %cst_88 = arith.constant 9.99999997E-7 : f32
    %249 = vector.broadcast %cst_88 : f32 to vector<16x1xf32>
    %250 = arith.addf %246, %249 : vector<16x1xf32>
    %251 = math.rsqrt %250 : vector<16x1xf32>
    %252 = vector.broadcast %251 : vector<16x1xf32> to vector<16x32xf32>
    %253 = arith.mulf %248, %252 : vector<16x32xf32>
    %254 = vector.shape_cast %233 : vector<32xf32> to vector<1x32xf32>
    %255 = vector.broadcast %254 : vector<1x32xf32> to vector<16x32xf32>
    %256 = arith.mulf %253, %255 : vector<16x32xf32>
    %257 = vector.shape_cast %235 : vector<32xf32> to vector<1x32xf32>
    %258 = vector.broadcast %257 : vector<1x32xf32> to vector<16x32xf32>
    %259 = arith.addf %256, %258 : vector<16x32xf32>
    %260 = arith.truncf %259 : vector<16x32xf32> to vector<16x32xbf16>
    %c0_89 = arith.constant 0 : index
    %c0_90 = arith.constant 0 : index
    %c0_91 = arith.constant 0 : index
    %261 = vector.load %arg13[%c0_89, %c0_90, %c0_91] : memref<2x32x64xbf16, #tpu.memory_space<vmem>>, vector<1x32x64xbf16>
    %262 = vector.shape_cast %261 : vector<1x32x64xbf16> to vector<32x64xbf16>
    %cst_92 = arith.constant dense<0.000000e+00> : vector<16x64xf32>
    %263 = tpu.matmul %260, %262, %cst_92 {dimension_numbers = #tpu.dot_dimension_numbers<[1], [0], [0], [1], [0, 0, 1, 1], [], []>} : vector<16x32xbf16>, vector<32x64xbf16>, vector<16x64xf32> -> vector<16x64xf32>
    %c0_93 = arith.constant 0 : index
    %c0_94 = arith.constant 0 : index
    %264 = vector.load %arg14[%c0_93, %c0_94] : memref<2x64xf32, #tpu.memory_space<vmem>>, vector<1x64xf32>
    %265 = vector.shape_cast %264 : vector<1x64xf32> to vector<64xf32>
    %266 = vector.shape_cast %265 : vector<64xf32> to vector<1x64xf32>
    %267 = vector.broadcast %266 : vector<1x64xf32> to vector<16x64xf32>
    %268 = arith.addf %263, %267 : vector<16x64xf32>
    %cst_95 = arith.constant 0.000000e+00 : f32
    %269 = vector.broadcast %cst_95 : f32 to vector<16x64xf32>
    %270 = arith.maximumf %268, %269 : vector<16x64xf32>
    %271 = arith.truncf %270 : vector<16x64xf32> to vector<16x64xbf16>
    %c0_96 = arith.constant 0 : index
    %c0_97 = arith.constant 0 : index
    %c0_98 = arith.constant 0 : index
    %272 = vector.load %arg15[%c0_96, %c0_97, %c0_98] : memref<2x64x32xbf16, #tpu.memory_space<vmem>>, vector<1x64x32xbf16>
    %273 = vector.shape_cast %272 : vector<1x64x32xbf16> to vector<64x32xbf16>
    %cst_99 = arith.constant dense<0.000000e+00> : vector<16x32xf32>
    %274 = tpu.matmul %271, %273, %cst_99 {dimension_numbers = #tpu.dot_dimension_numbers<[1], [0], [0], [1], [0, 0, 1, 1], [], []>} : vector<16x64xbf16>, vector<64x32xbf16>, vector<16x32xf32> -> vector<16x32xf32>
    %c0_100 = arith.constant 0 : index
    %c0_101 = arith.constant 0 : index
    %275 = vector.load %arg16[%c0_100, %c0_101] : memref<2x32xf32, #tpu.memory_space<vmem>>, vector<1x32xf32>
    %276 = vector.shape_cast %275 : vector<1x32xf32> to vector<32xf32>
    %277 = vector.shape_cast %276 : vector<32xf32> to vector<1x32xf32>
    %278 = vector.broadcast %277 : vector<1x32xf32> to vector<16x32xf32>
    %279 = arith.addf %274, %278 : vector<16x32xf32>
    %280 = arith.addf %259, %279 : vector<16x32xf32>
    %c2 = arith.constant 2 : index
    %c0_102 = arith.constant 0 : index
    %281 = vector.load %arg17[%c2, %c0_102] : memref<6x32xf32, #tpu.memory_space<vmem>>, vector<1x32xf32>
    %282 = vector.shape_cast %281 : vector<1x32xf32> to vector<32xf32>
    %c2_103 = arith.constant 2 : index
    %c0_104 = arith.constant 0 : index
    %283 = vector.load %arg18[%c2_103, %c0_104] : memref<6x32xf32, #tpu.memory_space<vmem>>, vector<1x32xf32>
    %284 = vector.shape_cast %283 : vector<1x32xf32> to vector<32xf32>
    %cst_105 = arith.constant dense<0.000000e+00> : vector<16xf32>
    %285 = vector.multi_reduction <add>, %280, %cst_105 [1] : vector<16x32xf32> to vector<16xf32>
    %286 = vector.shape_cast %285 : vector<16xf32> to vector<16x1xf32>
    %cst_106 = arith.constant 3.200000e+01 : f32
    %287 = vector.broadcast %cst_106 : f32 to vector<16x1xf32>
    %288 = arith.divf %286, %287 : vector<16x1xf32>
    %289 = vector.broadcast %288 : vector<16x1xf32> to vector<16x32xf32>
    %290 = arith.subf %280, %289 : vector<16x32xf32>
    %291 = arith.mulf %290, %290 : vector<16x32xf32>
    %cst_107 = arith.constant dense<0.000000e+00> : vector<16xf32>
    %292 = vector.multi_reduction <add>, %291, %cst_107 [1] : vector<16x32xf32> to vector<16xf32>
    %293 = vector.shape_cast %292 : vector<16xf32> to vector<16x1xf32>
    %cst_108 = arith.constant 3.200000e+01 : f32
    %294 = vector.broadcast %cst_108 : f32 to vector<16x1xf32>
    %295 = arith.divf %293, %294 : vector<16x1xf32>
    %296 = vector.broadcast %288 : vector<16x1xf32> to vector<16x32xf32>
    %297 = arith.subf %280, %296 : vector<16x32xf32>
    %cst_109 = arith.constant 9.99999997E-7 : f32
    %298 = vector.broadcast %cst_109 : f32 to vector<16x1xf32>
    %299 = arith.addf %295, %298 : vector<16x1xf32>
    %300 = math.rsqrt %299 : vector<16x1xf32>
    %301 = vector.broadcast %300 : vector<16x1xf32> to vector<16x32xf32>
    %302 = arith.mulf %297, %301 : vector<16x32xf32>
    %303 = vector.shape_cast %282 : vector<32xf32> to vector<1x32xf32>
    %304 = vector.broadcast %303 : vector<1x32xf32> to vector<16x32xf32>
    %305 = arith.mulf %302, %304 : vector<16x32xf32>
    %306 = vector.shape_cast %284 : vector<32xf32> to vector<1x32xf32>
    %307 = vector.broadcast %306 : vector<1x32xf32> to vector<16x32xf32>
    %308 = arith.addf %305, %307 : vector<16x32xf32>
    %309 = arith.truncf %308 : vector<16x32xf32> to vector<16x32xbf16>
    %c1_110 = arith.constant 1 : index
    %c0_111 = arith.constant 0 : index
    %c0_112 = arith.constant 0 : index
    %310 = vector.load %arg5[%c1_110, %c0_111, %c0_112] : memref<2x32x96xbf16, #tpu.memory_space<vmem>>, vector<1x32x96xbf16>
    %311 = vector.shape_cast %310 : vector<1x32x96xbf16> to vector<32x96xbf16>
    %cst_113 = arith.constant dense<0.000000e+00> : vector<16x96xf32>
    %312 = tpu.matmul %309, %311, %cst_113 {dimension_numbers = #tpu.dot_dimension_numbers<[1], [0], [0], [1], [0, 0, 1, 1], [], []>} : vector<16x32xbf16>, vector<32x96xbf16>, vector<16x96xf32> -> vector<16x96xf32>
    %c1_114 = arith.constant 1 : index
    %c0_115 = arith.constant 0 : index
    %313 = vector.load %arg6[%c1_114, %c0_115] : memref<2x96xf32, #tpu.memory_space<vmem>>, vector<1x96xf32>
    %314 = vector.shape_cast %313 : vector<1x96xf32> to vector<96xf32>
    %315 = vector.shape_cast %314 : vector<96xf32> to vector<1x96xf32>
    %316 = vector.broadcast %315 : vector<1x96xf32> to vector<16x96xf32>
    %317 = arith.addf %312, %316 : vector<16x96xf32>
    %318 = vector.extract_strided_slice %317 {offsets = [0, 0], sizes = [16, 32], strides = [1, 1]} : vector<16x96xf32> to vector<16x32xf32>
    %319 = vector.extract_strided_slice %317 {offsets = [0, 32], sizes = [16, 32], strides = [1, 1]} : vector<16x96xf32> to vector<16x32xf32>
    %320 = vector.extract_strided_slice %317 {offsets = [0, 64], sizes = [16, 32], strides = [1, 1]} : vector<16x96xf32> to vector<16x32xf32>
    %321 = arith.truncf %318 : vector<16x32xf32> to vector<16x32xbf16>
    %322 = arith.truncf %319 : vector<16x32xf32> to vector<16x32xbf16>
    %323 = arith.truncf %320 : vector<16x32xf32> to vector<16x32xbf16>
    %324 = vector.extract_strided_slice %321 {offsets = [0, 0], sizes = [8, 32], strides = [1, 1]} : vector<16x32xbf16> to vector<8x32xbf16>
    %325 = vector.extract_strided_slice %322 {offsets = [0, 0], sizes = [8, 32], strides = [1, 1]} : vector<16x32xbf16> to vector<8x32xbf16>
    %326 = vector.extract_strided_slice %324 {offsets = [0, 0], sizes = [8, 8], strides = [1, 1]} : vector<8x32xbf16> to vector<8x8xbf16>
    %327 = vector.extract_strided_slice %325 {offsets = [0, 0], sizes = [8, 8], strides = [1, 1]} : vector<8x32xbf16> to vector<8x8xbf16>
    %cst_116 = arith.constant dense<0.000000e+00> : vector<8x8xf32>
    %328 = tpu.matmul %326, %327, %cst_116 {dimension_numbers = #tpu.dot_dimension_numbers<[1], [1], [0], [0], [0, 0, 1, 0], [], []>} : vector<8x8xbf16>, vector<8x8xbf16>, vector<8x8xf32> -> vector<8x8xf32>
    %329 = vector.extract_strided_slice %324 {offsets = [0, 8], sizes = [8, 8], strides = [1, 1]} : vector<8x32xbf16> to vector<8x8xbf16>
    %330 = vector.extract_strided_slice %325 {offsets = [0, 8], sizes = [8, 8], strides = [1, 1]} : vector<8x32xbf16> to vector<8x8xbf16>
    %cst_117 = arith.constant dense<0.000000e+00> : vector<8x8xf32>
    %331 = tpu.matmul %329, %330, %cst_117 {dimension_numbers = #tpu.dot_dimension_numbers<[1], [1], [0], [0], [0, 0, 1, 0], [], []>} : vector<8x8xbf16>, vector<8x8xbf16>, vector<8x8xf32> -> vector<8x8xf32>
    %332 = vector.extract_strided_slice %324 {offsets = [0, 16], sizes = [8, 8], strides = [1, 1]} : vector<8x32xbf16> to vector<8x8xbf16>
    %333 = vector.extract_strided_slice %325 {offsets = [0, 16], sizes = [8, 8], strides = [1, 1]} : vector<8x32xbf16> to vector<8x8xbf16>
    %cst_118 = arith.constant dense<0.000000e+00> : vector<8x8xf32>
    %334 = tpu.matmul %332, %333, %cst_118 {dimension_numbers = #tpu.dot_dimension_numbers<[1], [1], [0], [0], [0, 0, 1, 0], [], []>} : vector<8x8xbf16>, vector<8x8xbf16>, vector<8x8xf32> -> vector<8x8xf32>
    %335 = vector.extract_strided_slice %324 {offsets = [0, 24], sizes = [8, 8], strides = [1, 1]} : vector<8x32xbf16> to vector<8x8xbf16>
    %336 = vector.extract_strided_slice %325 {offsets = [0, 24], sizes = [8, 8], strides = [1, 1]} : vector<8x32xbf16> to vector<8x8xbf16>
    %cst_119 = arith.constant dense<0.000000e+00> : vector<8x8xf32>
    %337 = tpu.matmul %335, %336, %cst_119 {dimension_numbers = #tpu.dot_dimension_numbers<[1], [1], [0], [0], [0, 0, 1, 0], [], []>} : vector<8x8xbf16>, vector<8x8xbf16>, vector<8x8xf32> -> vector<8x8xf32>
    %338 = vector.extract_strided_slice %321 {offsets = [8, 0], sizes = [8, 32], strides = [1, 1]} : vector<16x32xbf16> to vector<8x32xbf16>
    %339 = vector.extract_strided_slice %322 {offsets = [8, 0], sizes = [8, 32], strides = [1, 1]} : vector<16x32xbf16> to vector<8x32xbf16>
    %340 = vector.extract_strided_slice %338 {offsets = [0, 0], sizes = [8, 8], strides = [1, 1]} : vector<8x32xbf16> to vector<8x8xbf16>
    %341 = vector.extract_strided_slice %339 {offsets = [0, 0], sizes = [8, 8], strides = [1, 1]} : vector<8x32xbf16> to vector<8x8xbf16>
    %cst_120 = arith.constant dense<0.000000e+00> : vector<8x8xf32>
    %342 = tpu.matmul %340, %341, %cst_120 {dimension_numbers = #tpu.dot_dimension_numbers<[1], [1], [0], [0], [0, 0, 1, 0], [], []>} : vector<8x8xbf16>, vector<8x8xbf16>, vector<8x8xf32> -> vector<8x8xf32>
    %343 = vector.extract_strided_slice %338 {offsets = [0, 8], sizes = [8, 8], strides = [1, 1]} : vector<8x32xbf16> to vector<8x8xbf16>
    %344 = vector.extract_strided_slice %339 {offsets = [0, 8], sizes = [8, 8], strides = [1, 1]} : vector<8x32xbf16> to vector<8x8xbf16>
    %cst_121 = arith.constant dense<0.000000e+00> : vector<8x8xf32>
    %345 = tpu.matmul %343, %344, %cst_121 {dimension_numbers = #tpu.dot_dimension_numbers<[1], [1], [0], [0], [0, 0, 1, 0], [], []>} : vector<8x8xbf16>, vector<8x8xbf16>, vector<8x8xf32> -> vector<8x8xf32>
    %346 = vector.extract_strided_slice %338 {offsets = [0, 16], sizes = [8, 8], strides = [1, 1]} : vector<8x32xbf16> to vector<8x8xbf16>
    %347 = vector.extract_strided_slice %339 {offsets = [0, 16], sizes = [8, 8], strides = [1, 1]} : vector<8x32xbf16> to vector<8x8xbf16>
    %cst_122 = arith.constant dense<0.000000e+00> : vector<8x8xf32>
    %348 = tpu.matmul %346, %347, %cst_122 {dimension_numbers = #tpu.dot_dimension_numbers<[1], [1], [0], [0], [0, 0, 1, 0], [], []>} : vector<8x8xbf16>, vector<8x8xbf16>, vector<8x8xf32> -> vector<8x8xf32>
    %349 = vector.extract_strided_slice %338 {offsets = [0, 24], sizes = [8, 8], strides = [1, 1]} : vector<8x32xbf16> to vector<8x8xbf16>
    %350 = vector.extract_strided_slice %339 {offsets = [0, 24], sizes = [8, 8], strides = [1, 1]} : vector<8x32xbf16> to vector<8x8xbf16>
    %cst_123 = arith.constant dense<0.000000e+00> : vector<8x8xf32>
    %351 = tpu.matmul %349, %350, %cst_123 {dimension_numbers = #tpu.dot_dimension_numbers<[1], [1], [0], [0], [0, 0, 1, 0], [], []>} : vector<8x8xbf16>, vector<8x8xbf16>, vector<8x8xf32> -> vector<8x8xf32>
    %352 = tpu.concatenate %328, %331, %334, %337, %342, %345, %348, %351 in 0 : vector<8x8xf32>, vector<8x8xf32>, vector<8x8xf32>, vector<8x8xf32>, vector<8x8xf32>, vector<8x8xf32>, vector<8x8xf32>, vector<8x8xf32> -> vector<64x8xf32>
    %cst_124 = arith.constant dense<0xFF800000> : vector<64xf32>
    %353 = vector.multi_reduction <maximumf>, %352, %cst_124 [1] : vector<64x8xf32> to vector<64xf32>
    %354 = vector.shape_cast %353 : vector<64xf32> to vector<64x1xf32>
    %355 = vector.broadcast %354 : vector<64x1xf32> to vector<64x8xf32>
    %356 = arith.subf %352, %355 : vector<64x8xf32>
    %357 = math.exp %356 : vector<64x8xf32>
    %cst_125 = arith.constant dense<0.000000e+00> : vector<64xf32>
    %358 = vector.multi_reduction <add>, %357, %cst_125 [1] : vector<64x8xf32> to vector<64xf32>
    %359 = vector.shape_cast %358 : vector<64xf32> to vector<64x1xf32>
    %360 = tpu.reciprocal %359 {approx = true} : vector<64x1xf32> -> vector<64x1xf32>
    %361 = vector.broadcast %360 : vector<64x1xf32> to vector<64x8xf32>
    %362 = arith.mulf %357, %361 : vector<64x8xf32>
    %363 = arith.truncf %362 : vector<64x8xf32> to vector<64x8xbf16>
    %364 = vector.extract_strided_slice %323 {offsets = [0, 0], sizes = [8, 32], strides = [1, 1]} : vector<16x32xbf16> to vector<8x32xbf16>
    %365 = vector.extract_strided_slice %363 {offsets = [0, 0], sizes = [8, 8], strides = [1, 1]} : vector<64x8xbf16> to vector<8x8xbf16>
    %366 = vector.extract_strided_slice %364 {offsets = [0, 0], sizes = [8, 8], strides = [1, 1]} : vector<8x32xbf16> to vector<8x8xbf16>
    %cst_126 = arith.constant dense<0.000000e+00> : vector<8x8xf32>
    %367 = tpu.matmul %365, %366, %cst_126 {dimension_numbers = #tpu.dot_dimension_numbers<[1], [0], [0], [1], [0, 0, 1, 1], [], []>} : vector<8x8xbf16>, vector<8x8xbf16>, vector<8x8xf32> -> vector<8x8xf32>
    %368 = vector.extract_strided_slice %363 {offsets = [8, 0], sizes = [8, 8], strides = [1, 1]} : vector<64x8xbf16> to vector<8x8xbf16>
    %369 = vector.extract_strided_slice %364 {offsets = [0, 8], sizes = [8, 8], strides = [1, 1]} : vector<8x32xbf16> to vector<8x8xbf16>
    %cst_127 = arith.constant dense<0.000000e+00> : vector<8x8xf32>
    %370 = tpu.matmul %368, %369, %cst_127 {dimension_numbers = #tpu.dot_dimension_numbers<[1], [0], [0], [1], [0, 0, 1, 1], [], []>} : vector<8x8xbf16>, vector<8x8xbf16>, vector<8x8xf32> -> vector<8x8xf32>
    %371 = vector.extract_strided_slice %363 {offsets = [16, 0], sizes = [8, 8], strides = [1, 1]} : vector<64x8xbf16> to vector<8x8xbf16>
    %372 = vector.extract_strided_slice %364 {offsets = [0, 16], sizes = [8, 8], strides = [1, 1]} : vector<8x32xbf16> to vector<8x8xbf16>
    %cst_128 = arith.constant dense<0.000000e+00> : vector<8x8xf32>
    %373 = tpu.matmul %371, %372, %cst_128 {dimension_numbers = #tpu.dot_dimension_numbers<[1], [0], [0], [1], [0, 0, 1, 1], [], []>} : vector<8x8xbf16>, vector<8x8xbf16>, vector<8x8xf32> -> vector<8x8xf32>
    %374 = vector.extract_strided_slice %363 {offsets = [24, 0], sizes = [8, 8], strides = [1, 1]} : vector<64x8xbf16> to vector<8x8xbf16>
    %375 = vector.extract_strided_slice %364 {offsets = [0, 24], sizes = [8, 8], strides = [1, 1]} : vector<8x32xbf16> to vector<8x8xbf16>
    %cst_129 = arith.constant dense<0.000000e+00> : vector<8x8xf32>
    %376 = tpu.matmul %374, %375, %cst_129 {dimension_numbers = #tpu.dot_dimension_numbers<[1], [0], [0], [1], [0, 0, 1, 1], [], []>} : vector<8x8xbf16>, vector<8x8xbf16>, vector<8x8xf32> -> vector<8x8xf32>
    %377 = tpu.concatenate %367, %370, %373, %376 in 1 : vector<8x8xf32>, vector<8x8xf32>, vector<8x8xf32>, vector<8x8xf32> -> vector<8x32xf32>
    %378 = vector.extract_strided_slice %323 {offsets = [8, 0], sizes = [8, 32], strides = [1, 1]} : vector<16x32xbf16> to vector<8x32xbf16>
    %379 = vector.extract_strided_slice %363 {offsets = [32, 0], sizes = [8, 8], strides = [1, 1]} : vector<64x8xbf16> to vector<8x8xbf16>
    %380 = vector.extract_strided_slice %378 {offsets = [0, 0], sizes = [8, 8], strides = [1, 1]} : vector<8x32xbf16> to vector<8x8xbf16>
    %cst_130 = arith.constant dense<0.000000e+00> : vector<8x8xf32>
    %381 = tpu.matmul %379, %380, %cst_130 {dimension_numbers = #tpu.dot_dimension_numbers<[1], [0], [0], [1], [0, 0, 1, 1], [], []>} : vector<8x8xbf16>, vector<8x8xbf16>, vector<8x8xf32> -> vector<8x8xf32>
    %382 = vector.extract_strided_slice %363 {offsets = [40, 0], sizes = [8, 8], strides = [1, 1]} : vector<64x8xbf16> to vector<8x8xbf16>
    %383 = vector.extract_strided_slice %378 {offsets = [0, 8], sizes = [8, 8], strides = [1, 1]} : vector<8x32xbf16> to vector<8x8xbf16>
    %cst_131 = arith.constant dense<0.000000e+00> : vector<8x8xf32>
    %384 = tpu.matmul %382, %383, %cst_131 {dimension_numbers = #tpu.dot_dimension_numbers<[1], [0], [0], [1], [0, 0, 1, 1], [], []>} : vector<8x8xbf16>, vector<8x8xbf16>, vector<8x8xf32> -> vector<8x8xf32>
    %385 = vector.extract_strided_slice %363 {offsets = [48, 0], sizes = [8, 8], strides = [1, 1]} : vector<64x8xbf16> to vector<8x8xbf16>
    %386 = vector.extract_strided_slice %378 {offsets = [0, 16], sizes = [8, 8], strides = [1, 1]} : vector<8x32xbf16> to vector<8x8xbf16>
    %cst_132 = arith.constant dense<0.000000e+00> : vector<8x8xf32>
    %387 = tpu.matmul %385, %386, %cst_132 {dimension_numbers = #tpu.dot_dimension_numbers<[1], [0], [0], [1], [0, 0, 1, 1], [], []>} : vector<8x8xbf16>, vector<8x8xbf16>, vector<8x8xf32> -> vector<8x8xf32>
    %388 = vector.extract_strided_slice %363 {offsets = [56, 0], sizes = [8, 8], strides = [1, 1]} : vector<64x8xbf16> to vector<8x8xbf16>
    %389 = vector.extract_strided_slice %378 {offsets = [0, 24], sizes = [8, 8], strides = [1, 1]} : vector<8x32xbf16> to vector<8x8xbf16>
    %cst_133 = arith.constant dense<0.000000e+00> : vector<8x8xf32>
    %390 = tpu.matmul %388, %389, %cst_133 {dimension_numbers = #tpu.dot_dimension_numbers<[1], [0], [0], [1], [0, 0, 1, 1], [], []>} : vector<8x8xbf16>, vector<8x8xbf16>, vector<8x8xf32> -> vector<8x8xf32>
    %391 = tpu.concatenate %381, %384, %387, %390 in 1 : vector<8x8xf32>, vector<8x8xf32>, vector<8x8xf32>, vector<8x8xf32> -> vector<8x32xf32>
    %392 = tpu.concatenate %377, %391 in 0 : vector<8x32xf32>, vector<8x32xf32> -> vector<16x32xf32>
    %393 = arith.truncf %392 : vector<16x32xf32> to vector<16x32xbf16>
    %c2_134 = arith.constant 2 : index
    %c0_135 = arith.constant 0 : index
    %c0_136 = arith.constant 0 : index
    %394 = vector.load %arg11[%c2_134, %c0_135, %c0_136] : memref<4x32x32xbf16, #tpu.memory_space<vmem>>, vector<1x32x32xbf16>
    %395 = vector.shape_cast %394 : vector<1x32x32xbf16> to vector<32x32xbf16>
    %cst_137 = arith.constant dense<0.000000e+00> : vector<16x32xf32>
    %396 = tpu.matmul %393, %395, %cst_137 {dimension_numbers = #tpu.dot_dimension_numbers<[1], [0], [0], [1], [0, 0, 1, 1], [], []>} : vector<16x32xbf16>, vector<32x32xbf16>, vector<16x32xf32> -> vector<16x32xf32>
    %c2_138 = arith.constant 2 : index
    %c0_139 = arith.constant 0 : index
    %397 = vector.load %arg12[%c2_138, %c0_139] : memref<4x32xf32, #tpu.memory_space<vmem>>, vector<1x32xf32>
    %398 = vector.shape_cast %397 : vector<1x32xf32> to vector<32xf32>
    %399 = vector.shape_cast %398 : vector<32xf32> to vector<1x32xf32>
    %400 = vector.broadcast %399 : vector<1x32xf32> to vector<16x32xf32>
    %401 = arith.addf %396, %400 : vector<16x32xf32>
    %402 = arith.addf %308, %401 : vector<16x32xf32>
    %c3 = arith.constant 3 : index
    %c0_140 = arith.constant 0 : index
    %403 = vector.load %arg17[%c3, %c0_140] : memref<6x32xf32, #tpu.memory_space<vmem>>, vector<1x32xf32>
    %404 = vector.shape_cast %403 : vector<1x32xf32> to vector<32xf32>
    %c3_141 = arith.constant 3 : index
    %c0_142 = arith.constant 0 : index
    %405 = vector.load %arg18[%c3_141, %c0_142] : memref<6x32xf32, #tpu.memory_space<vmem>>, vector<1x32xf32>
    %406 = vector.shape_cast %405 : vector<1x32xf32> to vector<32xf32>
    %cst_143 = arith.constant dense<0.000000e+00> : vector<16xf32>
    %407 = vector.multi_reduction <add>, %402, %cst_143 [1] : vector<16x32xf32> to vector<16xf32>
    %408 = vector.shape_cast %407 : vector<16xf32> to vector<16x1xf32>
    %cst_144 = arith.constant 3.200000e+01 : f32
    %409 = vector.broadcast %cst_144 : f32 to vector<16x1xf32>
    %410 = arith.divf %408, %409 : vector<16x1xf32>
    %411 = vector.broadcast %410 : vector<16x1xf32> to vector<16x32xf32>
    %412 = arith.subf %402, %411 : vector<16x32xf32>
    %413 = arith.mulf %412, %412 : vector<16x32xf32>
    %cst_145 = arith.constant dense<0.000000e+00> : vector<16xf32>
    %414 = vector.multi_reduction <add>, %413, %cst_145 [1] : vector<16x32xf32> to vector<16xf32>
    %415 = vector.shape_cast %414 : vector<16xf32> to vector<16x1xf32>
    %cst_146 = arith.constant 3.200000e+01 : f32
    %416 = vector.broadcast %cst_146 : f32 to vector<16x1xf32>
    %417 = arith.divf %415, %416 : vector<16x1xf32>
    %418 = vector.broadcast %410 : vector<16x1xf32> to vector<16x32xf32>
    %419 = arith.subf %402, %418 : vector<16x32xf32>
    %cst_147 = arith.constant 9.99999997E-7 : f32
    %420 = vector.broadcast %cst_147 : f32 to vector<16x1xf32>
    %421 = arith.addf %417, %420 : vector<16x1xf32>
    %422 = math.rsqrt %421 : vector<16x1xf32>
    %423 = vector.broadcast %422 : vector<16x1xf32> to vector<16x32xf32>
    %424 = arith.mulf %419, %423 : vector<16x32xf32>
    %425 = vector.shape_cast %404 : vector<32xf32> to vector<1x32xf32>
    %426 = vector.broadcast %425 : vector<1x32xf32> to vector<16x32xf32>
    %427 = arith.mulf %424, %426 : vector<16x32xf32>
    %428 = vector.shape_cast %406 : vector<32xf32> to vector<1x32xf32>
    %429 = vector.broadcast %428 : vector<1x32xf32> to vector<16x32xf32>
    %430 = arith.addf %427, %429 : vector<16x32xf32>
    %431 = arith.truncf %430 : vector<16x32xf32> to vector<16x32xbf16>
    %c1_148 = arith.constant 1 : index
    %c0_149 = arith.constant 0 : index
    %c0_150 = arith.constant 0 : index
    %432 = vector.load %arg7[%c1_148, %c0_149, %c0_150] : memref<2x32x32xbf16, #tpu.memory_space<vmem>>, vector<1x32x32xbf16>
    %433 = vector.shape_cast %432 : vector<1x32x32xbf16> to vector<32x32xbf16>
    %cst_151 = arith.constant dense<0.000000e+00> : vector<16x32xf32>
    %434 = tpu.matmul %431, %433, %cst_151 {dimension_numbers = #tpu.dot_dimension_numbers<[1], [0], [0], [1], [0, 0, 1, 1], [], []>} : vector<16x32xbf16>, vector<32x32xbf16>, vector<16x32xf32> -> vector<16x32xf32>
    %c1_152 = arith.constant 1 : index
    %c0_153 = arith.constant 0 : index
    %435 = vector.load %arg8[%c1_152, %c0_153] : memref<2x32xf32, #tpu.memory_space<vmem>>, vector<1x32xf32>
    %436 = vector.shape_cast %435 : vector<1x32xf32> to vector<32xf32>
    %437 = vector.shape_cast %436 : vector<32xf32> to vector<1x32xf32>
    %438 = vector.broadcast %437 : vector<1x32xf32> to vector<16x32xf32>
    %439 = arith.addf %434, %438 : vector<16x32xf32>
    %440 = vector.extract_strided_slice %16 {offsets = [0, 64], sizes = [16, 32], strides = [1, 1]} : vector<16x128xf32> to vector<16x32xf32>
    %441 = vector.extract_strided_slice %16 {offsets = [0, 96], sizes = [16, 32], strides = [1, 1]} : vector<16x128xf32> to vector<16x32xf32>
    %442 = arith.truncf %439 : vector<16x32xf32> to vector<16x32xbf16>
    %443 = arith.truncf %440 : vector<16x32xf32> to vector<16x32xbf16>
    %444 = arith.truncf %441 : vector<16x32xf32> to vector<16x32xbf16>
    %445 = vector.extract_strided_slice %442 {offsets = [0, 0], sizes = [8, 32], strides = [1, 1]} : vector<16x32xbf16> to vector<8x32xbf16>
    %446 = vector.extract_strided_slice %443 {offsets = [0, 0], sizes = [8, 32], strides = [1, 1]} : vector<16x32xbf16> to vector<8x32xbf16>
    %447 = vector.extract_strided_slice %445 {offsets = [0, 0], sizes = [8, 8], strides = [1, 1]} : vector<8x32xbf16> to vector<8x8xbf16>
    %448 = vector.extract_strided_slice %446 {offsets = [0, 0], sizes = [8, 8], strides = [1, 1]} : vector<8x32xbf16> to vector<8x8xbf16>
    %cst_154 = arith.constant dense<0.000000e+00> : vector<8x8xf32>
    %449 = tpu.matmul %447, %448, %cst_154 {dimension_numbers = #tpu.dot_dimension_numbers<[1], [1], [0], [0], [0, 0, 1, 0], [], []>} : vector<8x8xbf16>, vector<8x8xbf16>, vector<8x8xf32> -> vector<8x8xf32>
    %450 = vector.extract_strided_slice %445 {offsets = [0, 8], sizes = [8, 8], strides = [1, 1]} : vector<8x32xbf16> to vector<8x8xbf16>
    %451 = vector.extract_strided_slice %446 {offsets = [0, 8], sizes = [8, 8], strides = [1, 1]} : vector<8x32xbf16> to vector<8x8xbf16>
    %cst_155 = arith.constant dense<0.000000e+00> : vector<8x8xf32>
    %452 = tpu.matmul %450, %451, %cst_155 {dimension_numbers = #tpu.dot_dimension_numbers<[1], [1], [0], [0], [0, 0, 1, 0], [], []>} : vector<8x8xbf16>, vector<8x8xbf16>, vector<8x8xf32> -> vector<8x8xf32>
    %453 = vector.extract_strided_slice %445 {offsets = [0, 16], sizes = [8, 8], strides = [1, 1]} : vector<8x32xbf16> to vector<8x8xbf16>
    %454 = vector.extract_strided_slice %446 {offsets = [0, 16], sizes = [8, 8], strides = [1, 1]} : vector<8x32xbf16> to vector<8x8xbf16>
    %cst_156 = arith.constant dense<0.000000e+00> : vector<8x8xf32>
    %455 = tpu.matmul %453, %454, %cst_156 {dimension_numbers = #tpu.dot_dimension_numbers<[1], [1], [0], [0], [0, 0, 1, 0], [], []>} : vector<8x8xbf16>, vector<8x8xbf16>, vector<8x8xf32> -> vector<8x8xf32>
    %456 = vector.extract_strided_slice %445 {offsets = [0, 24], sizes = [8, 8], strides = [1, 1]} : vector<8x32xbf16> to vector<8x8xbf16>
    %457 = vector.extract_strided_slice %446 {offsets = [0, 24], sizes = [8, 8], strides = [1, 1]} : vector<8x32xbf16> to vector<8x8xbf16>
    %cst_157 = arith.constant dense<0.000000e+00> : vector<8x8xf32>
    %458 = tpu.matmul %456, %457, %cst_157 {dimension_numbers = #tpu.dot_dimension_numbers<[1], [1], [0], [0], [0, 0, 1, 0], [], []>} : vector<8x8xbf16>, vector<8x8xbf16>, vector<8x8xf32> -> vector<8x8xf32>
    %459 = vector.extract_strided_slice %442 {offsets = [8, 0], sizes = [8, 32], strides = [1, 1]} : vector<16x32xbf16> to vector<8x32xbf16>
    %460 = vector.extract_strided_slice %443 {offsets = [8, 0], sizes = [8, 32], strides = [1, 1]} : vector<16x32xbf16> to vector<8x32xbf16>
    %461 = vector.extract_strided_slice %459 {offsets = [0, 0], sizes = [8, 8], strides = [1, 1]} : vector<8x32xbf16> to vector<8x8xbf16>
    %462 = vector.extract_strided_slice %460 {offsets = [0, 0], sizes = [8, 8], strides = [1, 1]} : vector<8x32xbf16> to vector<8x8xbf16>
    %cst_158 = arith.constant dense<0.000000e+00> : vector<8x8xf32>
    %463 = tpu.matmul %461, %462, %cst_158 {dimension_numbers = #tpu.dot_dimension_numbers<[1], [1], [0], [0], [0, 0, 1, 0], [], []>} : vector<8x8xbf16>, vector<8x8xbf16>, vector<8x8xf32> -> vector<8x8xf32>
    %464 = vector.extract_strided_slice %459 {offsets = [0, 8], sizes = [8, 8], strides = [1, 1]} : vector<8x32xbf16> to vector<8x8xbf16>
    %465 = vector.extract_strided_slice %460 {offsets = [0, 8], sizes = [8, 8], strides = [1, 1]} : vector<8x32xbf16> to vector<8x8xbf16>
    %cst_159 = arith.constant dense<0.000000e+00> : vector<8x8xf32>
    %466 = tpu.matmul %464, %465, %cst_159 {dimension_numbers = #tpu.dot_dimension_numbers<[1], [1], [0], [0], [0, 0, 1, 0], [], []>} : vector<8x8xbf16>, vector<8x8xbf16>, vector<8x8xf32> -> vector<8x8xf32>
    %467 = vector.extract_strided_slice %459 {offsets = [0, 16], sizes = [8, 8], strides = [1, 1]} : vector<8x32xbf16> to vector<8x8xbf16>
    %468 = vector.extract_strided_slice %460 {offsets = [0, 16], sizes = [8, 8], strides = [1, 1]} : vector<8x32xbf16> to vector<8x8xbf16>
    %cst_160 = arith.constant dense<0.000000e+00> : vector<8x8xf32>
    %469 = tpu.matmul %467, %468, %cst_160 {dimension_numbers = #tpu.dot_dimension_numbers<[1], [1], [0], [0], [0, 0, 1, 0], [], []>} : vector<8x8xbf16>, vector<8x8xbf16>, vector<8x8xf32> -> vector<8x8xf32>
    %470 = vector.extract_strided_slice %459 {offsets = [0, 24], sizes = [8, 8], strides = [1, 1]} : vector<8x32xbf16> to vector<8x8xbf16>
    %471 = vector.extract_strided_slice %460 {offsets = [0, 24], sizes = [8, 8], strides = [1, 1]} : vector<8x32xbf16> to vector<8x8xbf16>
    %cst_161 = arith.constant dense<0.000000e+00> : vector<8x8xf32>
    %472 = tpu.matmul %470, %471, %cst_161 {dimension_numbers = #tpu.dot_dimension_numbers<[1], [1], [0], [0], [0, 0, 1, 0], [], []>} : vector<8x8xbf16>, vector<8x8xbf16>, vector<8x8xf32> -> vector<8x8xf32>
    %473 = tpu.concatenate %449, %452, %455, %458, %463, %466, %469, %472 in 0 : vector<8x8xf32>, vector<8x8xf32>, vector<8x8xf32>, vector<8x8xf32>, vector<8x8xf32>, vector<8x8xf32>, vector<8x8xf32>, vector<8x8xf32> -> vector<64x8xf32>
    %cst_162 = arith.constant dense<0xFF800000> : vector<64xf32>
    %474 = vector.multi_reduction <maximumf>, %473, %cst_162 [1] : vector<64x8xf32> to vector<64xf32>
    %475 = vector.shape_cast %474 : vector<64xf32> to vector<64x1xf32>
    %476 = vector.broadcast %475 : vector<64x1xf32> to vector<64x8xf32>
    %477 = arith.subf %473, %476 : vector<64x8xf32>
    %478 = math.exp %477 : vector<64x8xf32>
    %cst_163 = arith.constant dense<0.000000e+00> : vector<64xf32>
    %479 = vector.multi_reduction <add>, %478, %cst_163 [1] : vector<64x8xf32> to vector<64xf32>
    %480 = vector.shape_cast %479 : vector<64xf32> to vector<64x1xf32>
    %481 = tpu.reciprocal %480 {approx = true} : vector<64x1xf32> -> vector<64x1xf32>
    %482 = vector.broadcast %481 : vector<64x1xf32> to vector<64x8xf32>
    %483 = arith.mulf %478, %482 : vector<64x8xf32>
    %484 = arith.truncf %483 : vector<64x8xf32> to vector<64x8xbf16>
    %485 = vector.extract_strided_slice %444 {offsets = [0, 0], sizes = [8, 32], strides = [1, 1]} : vector<16x32xbf16> to vector<8x32xbf16>
    %486 = vector.extract_strided_slice %484 {offsets = [0, 0], sizes = [8, 8], strides = [1, 1]} : vector<64x8xbf16> to vector<8x8xbf16>
    %487 = vector.extract_strided_slice %485 {offsets = [0, 0], sizes = [8, 8], strides = [1, 1]} : vector<8x32xbf16> to vector<8x8xbf16>
    %cst_164 = arith.constant dense<0.000000e+00> : vector<8x8xf32>
    %488 = tpu.matmul %486, %487, %cst_164 {dimension_numbers = #tpu.dot_dimension_numbers<[1], [0], [0], [1], [0, 0, 1, 1], [], []>} : vector<8x8xbf16>, vector<8x8xbf16>, vector<8x8xf32> -> vector<8x8xf32>
    %489 = vector.extract_strided_slice %484 {offsets = [8, 0], sizes = [8, 8], strides = [1, 1]} : vector<64x8xbf16> to vector<8x8xbf16>
    %490 = vector.extract_strided_slice %485 {offsets = [0, 8], sizes = [8, 8], strides = [1, 1]} : vector<8x32xbf16> to vector<8x8xbf16>
    %cst_165 = arith.constant dense<0.000000e+00> : vector<8x8xf32>
    %491 = tpu.matmul %489, %490, %cst_165 {dimension_numbers = #tpu.dot_dimension_numbers<[1], [0], [0], [1], [0, 0, 1, 1], [], []>} : vector<8x8xbf16>, vector<8x8xbf16>, vector<8x8xf32> -> vector<8x8xf32>
    %492 = vector.extract_strided_slice %484 {offsets = [16, 0], sizes = [8, 8], strides = [1, 1]} : vector<64x8xbf16> to vector<8x8xbf16>
    %493 = vector.extract_strided_slice %485 {offsets = [0, 16], sizes = [8, 8], strides = [1, 1]} : vector<8x32xbf16> to vector<8x8xbf16>
    %cst_166 = arith.constant dense<0.000000e+00> : vector<8x8xf32>
    %494 = tpu.matmul %492, %493, %cst_166 {dimension_numbers = #tpu.dot_dimension_numbers<[1], [0], [0], [1], [0, 0, 1, 1], [], []>} : vector<8x8xbf16>, vector<8x8xbf16>, vector<8x8xf32> -> vector<8x8xf32>
    %495 = vector.extract_strided_slice %484 {offsets = [24, 0], sizes = [8, 8], strides = [1, 1]} : vector<64x8xbf16> to vector<8x8xbf16>
    %496 = vector.extract_strided_slice %485 {offsets = [0, 24], sizes = [8, 8], strides = [1, 1]} : vector<8x32xbf16> to vector<8x8xbf16>
    %cst_167 = arith.constant dense<0.000000e+00> : vector<8x8xf32>
    %497 = tpu.matmul %495, %496, %cst_167 {dimension_numbers = #tpu.dot_dimension_numbers<[1], [0], [0], [1], [0, 0, 1, 1], [], []>} : vector<8x8xbf16>, vector<8x8xbf16>, vector<8x8xf32> -> vector<8x8xf32>
    %498 = tpu.concatenate %488, %491, %494, %497 in 1 : vector<8x8xf32>, vector<8x8xf32>, vector<8x8xf32>, vector<8x8xf32> -> vector<8x32xf32>
    %499 = vector.extract_strided_slice %444 {offsets = [8, 0], sizes = [8, 32], strides = [1, 1]} : vector<16x32xbf16> to vector<8x32xbf16>
    %500 = vector.extract_strided_slice %484 {offsets = [32, 0], sizes = [8, 8], strides = [1, 1]} : vector<64x8xbf16> to vector<8x8xbf16>
    %501 = vector.extract_strided_slice %499 {offsets = [0, 0], sizes = [8, 8], strides = [1, 1]} : vector<8x32xbf16> to vector<8x8xbf16>
    %cst_168 = arith.constant dense<0.000000e+00> : vector<8x8xf32>
    %502 = tpu.matmul %500, %501, %cst_168 {dimension_numbers = #tpu.dot_dimension_numbers<[1], [0], [0], [1], [0, 0, 1, 1], [], []>} : vector<8x8xbf16>, vector<8x8xbf16>, vector<8x8xf32> -> vector<8x8xf32>
    %503 = vector.extract_strided_slice %484 {offsets = [40, 0], sizes = [8, 8], strides = [1, 1]} : vector<64x8xbf16> to vector<8x8xbf16>
    %504 = vector.extract_strided_slice %499 {offsets = [0, 8], sizes = [8, 8], strides = [1, 1]} : vector<8x32xbf16> to vector<8x8xbf16>
    %cst_169 = arith.constant dense<0.000000e+00> : vector<8x8xf32>
    %505 = tpu.matmul %503, %504, %cst_169 {dimension_numbers = #tpu.dot_dimension_numbers<[1], [0], [0], [1], [0, 0, 1, 1], [], []>} : vector<8x8xbf16>, vector<8x8xbf16>, vector<8x8xf32> -> vector<8x8xf32>
    %506 = vector.extract_strided_slice %484 {offsets = [48, 0], sizes = [8, 8], strides = [1, 1]} : vector<64x8xbf16> to vector<8x8xbf16>
    %507 = vector.extract_strided_slice %499 {offsets = [0, 16], sizes = [8, 8], strides = [1, 1]} : vector<8x32xbf16> to vector<8x8xbf16>
    %cst_170 = arith.constant dense<0.000000e+00> : vector<8x8xf32>
    %508 = tpu.matmul %506, %507, %cst_170 {dimension_numbers = #tpu.dot_dimension_numbers<[1], [0], [0], [1], [0, 0, 1, 1], [], []>} : vector<8x8xbf16>, vector<8x8xbf16>, vector<8x8xf32> -> vector<8x8xf32>
    %509 = vector.extract_strided_slice %484 {offsets = [56, 0], sizes = [8, 8], strides = [1, 1]} : vector<64x8xbf16> to vector<8x8xbf16>
    %510 = vector.extract_strided_slice %499 {offsets = [0, 24], sizes = [8, 8], strides = [1, 1]} : vector<8x32xbf16> to vector<8x8xbf16>
    %cst_171 = arith.constant dense<0.000000e+00> : vector<8x8xf32>
    %511 = tpu.matmul %509, %510, %cst_171 {dimension_numbers = #tpu.dot_dimension_numbers<[1], [0], [0], [1], [0, 0, 1, 1], [], []>} : vector<8x8xbf16>, vector<8x8xbf16>, vector<8x8xf32> -> vector<8x8xf32>
    %512 = tpu.concatenate %502, %505, %508, %511 in 1 : vector<8x8xf32>, vector<8x8xf32>, vector<8x8xf32>, vector<8x8xf32> -> vector<8x32xf32>
    %513 = tpu.concatenate %498, %512 in 0 : vector<8x32xf32>, vector<8x32xf32> -> vector<16x32xf32>
    %514 = arith.truncf %513 : vector<16x32xf32> to vector<16x32xbf16>
    %c3_172 = arith.constant 3 : index
    %c0_173 = arith.constant 0 : index
    %c0_174 = arith.constant 0 : index
    %515 = vector.load %arg11[%c3_172, %c0_173, %c0_174] : memref<4x32x32xbf16, #tpu.memory_space<vmem>>, vector<1x32x32xbf16>
    %516 = vector.shape_cast %515 : vector<1x32x32xbf16> to vector<32x32xbf16>
    %cst_175 = arith.constant dense<0.000000e+00> : vector<16x32xf32>
    %517 = tpu.matmul %514, %516, %cst_175 {dimension_numbers = #tpu.dot_dimension_numbers<[1], [0], [0], [1], [0, 0, 1, 1], [], []>} : vector<16x32xbf16>, vector<32x32xbf16>, vector<16x32xf32> -> vector<16x32xf32>
    %c3_176 = arith.constant 3 : index
    %c0_177 = arith.constant 0 : index
    %518 = vector.load %arg12[%c3_176, %c0_177] : memref<4x32xf32, #tpu.memory_space<vmem>>, vector<1x32xf32>
    %519 = vector.shape_cast %518 : vector<1x32xf32> to vector<32xf32>
    %520 = vector.shape_cast %519 : vector<32xf32> to vector<1x32xf32>
    %521 = vector.broadcast %520 : vector<1x32xf32> to vector<16x32xf32>
    %522 = arith.addf %517, %521 : vector<16x32xf32>
    %523 = arith.addf %430, %522 : vector<16x32xf32>
    %c4 = arith.constant 4 : index
    %c0_178 = arith.constant 0 : index
    %524 = vector.load %arg17[%c4, %c0_178] : memref<6x32xf32, #tpu.memory_space<vmem>>, vector<1x32xf32>
    %525 = vector.shape_cast %524 : vector<1x32xf32> to vector<32xf32>
    %c4_179 = arith.constant 4 : index
    %c0_180 = arith.constant 0 : index
    %526 = vector.load %arg18[%c4_179, %c0_180] : memref<6x32xf32, #tpu.memory_space<vmem>>, vector<1x32xf32>
    %527 = vector.shape_cast %526 : vector<1x32xf32> to vector<32xf32>
    %cst_181 = arith.constant dense<0.000000e+00> : vector<16xf32>
    %528 = vector.multi_reduction <add>, %523, %cst_181 [1] : vector<16x32xf32> to vector<16xf32>
    %529 = vector.shape_cast %528 : vector<16xf32> to vector<16x1xf32>
    %cst_182 = arith.constant 3.200000e+01 : f32
    %530 = vector.broadcast %cst_182 : f32 to vector<16x1xf32>
    %531 = arith.divf %529, %530 : vector<16x1xf32>
    %532 = vector.broadcast %531 : vector<16x1xf32> to vector<16x32xf32>
    %533 = arith.subf %523, %532 : vector<16x32xf32>
    %534 = arith.mulf %533, %533 : vector<16x32xf32>
    %cst_183 = arith.constant dense<0.000000e+00> : vector<16xf32>
    %535 = vector.multi_reduction <add>, %534, %cst_183 [1] : vector<16x32xf32> to vector<16xf32>
    %536 = vector.shape_cast %535 : vector<16xf32> to vector<16x1xf32>
    %cst_184 = arith.constant 3.200000e+01 : f32
    %537 = vector.broadcast %cst_184 : f32 to vector<16x1xf32>
    %538 = arith.divf %536, %537 : vector<16x1xf32>
    %539 = vector.broadcast %531 : vector<16x1xf32> to vector<16x32xf32>
    %540 = arith.subf %523, %539 : vector<16x32xf32>
    %cst_185 = arith.constant 9.99999997E-7 : f32
    %541 = vector.broadcast %cst_185 : f32 to vector<16x1xf32>
    %542 = arith.addf %538, %541 : vector<16x1xf32>
    %543 = math.rsqrt %542 : vector<16x1xf32>
    %544 = vector.broadcast %543 : vector<16x1xf32> to vector<16x32xf32>
    %545 = arith.mulf %540, %544 : vector<16x32xf32>
    %546 = vector.shape_cast %525 : vector<32xf32> to vector<1x32xf32>
    %547 = vector.broadcast %546 : vector<1x32xf32> to vector<16x32xf32>
    %548 = arith.mulf %545, %547 : vector<16x32xf32>
    %549 = vector.shape_cast %527 : vector<32xf32> to vector<1x32xf32>
    %550 = vector.broadcast %549 : vector<1x32xf32> to vector<16x32xf32>
    %551 = arith.addf %548, %550 : vector<16x32xf32>
    %552 = arith.truncf %551 : vector<16x32xf32> to vector<16x32xbf16>
    %c1_186 = arith.constant 1 : index
    %c0_187 = arith.constant 0 : index
    %c0_188 = arith.constant 0 : index
    %553 = vector.load %arg13[%c1_186, %c0_187, %c0_188] : memref<2x32x64xbf16, #tpu.memory_space<vmem>>, vector<1x32x64xbf16>
    %554 = vector.shape_cast %553 : vector<1x32x64xbf16> to vector<32x64xbf16>
    %cst_189 = arith.constant dense<0.000000e+00> : vector<16x64xf32>
    %555 = tpu.matmul %552, %554, %cst_189 {dimension_numbers = #tpu.dot_dimension_numbers<[1], [0], [0], [1], [0, 0, 1, 1], [], []>} : vector<16x32xbf16>, vector<32x64xbf16>, vector<16x64xf32> -> vector<16x64xf32>
    %c1_190 = arith.constant 1 : index
    %c0_191 = arith.constant 0 : index
    %556 = vector.load %arg14[%c1_190, %c0_191] : memref<2x64xf32, #tpu.memory_space<vmem>>, vector<1x64xf32>
    %557 = vector.shape_cast %556 : vector<1x64xf32> to vector<64xf32>
    %558 = vector.shape_cast %557 : vector<64xf32> to vector<1x64xf32>
    %559 = vector.broadcast %558 : vector<1x64xf32> to vector<16x64xf32>
    %560 = arith.addf %555, %559 : vector<16x64xf32>
    %cst_192 = arith.constant 0.000000e+00 : f32
    %561 = vector.broadcast %cst_192 : f32 to vector<16x64xf32>
    %562 = arith.maximumf %560, %561 : vector<16x64xf32>
    %563 = arith.truncf %562 : vector<16x64xf32> to vector<16x64xbf16>
    %c1_193 = arith.constant 1 : index
    %c0_194 = arith.constant 0 : index
    %c0_195 = arith.constant 0 : index
    %564 = vector.load %arg15[%c1_193, %c0_194, %c0_195] : memref<2x64x32xbf16, #tpu.memory_space<vmem>>, vector<1x64x32xbf16>
    %565 = vector.shape_cast %564 : vector<1x64x32xbf16> to vector<64x32xbf16>
    %cst_196 = arith.constant dense<0.000000e+00> : vector<16x32xf32>
    %566 = tpu.matmul %563, %565, %cst_196 {dimension_numbers = #tpu.dot_dimension_numbers<[1], [0], [0], [1], [0, 0, 1, 1], [], []>} : vector<16x64xbf16>, vector<64x32xbf16>, vector<16x32xf32> -> vector<16x32xf32>
    %c1_197 = arith.constant 1 : index
    %c0_198 = arith.constant 0 : index
    %567 = vector.load %arg16[%c1_197, %c0_198] : memref<2x32xf32, #tpu.memory_space<vmem>>, vector<1x32xf32>
    %568 = vector.shape_cast %567 : vector<1x32xf32> to vector<32xf32>
    %569 = vector.shape_cast %568 : vector<32xf32> to vector<1x32xf32>
    %570 = vector.broadcast %569 : vector<1x32xf32> to vector<16x32xf32>
    %571 = arith.addf %566, %570 : vector<16x32xf32>
    %572 = arith.addf %551, %571 : vector<16x32xf32>
    %c5 = arith.constant 5 : index
    %c0_199 = arith.constant 0 : index
    %573 = vector.load %arg17[%c5, %c0_199] : memref<6x32xf32, #tpu.memory_space<vmem>>, vector<1x32xf32>
    %574 = vector.shape_cast %573 : vector<1x32xf32> to vector<32xf32>
    %c5_200 = arith.constant 5 : index
    %c0_201 = arith.constant 0 : index
    %575 = vector.load %arg18[%c5_200, %c0_201] : memref<6x32xf32, #tpu.memory_space<vmem>>, vector<1x32xf32>
    %576 = vector.shape_cast %575 : vector<1x32xf32> to vector<32xf32>
    %cst_202 = arith.constant dense<0.000000e+00> : vector<16xf32>
    %577 = vector.multi_reduction <add>, %572, %cst_202 [1] : vector<16x32xf32> to vector<16xf32>
    %578 = vector.shape_cast %577 : vector<16xf32> to vector<16x1xf32>
    %cst_203 = arith.constant 3.200000e+01 : f32
    %579 = vector.broadcast %cst_203 : f32 to vector<16x1xf32>
    %580 = arith.divf %578, %579 : vector<16x1xf32>
    %581 = vector.broadcast %580 : vector<16x1xf32> to vector<16x32xf32>
    %582 = arith.subf %572, %581 : vector<16x32xf32>
    %583 = arith.mulf %582, %582 : vector<16x32xf32>
    %cst_204 = arith.constant dense<0.000000e+00> : vector<16xf32>
    %584 = vector.multi_reduction <add>, %583, %cst_204 [1] : vector<16x32xf32> to vector<16xf32>
    %585 = vector.shape_cast %584 : vector<16xf32> to vector<16x1xf32>
    %cst_205 = arith.constant 3.200000e+01 : f32
    %586 = vector.broadcast %cst_205 : f32 to vector<16x1xf32>
    %587 = arith.divf %585, %586 : vector<16x1xf32>
    %588 = vector.broadcast %580 : vector<16x1xf32> to vector<16x32xf32>
    %589 = arith.subf %572, %588 : vector<16x32xf32>
    %cst_206 = arith.constant 9.99999997E-7 : f32
    %590 = vector.broadcast %cst_206 : f32 to vector<16x1xf32>
    %591 = arith.addf %587, %590 : vector<16x1xf32>
    %592 = math.rsqrt %591 : vector<16x1xf32>
    %593 = vector.broadcast %592 : vector<16x1xf32> to vector<16x32xf32>
    %594 = arith.mulf %589, %593 : vector<16x32xf32>
    %595 = vector.shape_cast %574 : vector<32xf32> to vector<1x32xf32>
    %596 = vector.broadcast %595 : vector<1x32xf32> to vector<16x32xf32>
    %597 = arith.mulf %594, %596 : vector<16x32xf32>
    %598 = vector.shape_cast %576 : vector<32xf32> to vector<1x32xf32>
    %599 = vector.broadcast %598 : vector<1x32xf32> to vector<16x32xf32>
    %600 = arith.addf %597, %599 : vector<16x32xf32>
    %c0_207 = arith.constant 0 : index
    %c0_208 = arith.constant 0 : index
    %601 = vector.load %arg19[%c0_207, %c0_208] : memref<16x32xf32, #tpu.memory_space<vmem>>, vector<16x32xf32>
    tpu.vector_store %arg19[%c0_207, %c0_208], %600 {strides = array<i32>} : memref<16x32xf32, #tpu.memory_space<vmem>>, vector<16x32xf32>,
    return
  }
  func.func @transform_0(%arg0: i32) -> (i32, i32) {
    %c0_i32 = arith.constant 0 : i32
    %c0_i32_0 = arith.constant 0 : i32
    %c0_i32_1 = arith.constant 0 : i32
    return %c0_i32, %c0_i32_0 : i32, i32
  }
  func.func @transform_1(%arg0: i32) -> (i32, i32) {
    %c0_i32 = arith.constant 0 : i32
    %c0_i32_0 = arith.constant 0 : i32
    %c0_i32_1 = arith.constant 0 : i32
    return %c0_i32, %c0_i32_0 : i32, i32
  }
  func.func @transform_2(%arg0: i32) -> (i32, i32) {
    %c0_i32 = arith.constant 0 : i32
    %c0_i32_0 = arith.constant 0 : i32
    %c0_i32_1 = arith.constant 0 : i32
    return %c0_i32, %c0_i32_0 : i32, i32
  }
  func.func @transform_3(%arg0: i32) -> (i32, i32) {
    %c0_i32 = arith.constant 0 : i32
    %c0_i32_0 = arith.constant 0 : i32
    %c0_i32_1 = arith.constant 0 : i32
    return %c0_i32, %c0_i32_0 : i32, i32
  }
  func.func @transform_4(%arg0: i32) -> (i32, i32, i32) {
    %c0_i32 = arith.constant 0 : i32
    %c0_i32_0 = arith.constant 0 : i32
    %c0_i32_1 = arith.constant 0 : i32
    %c0_i32_2 = arith.constant 0 : i32
    return %c0_i32, %c0_i32_0, %c0_i32_1 : i32, i32, i32
  }
  func.func @transform_5(%arg0: i32) -> (i32, i32) {
    %c0_i32 = arith.constant 0 : i32
    %c0_i32_0 = arith.constant 0 : i32
    %c0_i32_1 = arith.constant 0 : i32
    return %c0_i32, %c0_i32_0 : i32, i32
  }
  func.func @transform_6(%arg0: i32) -> (i32, i32, i32) {
    %c0_i32 = arith.constant 0 : i32
    %c0_i32_0 = arith.constant 0 : i32
    %c0_i32_1 = arith.constant 0 : i32
    %c0_i32_2 = arith.constant 0 : i32
    return %c0_i32, %c0_i32_0, %c0_i32_1 : i32, i32, i32
  }
  func.func @transform_7(%arg0: i32) -> (i32, i32) {
    %c0_i32 = arith.constant 0 : i32
    %c0_i32_0 = arith.constant 0 : i32
    %c0_i32_1 = arith.constant 0 : i32
    return %c0_i32, %c0_i32_0 : i32, i32
  }
  func.func @transform_8(%arg0: i32) -> (i32, i32) {
    %c0_i32 = arith.constant 0 : i32
    %c0_i32_0 = arith.constant 0 : i32
    %c0_i32_1 = arith.constant 0 : i32
    return %c0_i32, %c0_i32_0 : i32, i32
  }
  func.func @transform_9(%arg0: i32) -> (i32, i32) {
    %c0_i32 = arith.constant 0 : i32
    %c0_i32_0 = arith.constant 0 : i32
    %c0_i32_1 = arith.constant 0 : i32
    return %c0_i32, %c0_i32_0 : i32, i32
  }
  func.func @transform_10(%arg0: i32) -> (i32, i32, i32) {
    %c0_i32 = arith.constant 0 : i32
    %c0_i32_0 = arith.constant 0 : i32
    %c0_i32_1 = arith.constant 0 : i32
    %c0_i32_2 = arith.constant 0 : i32
    return %c0_i32, %c0_i32_0, %c0_i32_1 : i32, i32, i32
  }
  func.func @transform_11(%arg0: i32) -> (i32, i32) {
    %c0_i32 = arith.constant 0 : i32
    %c0_i32_0 = arith.constant 0 : i32
    %c0_i32_1 = arith.constant 0 : i32
    return %c0_i32, %c0_i32_0 : i32, i32
  }
  func.func @transform_12(%arg0: i32) -> (i32, i32, i32) {
    %c0_i32 = arith.constant 0 : i32
    %c0_i32_0 = arith.constant 0 : i32
    %c0_i32_1 = arith.constant 0 : i32
    %c0_i32_2 = arith.constant 0 : i32
    return %c0_i32, %c0_i32_0, %c0_i32_1 : i32, i32, i32
  }
  func.func @transform_13(%arg0: i32) -> (i32, i32) {
    %c0_i32 = arith.constant 0 : i32
    %c0_i32_0 = arith.constant 0 : i32
    %c0_i32_1 = arith.constant 0 : i32
    return %c0_i32, %c0_i32_0 : i32, i32
  }
  func.func @transform_14(%arg0: i32) -> (i32, i32, i32) {
    %c0_i32 = arith.constant 0 : i32
    %c0_i32_0 = arith.constant 0 : i32
    %c0_i32_1 = arith.constant 0 : i32
    %c0_i32_2 = arith.constant 0 : i32
    return %c0_i32, %c0_i32_0, %c0_i32_1 : i32, i32, i32
  }
  func.func @transform_15(%arg0: i32) -> (i32, i32) {
    %c0_i32 = arith.constant 0 : i32
    %c0_i32_0 = arith.constant 0 : i32
    %c0_i32_1 = arith.constant 0 : i32
    return %c0_i32, %c0_i32_0 : i32, i32
  }
  func.func @transform_16(%arg0: i32) -> (i32, i32) {
    %c0_i32 = arith.constant 0 : i32
    %c0_i32_0 = arith.constant 0 : i32
    %c0_i32_1 = arith.constant 0 : i32
    return %c0_i32, %c0_i32_0 : i32, i32
  }
  func.func @transform_17(%arg0: i32) -> (i32, i32) {
    %c0_i32 = arith.constant 0 : i32
    %c0_i32_0 = arith.constant 0 : i32
    %c0_i32_1 = arith.constant 0 : i32
    return %c0_i32, %c0_i32_0 : i32, i32
  }
  func.func @transform_18(%arg0: i32) -> (i32, i32) {
    %c0_i32 = arith.constant 0 : i32
    %c0_i32_0 = arith.constant 0 : i32
    %c0_i32_1 = arith.constant 0 : i32
    return %c0_i32, %c0_i32_0 : i32, i32
  }
}

</mosaic_0001>

<bundles_post_ra>
// kernel: tpu_custom_call.1
= control target key start
LH: loop header
LB: loop body
LE: loop exit
PB: predicated region body
PF: predicated region fallthrough
CT: control target
= control target key end

     0   :  { %s7487_s0 = inlined_call_operand.vmem [shape: s32[16,1], index: 0, kind: input, shape index: {}]   ;;  %s7488_s1 = inlined_call_operand.vmem [shape: f32[64,32], index: 1, kind: input, shape index: {}]   ;;  %s7489_s2 = inlined_call_operand.vmem [shape: f32[16,32], index: 2, kind: input, shape index: {}]   ;;  %s7490_s3 = inlined_call_operand.hbm [shape: f32[16,32], index: 3, kind: input, shape index: {}]   ;;  %s7491_s4 = inlined_call_operand.vmem [shape: bf16[2,32,96], index: 4, kind: input, shape index: {}]   ;;  %s7492_s5 = inlined_call_operand.vmem [shape: f32[2,96], index: 5, kind: input, shape index: {}]   ;;  %s7493_s6 = inlined_call_operand.vmem [shape: bf16[2,32,32], index: 6, kind: input, shape index: {}]   ;;  %s7494_s7 = inlined_call_operand.hbm [shape: f32[2,32], index: 7, kind: input, shape index: {}]   ;;  %s7495_s8 = inlined_call_operand.vmem [shape: bf16[32,128], index: 8, kind: input, shape index: {}]   ;;  %s7496_s9 = inlined_call_operand.hbm [shape: f32[1,128], index: 9, kind: input, shape index: {}]   ;;  %s7497_s10 = inlined_call_operand.vmem [shape: bf16[4,32,32], index: 10, kind: input, shape index: {}]   ;;  %s7498_s11 = inlined_call_operand.vmem [shape: f32[4,32], index: 11, kind: input, shape index: {}]   ;;  %s7499_s12 = inlined_call_operand.vmem [shape: bf16[2,32,64], index: 12, kind: input, shape index: {}]   ;;  %s7500_s13 = inlined_call_operand.vmem [shape: f32[2,64], index: 13, kind: input, shape index: {}]   ;;  %s7501_s14 = inlined_call_operand.vmem [shape: bf16[2,64,32], index: 14, kind: input, shape index: {}]   ;;  %s7502_s15 = inlined_call_operand.vmem [shape: f32[2,32], index: 15, kind: input, shape index: {}]   ;;  %s7503_s16 = inlined_call_operand.vmem [shape: f32[6,32], index: 16, kind: input, shape index: {}]   ;;  %s7504_s17 = inlined_call_operand.vmem [shape: f32[6,32], index: 17, kind: input, shape index: {}]   ;;  %s7505_s18 = inlined_call_operand.hbm [shape: f32[16,32], index: 18, kind: output, shape index: {}]  }
   0x1   :  { %7516 = sst [smem:[#allocation12_spill]] %s7487_s0 }
   0x2   :  { %7517 = sst [smem:[#allocation13_spill]] %s7488_s1 }
   0x3   :  { %7518 = sst [smem:[#allocation14_spill]] %s7489_s2 }
   0x4   :  { %23 = vsyncpa [#allocation3], 0 }
   0x5   :  { %24 = vsyncpa [#allocation6], 0 }
   0x6   :  { %25 = vsyncpa [#allocation4], 0  ;;  %s6280_s27 = smov [#allocation5]   ;;  %s6281_s29 = smov [#allocation2]  }
   0x7   :  { %s56_s28 = sshll.u32 %s6280_s27, 4  ;;  %s37_s30 = sshll.u32 %s6281_s29, 4  ;;  %s57_s28 = int_to_ptr.vmem [resolvable:$true] %s56_s28  ;;  %s6398_s30 = int_to_ptr.vmem [resolvable:$true] %s37_s30 }
   0x8   :  { %s6186_s1 = scalar_lea.hbm %s7494_s7, 32 }
   0x9   :  { %p6187_p0 = scmp.ne.s32.totalorder %s7494_s7, %s6186_s1  ;;  %p6190_p1 = scmp.lt.u32.totalorder %s6186_s1, %s7494_s7 }
   0xb   :  { %p6192_p2 = pnand %p6190_p1, %p6187_p0 }
   0xd   :  { %6195 = shalt.err (!%p6192_p2)
}
   0xe   :  { %s6196_s23 = scalar_lea.vmem %s57_s28, 32  ;;  %p6201_p4 = scmp.lt.s32.totalorder %s57_s28, %s57_s28 }
   0xf   :  { %p6197_p3 = scmp.ne.s32.totalorder %s57_s28, %s6196_s23  ;;  %p6202_p5 = scmp.lt.s32.totalorder %s6196_s23, %s6196_s23 }
  0x11   :  { %p6203_p6 = por %p6202_p5, %p6201_p4 }
  0x13   :  { %p6204_p7 = pnand %p6203_p6, %p6197_p3 }
  0x15   :  { %6207 = shalt.err (!%p6204_p7)
}
  0x16   :  { %59 = dma.hbm_to_vmem [thread:$0]  %s7494_s7, 32, %s57_s28, [#allocation6]  }
  0x17   :  { %s6208_s29 = scalar_lea.hbm %s7490_s3, 256 }
  0x18   :  { %p6209_p8 = scmp.ne.s32.totalorder %s7490_s3, %s6208_s29  ;;  %p6212_p9 = scmp.lt.u32.totalorder %s6208_s29, %s7490_s3 }
  0x1a   :  { %p6214_p10 = pnand %p6212_p9, %p6209_p8 }
  0x1c   :  { %6217 = shalt.err (!%p6214_p10)
}
  0x1d   :  { %s6218_s21 = scalar_lea.vmem %s6398_s30, 256  ;;  %p6223_p12 = scmp.lt.s32.totalorder %s6398_s30, %s6398_s30 }
  0x1e   :  { %p6219_p11 = scmp.ne.s32.totalorder %s6398_s30, %s6218_s21  ;;  %p6224_p13 = scmp.lt.s32.totalorder %s6218_s21, %s6218_s21 }
  0x20   :  { %p6225_p0 = por %p6224_p13, %p6223_p12 }
  0x22   :  { %p6226_p1 = pnand %p6225_p0, %p6219_p11 }
  0x24   :  { %6229 = shalt.err (!%p6226_p1)
}
  0x25   :  { %s7509_s7 = smov 128   ;;  %s7514_s28 = smov 8  }
  0x26   :  { %43 = dma.hbm_to_vmem [thread:$0]  %s7490_s3, 256, %s6398_s30, [#allocation3], %s7509_s7, %s7509_s7, %s7514_s28  }
  0x27   :  { %s6284_s23 = smov [#allocation7]   ;;  %s6230_s27 = scalar_lea.hbm %s7496_s9, 16 }
  0x28   :  { %s68_s24 = sshll.u32 %s6284_s23, 4  ;;  %p6231_p2 = scmp.ne.s32.totalorder %s7496_s9, %s6230_s27  ;;  %s69_s24 = int_to_ptr.vmem [resolvable:$true] %s68_s24 }
  0x29   :  { %p6234_p3 = scmp.lt.u32.totalorder %s6230_s27, %s7496_s9 }
  0x2b   :  { %p6236_p4 = pnand %p6234_p3, %p6231_p2 }
  0x2d   :  { %6239 = shalt.err (!%p6236_p4)
}
  0x2e   :  { %s6240_s20 = scalar_lea.vmem %s69_s24, 16  ;;  %s6244_s3 = scalar_lea.vmem %s69_s24, 32 }
  0x2f   :  { %p6241_p5 = scmp.ne.s32.totalorder %s69_s24, %s6240_s20  ;;  %p6245_p6 = scmp.lt.s32.totalorder %s69_s24, %s69_s24 }
  0x30   :  { %p6246_p7 = scmp.lt.s32.totalorder %s6244_s3, %s6240_s20 }
  0x32   :  { %p6247_p8 = por %p6246_p7, %p6245_p6 }
  0x34   :  { %p6248_p9 = pnand %p6247_p8, %p6241_p5 }
  0x36   :  { %6251 = shalt.err (!%p6248_p9)
}
  0x37   :  { %71 = dma.hbm_to_vmem [thread:$0]  %s7496_s9, 16, %s69_s24, [#allocation6]  }
  0x38   :  { %6274 = dma.done.wait [#allocation3], 256  }
  0x39   :  { %6275 = vsyncadd [#allocation3], 4294967040 }
  0x3a   :  { %6276 = dma.done.wait [#allocation6], 48  }
  0x3b   :  { %6277 = vsyncadd [#allocation6], 4294967248  ;;  %v6285_v0 = vmov 0   ;;  %s7519_s23 = sld [smem:[#allocation12_spill]]  ;;  %s7520_s27 = sld [smem:[#allocation13_spill]]  ;;  %v6286_v10 = vmov 0.0   ;;  %v100_v22 = vlaneseq }
  0x3c   :  { %5943 = vset.pattern.permute.xlu0 %v6285_v0  ;;  %5408 = vmatprep.subr.bf16.mxu1 %v6286_v10  ;;  %v6004_v15 = vld [vmem:[%s7495_s8] sm:$0xff]   ;;  %v6005_v16 = vld [vmem:[%s7495_s8 + $0x8] sm:$0xff]   ;;  %vm6287_vm0 = vmmov 0   ;;  %vm232_vm1 = vcmask 261120   ;;  %vm124_vm2 = vcmask 523264   ;;  %s7521_s21 = sld [smem:[#allocation14_spill]] }
  0x3d   :  { %5412 = vmatprep.mubr.msk.bf16.mxu1 %vm6287_vm0, %v6286_v10  ;;  %v206_v17 = vld [vmem:[#allocation2] sm:$0xff]  ;;  %v207_v18 = vld [vmem:[#allocation2 + $0x8] sm:$0xff]  ;;  %5409 = vmatpush3.bf16.msra.mxu1 %v6004_v15  ;;  %v101_v23 = vand.u32 127, %v100_v22  ;;  %v5044_v29 = vld [vmem:[#allocation7] ss:$0 sm:$0xff]  ;;  %s6288_s26 = smov 120  }
  0x3e   :  { %5410 = vmatprep.subr.bf16.mxu1 %v6286_v10  ;;  %v6006_v20 = vld [vmem:[%s7491_s4] sm:$0xff]   ;;  %v208_v21 = vpack.c.bf16 %v207_v18, %v206_v17  ;;  %v6007_v28 = vld [vmem:[%s7491_s4 + $0x8] sm:$0xff]   ;;  %s6289_s29 = smov 96   ;;  %s6290_s0 = smov 72   ;;  %vm347_vm5 = vcmask 64512   ;;  %vm840_vm6 = vcmask 1043456  }
  0x3f   :  { %v5048_v44 = vld [vmem:[%s7492_s5] ss:$0 sm:$0xff]  ;;  %s6291_s9 = smov 88   ;;  %s6292_s24 = smov 104   ;;  %vm1045_vm7 = vcmask 130048   ;;  %vm1047_vm8 = vcmask 195584  }
  0x40   :  { %s6293_s19 = smov 80   ;;  %s6295_s1 = smov 64  }
  0x41   :  { %v98_v1 = vld [vmem:[%s7519_s23] sm:$0xff]  ;;  %v115_v3 = vld [vmem:[%s7520_s27 + $0x8] sm:$0xff]  ;;  %v116_v4 = vld [vmem:[%s7520_s27 + $0x10] sm:$0xff]  ;;  %5411 = vmatpush3.bf16.msra.mxu1 %v6005_v16  ;;  %s6296_s8 = smov 48   ;;  %s6297_s20 = smov 40  }
  0x42   :  { %v114_v2 = vld [vmem:[%s7520_s27] sm:$0xff]  ;;  %103 = vperm.xlu0 %5943, %v98_v1   ;;  %v117_v5 = vld [vmem:[%s7520_s27 + $0x18] sm:$0xff]  ;;  %v99_v6 = vld [vmem:[%s7519_s23 + $0x8] sm:$0xff]  ;;  %5416 = vmatprep.subr.bf16.mxu1 %v6286_v10  ;;  %s6298_s3 = smov 56   ;;  %s7512_s25 = smov 16  }
  0x43   :  { %v5904_v7 = vpack.c.bf16 %v115_v3, %v114_v2  ;;  %v5908_v8 = vpack.c.bf16 %v117_v5, %v116_v4  ;;  %v118_v9 = vld [vmem:[%s7520_s27 + $0x20] sm:$0xff]  ;;  %v119_v11 = vld [vmem:[%s7520_s27 + $0x28] sm:$0xff]  ;;  %v120_v13 = vld [vmem:[%s7520_s27 + $0x30] sm:$0xff]  ;;  %s7510_s23 = smov 24   ;;  %s7524_s22 = smov 24  }
  0x44   :  { %v5912_v12 = vpack.c.bf16 %v119_v11, %v118_v9  ;;  %v121_v14 = vld [vmem:[%s7520_s27 + $0x38] sm:$0xff]  ;;  %5413 = vmatmul.mubr.msk.bf16.vlgmr.msra.gmra.mrb[0].mxu1 %vm232_vm1, %v208_v21  ;;  %v123_v37 = vld [vmem:[%s7521_s21 + $0x8] sm:$0xff]  ;;  %v122_v38 = vld [vmem:[%s7521_s21] sm:$0xff]  ;;  %s6294_s27 = smov 112   ;;  %s7523_s21 = smov 16  }
  0x45   :  { %5905 = vmatprep.subr.bf16.mxu0 %v5904_v7  ;;  %v5916_v19 = vpack.c.bf16 %v121_v14, %v120_v13  ;;  %5417 = vmatpush3.bf16.msra.mxu1 %v6006_v20 }
  0x46   :  { %106 = vperm.xlu0 %5943, %v99_v6   ;;  %5907 = vmatpush3.bf16.msra.mxu0 %v5904_v7 }
  0x47   :  { %5909 = vmatprep.subr.bf16.mxu0 %v5908_v8  ;;  %5418 = vmatprep.subr.bf16.mxu1 %v6286_v10 }
  0x48   :  { %5420 = vmatprep.mubr.msk.bf16.mxu1 %vm6287_vm0, %v6286_v10 }
  0x49   :  { %5419 = vmatpush3.bf16.msra.mxu1 %v6007_v28 }
  0x4a   :  { %5911 = vmatpush3.bf16.msra.mxu0 %v5908_v8  ;;  %5430 = vmatprep.subr.bf16.mxu1 %v6286_v10 }
  0x4b   :  { %5913 = vmatprep.subr.bf16.mxu0 %v5912_v12 }
  0x4e   :  { %5915 = vmatpush3.bf16.msra.mxu0 %v5912_v12 }
  0x4f   :  { %5917 = vmatprep.subr.bf16.mxu0 %v5916_v19 }
  0x52   :  { %5919 = vmatpush3.bf16.msra.mxu0 %v5916_v19 }
  0x53   :  { %5424 = vmatprep.subr.bf16.mxu0 %v6286_v10 }
  0xc1   :  { %v104_v24 = vpop.permute.xlu0 %103 }
  0xc2   :  { %vm108_vm3 = vcmp.eq.s32.totalorder %v104_v24, %v101_v23 }
  0xc3   :  { %v5040_v25 = vsel %vm108_vm3, 1.0, %v6286_v10 }
  0xc4   :  { %5405 = vmatprep.mubr.msk.f32.mxu0 %vm124_vm2, %v5040_v25 }
  0xc5   :  { %v107_v26 = vpop.permute.xlu0 %106 }
  0xc6   :  { %vm109_vm4 = vcmp.eq.s32.totalorder %v107_v26, %v101_v23 }
  0xc7   :  { %v5041_v27 = vsel %vm109_vm4, 1.0, %v6286_v10 }
  0xc8   :  { %5406 = vmatmul.mubr.msk.f32.vlgmr.msra.gmra.mrb[0].mxu0 %vm124_vm2, %v5041_v27 }
  0xc9   :  { %5426 = vmatprep.mubr.msk.bf16.mxu0 %vm6287_vm0, %v6286_v10 }
 0x117   :  { %v270_v30 = vpop.f32.mrb[0].mxu1 }
 0x118   :  { %v271_v31 = vadd.f32 %v5044_v29, %v270_v30  ;;  %v5414_v32 = vpop.f32.mrb[1].mxu1 }
 0x119   :  { %v273_v33 = vpop.f32.mrb[2].mxu1 }
 0x11a   :  { %v274_v34 = vadd.f32 %v5044_v29, %v273_v33  ;;  %v5415_v35 = vpop.f32.mrb[3].mxu1 }
 0x11c   :  { %v6503_v36 = vpack.c.bf16 %v274_v34, %v271_v31 }
 0x19b   :  { %v5407_v39 = vpop.f32.mrb[0].mxu0 }
 0x19c   :  { %v6511_v40 = vadd.f32 %v5407_v39, %v123_v37  ;;  %v197_v41 = vpop.f32.mrb[1].mxu0 }
 0x19d   :  { %v6513_v42 = vadd.f32 %v197_v41, %v122_v38 }
 0x19f   :  { %v277_v43 = vpack.c.bf16 %v6511_v40, %v6513_v42 }
 0x1a1   :  { %5421 = vmatmul.mubr.msk.bf16.vlgmr.msra.gmra.mrb[4].mxu1 %vm232_vm1, %v277_v43 }
 0x1a2   :  { %5432 = vmatprep.mubr.msk.bf16.mxu1 %vm6287_vm0, %v6286_v10 }
 0x274   :  { %v336_v45 = vpop.f32.mrb[4].mxu1 }
 0x275   :  { %v5422_v46 = vpop.f32.mrb[5].mxu1  ;;  %v337_v48 = vadd.f32 %v5048_v44, %v336_v45 }
 0x276   :  { %v339_v47 = vpop.f32.mrb[6].mxu1 }
 0x277   :  { %v340_v49 = vadd.f32 %v5048_v44, %v339_v47  ;;  %v5423_v50 = vpop.f32.mrb[7].mxu1 }
 0x279   :  { %v6523_v51 = vpack.c.bf16 %v340_v49, %v337_v48 }
 0x27b   :  { %394 = vrot.lane.b32.xlu0 %v6523_v51, %s6288_s26  ;;  %345 = vrot.lane.b32.xlu1 %v6523_v51, %s6289_s29  ;;  %v6538_v52 = vrot.slane %v6523_v51, 4 }
 0x27f   :  { %496 = vrot.lane.b32.xlu0 %v6523_v51, %s6290_s0  ;;  %396 = vrot.lane.b32.xlu1 %v6523_v51, %s6291_s9 }
 0x283   :  { %494 = vrot.lane.b32.xlu0 %v6523_v51, %s6292_s24  ;;  %446 = vrot.lane.b32.xlu1 %v6523_v51, %s6293_s19 }
 0x287   :  { %444 = vrot.lane.b32.xlu1 %v6523_v51, %s6294_s27  ;;  %595 = vrot.lane.b32.xlu0 %v6538_v52, %s6291_s9 }
 0x28b   :  { %645 = vrot.lane.b32.xlu0 %v6538_v52, %s6293_s19  ;;  %545 = vrot.lane.b32.xlu1 %v6538_v52, %s6289_s29 }
 0x28f   :  { %643 = vrot.lane.b32.xlu0 %v6538_v52, %s6294_s27  ;;  %593 = vrot.lane.b32.xlu1 %v6538_v52, %s6288_s26 }
 0x293   :  { %695 = vrot.lane.b32.xlu1 %v6538_v52, %s6290_s0 }
 0x297   :  { %693 = vrot.lane.b32.xlu1 %v6538_v52, %s6292_s24 }
 0x29b   :  { %835 = vrot.lane.b32.xlu1 %v6523_v51, %s6295_s1 }
 0x2ed   :  { %v395_v53 = vpop.permute.xlu0 %394  ;;  %v346_v54 = vpop.permute.xlu1 %345 }
 0x2ee   :  { %v352_v55 = vsel %vm347_vm5, %v346_v54, 0 }
 0x2ef   :  { %5425 = vmatpush3.bf16.xpose.msra.mxu0 %v352_v55 }
 0x2f0   :  { %5436 = vmatprep.subr.bf16.mxu0 %v6286_v10 }
 0x2f1   :  { %v497_v56 = vpop.permute.xlu0 %496  ;;  %v397_v57 = vpop.permute.xlu1 %396 }
 0x2f2   :  { %v402_v58 = vsel %vm347_vm5, %v397_v57, 0  ;;  %v502_v63 = vsel %vm347_vm5, %v497_v56, 0 }
 0x2f3   :  { %5431 = vmatpush3.bf16.xpose.msra.mxu1 %v402_v58 }
 0x2f4   :  { %5442 = vmatprep.subr.bf16.mxu1 %v6286_v10 }
 0x2f5   :  { %v447_v59 = vpop.permute.xlu1 %446  ;;  %v495_v61 = vpop.permute.xlu0 %494 }
 0x2f6   :  { %v452_v60 = vsel %vm347_vm5, %v447_v59, 0  ;;  %5427 = vmatmul.mubr.msk.bf16.vlgmr.msra.gmra.mrb[4].mxu0 %vm347_vm5, %v6523_v51 }
 0x2f7   :  { %5437 = vmatpush3.bf16.xpose.msra.mxu0 %v452_v60  ;;  %5438 = vmatprep.mubr.msk.bf16.mxu0 %vm6287_vm0, %v6286_v10 }
 0x2f8   :  { %5448 = vmatprep.subr.bf16.mxu0 %v6286_v10 }
 0x2f9   :  { %v445_v62 = vpop.permute.xlu1 %444  ;;  %v596_v0 = vpop.permute.xlu0 %595 }
 0x2fa   :  { %5433 = vmatmul.mubr.msk.bf16.vlgmr.msra.gmra.mrb[8].mxu1 %vm347_vm5, %v395_v53  ;;  %v601_v4 = vsel %vm347_vm5, %v596_v0, 0 }
 0x2fb   :  { %5443 = vmatpush3.bf16.xpose.msra.mxu1 %v502_v63  ;;  %5444 = vmatprep.mubr.msk.bf16.mxu1 %vm6287_vm0, %v6286_v10 }
 0x2fc   :  { %5454 = vmatprep.subr.bf16.mxu1 %v6286_v10 }
 0x2fd   :  { %v546_v1 = vpop.permute.xlu1 %545  ;;  %v646_v5 = vpop.permute.xlu0 %645 }
 0x2fe   :  { %v551_v2 = vsel %vm347_vm5, %v546_v1, 0  ;;  %5439 = vmatmul.mubr.msk.bf16.vlgmr.msra.gmra.mrb[8].mxu0 %vm347_vm5, %v445_v62  ;;  %v651_v7 = vsel %vm347_vm5, %v646_v5, 0 }
 0x2ff   :  { %5449 = vmatpush3.bf16.xpose.msra.mxu0 %v551_v2  ;;  %5450 = vmatprep.mubr.msk.bf16.mxu0 %vm6287_vm0, %v6286_v10 }
 0x300   :  { %5460 = vmatprep.subr.bf16.mxu0 %v6286_v10 }
 0x301   :  { %v594_v3 = vpop.permute.xlu1 %593  ;;  %v644_v11 = vpop.permute.xlu0 %643 }
 0x302   :  { %5445 = vmatmul.mubr.msk.bf16.vlgmr.msra.gmra.mrb[12].mxu1 %vm347_vm5, %v495_v61 }
 0x303   :  { %5455 = vmatpush3.bf16.xpose.msra.mxu1 %v601_v4  ;;  %5456 = vmatprep.mubr.msk.bf16.mxu1 %vm6287_vm0, %v6286_v10 }
 0x304   :  { %5466 = vmatprep.subr.bf16.mxu1 %v6286_v10 }
 0x305   :  { %v696_v6 = vpop.permute.xlu1 %695 }
 0x306   :  { %5451 = vmatmul.mubr.msk.bf16.vlgmr.msra.gmra.mrb[12].mxu0 %vm347_vm5, %v6538_v52  ;;  %v701_v9 = vsel %vm347_vm5, %v696_v6, 0 }
 0x307   :  { %5461 = vmatpush3.bf16.xpose.msra.mxu0 %v651_v7  ;;  %5462 = vmatprep.mubr.msk.bf16.mxu0 %vm6287_vm0, %v6286_v10 }
 0x308   :  { %5472 = vmatprep.subr.bf16.mxu0 %v6286_v10 }
 0x309   :  { %v694_v8 = vpop.permute.xlu1 %693 }
 0x30a   :  { %5457 = vmatmul.mubr.msk.bf16.vlgmr.msra.gmra.mrb[16].mxu1 %vm347_vm5, %v594_v3 }
 0x30b   :  { %5467 = vmatpush3.bf16.xpose.msra.mxu1 %v701_v9  ;;  %5468 = vmatprep.mubr.msk.bf16.mxu1 %vm6287_vm0, %v6286_v10 }
 0x30c   :  { %5478 = vmatprep.subr.bf16.mxu1 %v6286_v10 }
 0x30d   :  { %v836_v12 = vpop.permute.xlu1 %835 }
 0x30e   :  { %v842_v13 = vsel %vm840_vm6, %v836_v12, 0  ;;  %5463 = vmatmul.mubr.msk.bf16.vlgmr.msra.gmra.mrb[16].mxu0 %vm347_vm5, %v644_v11 }
 0x30f   :  { %5473 = vmatpush3.bf16.msra.mxu0 %v842_v13  ;;  %5474 = vmatprep.mubr.msk.bf16.mxu0 %vm6287_vm0, %v6286_v10 }
 0x310   :  { %5484 = vmatprep.subr.bf16.mxu0 %v6286_v10 }
 0x312   :  { %5469 = vmatmul.mubr.msk.bf16.vlgmr.msra.gmra.mrb[20].mxu1 %vm347_vm5, %v694_v8 }
 0x313   :  { %5480 = vmatprep.mubr.msk.bf16.mxu1 %vm6287_vm0, %v6286_v10 }
 0x3c9   :  { %v388_v14 = vpop.f32.mrb[4].mxu0 }
 0x3ca   :  { %v5428_v15 = vpop.f32.mrb[5].mxu0  ;;  %v743_v16 = vsel %vm347_vm5, %v388_v14, -inf }
 0x3cb   :  { %v391_v17 = vpop.f32.mrb[6].mxu0  ;;  %744 = vmax.xlane.f32.xlu0 %v743_v16 }
 0x3cc   :  { %v5429_v18 = vpop.f32.mrb[7].mxu0 }
 0x3cd   :  { %v438_v19 = vpop.f32.mrb[8].mxu1 }
 0x3ce   :  { %v5434_v20 = vpop.f32.mrb[9].mxu1  ;;  %v746_v21 = vsel %vm347_vm5, %v438_v19, -inf }
 0x3cf   :  { %747 = vmax.xlane.f32.xlu1 %v746_v21  ;;  %v441_v22 = vpop.f32.mrb[10].mxu1 }
 0x3d0   :  { %v5435_v23 = vpop.f32.mrb[11].mxu1 }
 0x3d1   :  { %v488_v24 = vpop.f32.mrb[8].mxu0 }
 0x3d2   :  { %v5440_v25 = vpop.f32.mrb[9].mxu0  ;;  %v749_v26 = vsel %vm347_vm5, %v488_v24, -inf }
 0x3d3   :  { %v491_v27 = vpop.f32.mrb[10].mxu0  ;;  %750 = vmax.xlane.f32.xlu0 %v749_v26 }
 0x3d4   :  { %v5441_v28 = vpop.f32.mrb[11].mxu0 }
 0x3d5   :  { %v538_v29 = vpop.f32.mrb[12].mxu1 }
 0x3d6   :  { %v5446_v30 = vpop.f32.mrb[13].mxu1  ;;  %v752_v31 = vsel %vm347_vm5, %v538_v29, -inf }
 0x3d7   :  { %753 = vmax.xlane.f32.xlu0 %v752_v31  ;;  %v541_v32 = vpop.f32.mrb[14].mxu1 }
 0x3d8   :  { %v5447_v33 = vpop.f32.mrb[15].mxu1 }
 0x3d9   :  { %v6606_v34 = vpop.f32.mrb[12].mxu0 }
 0x3da   :  { %v5452_v35 = vpop.f32.mrb[13].mxu0  ;;  %v755_v37 = vsel %vm347_vm5, %v6606_v34, -inf }
 0x3db   :  { %v590_v38 = vpop.f32.mrb[14].mxu0  ;;  %756 = vmax.xlane.f32.xlu1 %v755_v37 }
 0x3dc   :  { %v5453_v39 = vpop.f32.mrb[15].mxu0 }
 0x3dd   :  { %v6610_v41 = vpop.f32.mrb[16].mxu1 }
 0x3de   :  { %v5458_v43 = vpop.f32.mrb[17].mxu1  ;;  %v758_v44 = vsel %vm347_vm5, %v6610_v41, -inf }
 0x3df   :  { %759 = vmax.xlane.f32.xlu0 %v758_v44  ;;  %v640_v45 = vpop.f32.mrb[18].mxu1 }
 0x3e0   :  { %v5459_v46 = vpop.f32.mrb[19].mxu1 }
 0x3e1   :  { %v687_v47 = vpop.f32.mrb[16].mxu0 }
 0x3e2   :  { %v5464_v48 = vpop.f32.mrb[17].mxu0  ;;  %v761_v49 = vsel %vm347_vm5, %v687_v47, -inf }
 0x3e3   :  { %v690_v50 = vpop.f32.mrb[18].mxu0  ;;  %762 = vmax.xlane.f32.xlu1 %v761_v49 }
 0x3e4   :  { %v5465_v53 = vpop.f32.mrb[19].mxu0 }
 0x3e5   :  { %v737_v54 = vpop.f32.mrb[20].mxu1 }
 0x3e6   :  { %v5470_v55 = vpop.f32.mrb[21].mxu1  ;;  %v764_v56 = vsel %vm347_vm5, %v737_v54, -inf }
 0x3e7   :  { %765 = vmax.xlane.f32.xlu0 %v764_v56  ;;  %v740_v57 = vpop.f32.mrb[22].mxu1 }
 0x3e8   :  { %v5471_v58 = vpop.f32.mrb[23].mxu1 }
 0x3f4   :  { %934 = vrot.lane.b32.xlu1 %v6523_v51, %s6296_s8 }
 0x3f8   :  { %984 = vrot.lane.b32.xlu1 %v6523_v51, %s6297_s20 }
 0x3fd   :  { %886 = vrot.lane.b32.xlu0 %v6523_v51, %s6298_s3 }
 0x458   :  { %v745_v59 = vpop.xlane.xlu0 %744 }
 0x459   :  { %v767_v60 = vsub.f32 %v388_v14, %v745_v59 }
 0x45b   :  { %v775_v61 = vmul.f32 1.442695, %v767_v60 }
 0x45c   :  { %v748_v62 = vpop.xlane.xlu1 %747 }
 0x45d   :  { %6034 = vpow2.f32 %v775_v61  ;;  %v768_v63 = vsub.f32 %v438_v19, %v748_v62 }
 0x45f   :  { %v777_v0 = vmul.f32 1.442695, %v768_v63 }
 0x460   :  { %v751_v1 = vpop.xlane.xlu0 %750 }
 0x461   :  { %6036 = vpow2.f32 %v777_v0  ;;  %v769_v2 = vsub.f32 %v488_v24, %v751_v1 }
 0x463   :  { %v779_v3 = vmul.f32 1.442695, %v769_v2 }
 0x464   :  { %v754_v4 = vpop.xlane.xlu0 %753 }
 0x465   :  { %6038 = vpow2.f32 %v779_v3  ;;  %v770_v5 = vsub.f32 %v538_v29, %v754_v4 }
 0x467   :  { %v6035_v6 = vpop.eup %6034  ;;  %v781_v7 = vmul.f32 1.442695, %v770_v5 }
 0x468   :  { %v791_v8 = vsel %vm347_vm5, %v6035_v6, 0.0  ;;  %v757_v19 = vpop.xlane.xlu1 %756 }
 0x469   :  { %6040 = vpow2.f32 %v781_v7  ;;  %792 = vadd.xlane.f32.xlu1 %v791_v8  ;;  %v771_v20 = vsub.f32 %v6606_v34, %v757_v19 }
 0x46b   :  { %v6037_v51 = vpop.eup %6036  ;;  %v783_v23 = vmul.f32 1.442695, %v771_v20 }
 0x46c   :  { %v794_v9 = vsel %vm347_vm5, %v6037_v51, 0.0  ;;  %v760_v12 = vpop.xlane.xlu0 %759 }
 0x46d   :  { %795 = vadd.xlane.f32.xlu0 %v794_v9  ;;  %v772_v22 = vsub.f32 %v6610_v41, %v760_v12  ;;  %6042 = vpow2.f32 %v783_v23 }
 0x46f   :  { %v6624_v11 = vpop.eup %6038  ;;  %v785_v25 = vmul.f32 1.442695, %v772_v22 }
 0x470   :  { %v797_v13 = vsel %vm347_vm5, %v6624_v11, 0.0  ;;  %v763_v21 = vpop.xlane.xlu1 %762 }
 0x471   :  { %798 = vadd.xlane.f32.xlu1 %v797_v13  ;;  %v773_v24 = vsub.f32 %v687_v47, %v763_v21  ;;  %6044 = vpow2.f32 %v785_v25 }
 0x473   :  { %v6628_v14 = vpop.eup %6040  ;;  %v787_v26 = vmul.f32 1.442695, %v773_v24 }
 0x474   :  { %v766_v15 = vpop.xlane.xlu0 %765  ;;  %v800_v16 = vsel %vm347_vm5, %v6628_v14, 0.0  ;;  %v935_v38 = vpop.permute.xlu1 %934 }
 0x475   :  { %801 = vadd.xlane.f32.xlu0 %v800_v16  ;;  %v774_v27 = vsub.f32 %v737_v54, %v766_v15  ;;  %6046 = vpow2.f32 %v787_v26  ;;  %v940_v53 = vsel %vm840_vm6, %v935_v38, 0  ;;  %v6008_v38 = vld [vmem:[%s7497_s10] sm:$0xff]  }
 0x477   :  { %v789_v28 = vmul.f32 1.442695, %v774_v27  ;;  %v6640_v29 = vpop.eup %6042 }
 0x478   :  { %v887_v17 = vpop.permute.xlu0 %886  ;;  %v803_v31 = vsel %vm347_vm5, %v6640_v29, 0.0  ;;  %v985_v39 = vpop.permute.xlu1 %984 }
 0x479   :  { %v892_v18 = vsel %vm840_vm6, %v887_v17, 0  ;;  %6048 = vpow2.f32 %v789_v28  ;;  %v990_v55 = vsel %vm840_vm6, %v985_v39, 0  ;;  %v6009_v39 = vld [vmem:[%s7497_s10 + $0x8] sm:$0xff]  }
 0x47a   :  { %5479 = vmatpush3.bf16.msra.mxu1 %v892_v18 }
 0x47b   :  { %5490 = vmatprep.subr.bf16.mxu1 %v6286_v10  ;;  %v6642_v30 = vpop.eup %6044 }
 0x47c   :  { %v806_v34 = vsel %vm347_vm5, %v6642_v30, 0.0 }
 0x47f   :  { %v6646_v32 = vpop.eup %6046 }
 0x480   :  { %v809_v33 = vsel %vm347_vm5, %v6646_v32, 0.0 }
 0x482   :  { %1099 = vrot.lane.b32.xlu1 %v6538_v52, %s6298_s3 }
 0x483   :  { %v6652_v35 = vpop.eup %6048 }
 0x484   :  { %v812_v37 = vsel %vm347_vm5, %v6652_v35, 0.0 }
 0x48b   :  { %1049 = vrot.lane.b32.xlu0 %v6538_v52, %s6295_s1 }
 0x4a6   :  { %804 = vadd.xlane.f32.xlu1 %v803_v31 }
 0x4aa   :  { %810 = vadd.xlane.f32.xlu1 %v809_v33  ;;  %807 = vadd.xlane.f32.xlu0 %v806_v34 }
 0x4ae   :  { %813 = vadd.xlane.f32.xlu0 %v812_v37 }
 0x4bb   :  { %1197 = vrot.lane.b32.xlu1 %v6538_v52, %s6297_s20 }
 0x4c4   :  { %1147 = vrot.lane.b32.xlu0 %v6538_v52, %s6296_s8 }
 0x4f6   :  { %v793_v41 = vpop.xlane.xlu1 %792 }
 0x4f7   :  { %6050 = vrcp.f32 %v793_v41 }
 0x4fa   :  { %v796_v43 = vpop.xlane.xlu0 %795 }
 0x4fb   :  { %6052 = vrcp.f32 %v796_v43 }
 0x4fe   :  { %v799_v44 = vpop.xlane.xlu1 %798 }
 0x4ff   :  { %6054 = vrcp.f32 %v799_v44 }
 0x501   :  { %v6051_v46 = vpop.eup %6050 }
 0x502   :  { %v802_v45 = vpop.xlane.xlu0 %801  ;;  %v823_v48 = vmul.f32 %v6051_v46, %v6035_v6  ;;  %v1100_v61 = vpop.permute.xlu1 %1099 }
 0x503   :  { %6056 = vrcp.f32 %v802_v45  ;;  %v1105_v0 = vsel %vm840_vm6, %v1100_v61, 0 }
 0x505   :  { %v6053_v47 = vpop.eup %6052 }
 0x506   :  { %v824_v49 = vmul.f32 %v6053_v47, %v6037_v51  ;;  %v1050_v59 = vpop.permute.xlu0 %1049 }
 0x507   :  { %v1055_v62 = vsel %vm840_vm6, %v1050_v59, 0 }
 0x508   :  { %v831_v50 = vpack.c.bf16 %v824_v49, %v823_v48 }
 0x509   :  { %v6055_v54 = vpop.eup %6054 }
 0x50a   :  { %5475 = vmatmul.mubr.msk.bf16.vlgmr.msra.gmra.mrb[20].mxu0 %vm347_vm5, %v831_v50  ;;  %v885_v52 = vrot.slane %v831_v50, 4  ;;  %v825_v57 = vmul.f32 %v6055_v54, %v6624_v11 }
 0x50b   :  { %5485 = vmatpush3.bf16.msra.mxu0 %v940_v53  ;;  %5486 = vmatprep.mubr.msk.bf16.mxu0 %vm6287_vm0, %v6286_v10 }
 0x50c   :  { %5481 = vmatmul.mubr.msk.bf16.vlgmr.msra.gmra.mrb[24].mxu1 %vm347_vm5, %v885_v52  ;;  %5496 = vmatprep.subr.bf16.mxu0 %v6286_v10 }
 0x50d   :  { %v6057_v56 = vpop.eup %6056  ;;  %5491 = vmatpush3.bf16.msra.mxu1 %v990_v55  ;;  %5492 = vmatprep.mubr.msk.bf16.mxu1 %vm6287_vm0, %v6286_v10 }
 0x50e   :  { %v826_v58 = vmul.f32 %v6057_v56, %v6628_v14  ;;  %5502 = vmatprep.subr.bf16.mxu1 %v6286_v10 }
 0x510   :  { %v832_v60 = vpack.c.bf16 %v826_v58, %v825_v57 }
 0x512   :  { %5487 = vmatmul.mubr.msk.bf16.vlgmr.msra.gmra.mrb[24].mxu0 %vm347_vm5, %v832_v60  ;;  %v983_v63 = vrot.slane %v832_v60, 4 }
 0x513   :  { %5497 = vmatpush3.bf16.msra.mxu0 %v1055_v62  ;;  %5498 = vmatprep.mubr.msk.bf16.mxu0 %vm6287_vm0, %v6286_v10 }
 0x514   :  { %5493 = vmatmul.mubr.msk.bf16.vlgmr.msra.gmra.mrb[28].mxu1 %vm347_vm5, %v983_v63  ;;  %5508 = vmatprep.subr.bf16.mxu0 %v6286_v10 }
 0x515   :  { %5503 = vmatpush3.bf16.msra.mxu1 %v1105_v0  ;;  %5504 = vmatprep.mubr.msk.bf16.mxu1 %vm6287_vm0, %v6286_v10 }
 0x516   :  { %5514 = vmatprep.subr.bf16.mxu1 %v6286_v10 }
 0x533   :  { %v805_v1 = vpop.xlane.xlu1 %804 }
 0x534   :  { %6058 = vrcp.f32 %v805_v1 }
 0x537   :  { %v808_v2 = vpop.xlane.xlu0 %807  ;;  %v811_v3 = vpop.xlane.xlu1 %810 }
 0x538   :  { %6060 = vrcp.f32 %v808_v2 }
 0x53b   :  { %v814_v4 = vpop.xlane.xlu0 %813  ;;  %v1198_v13 = vpop.permute.xlu1 %1197 }
 0x53c   :  { %6062 = vrcp.f32 %v814_v4  ;;  %v1203_v18 = vsel %vm840_vm6, %v1198_v13, 0 }
 0x53d   :  { %6064 = vrcp.f32 %v811_v3 }
 0x53e   :  { %v6059_v5 = vpop.eup %6058 }
 0x53f   :  { %v827_v7 = vmul.f32 %v6059_v5, %v6640_v29  ;;  %v1148_v51 = vpop.permute.xlu0 %1147 }
 0x540   :  { %v1153_v15 = vsel %vm840_vm6, %v1148_v51, 0 }
 0x542   :  { %v6061_v6 = vpop.eup %6060 }
 0x543   :  { %v828_v8 = vmul.f32 %v6061_v6, %v6642_v30 }
 0x545   :  { %v833_v11 = vpack.c.bf16 %v828_v8, %v827_v7 }
 0x546   :  { %v6063_v9 = vpop.eup %6062 }
 0x547   :  { %v6065_v12 = vpop.eup %6064  ;;  %v830_v14 = vmul.f32 %v6063_v9, %v6652_v35  ;;  %5499 = vmatmul.mubr.msk.bf16.vlgmr.msra.gmra.mrb[28].mxu0 %vm347_vm5, %v833_v11  ;;  %v1098_v16 = vrot.slane %v833_v11, 4 }
 0x548   :  { %5509 = vmatpush3.bf16.msra.mxu0 %v1153_v15  ;;  %5510 = vmatprep.mubr.msk.bf16.mxu0 %vm6287_vm0, %v6286_v10  ;;  %v829_v17 = vmul.f32 %v6065_v12, %v6646_v32  ;;  %v5068_v15 = vld [vmem:[%s7498_s11] ss:$0 sm:$0xff] }
 0x549   :  { %5505 = vmatmul.mubr.msk.bf16.vlgmr.msra.gmra.mrb[32].mxu1 %vm347_vm5, %v1098_v16  ;;  %5520 = vmatprep.subr.bf16.mxu0 %v6286_v10 }
 0x54a   :  { %5515 = vmatpush3.bf16.msra.mxu1 %v1203_v18  ;;  %5516 = vmatprep.mubr.msk.bf16.mxu1 %vm6287_vm0, %v6286_v10  ;;  %v834_v19 = vpack.c.bf16 %v830_v14, %v829_v17  ;;  %v1441_v14 = vsel %vm347_vm5, %v6503_v36, 0 }
 0x54b   :  { %5528 = vmatprep.subr.bf16.mxu1 %v6286_v10 }
 0x54c   :  { %v1196_v20 = vrot.slane %v834_v19, 4 }
 0x54f   :  { %5511 = vmatmul.mubr.msk.bf16.vlgmr.msra.gmra.mrb[32].mxu0 %vm347_vm5, %v834_v19 }
 0x550   :  { %5524 = vmatprep.mubr.msk.bf16.mxu0 %vm6287_vm0, %v6286_v10  ;;  %5521 = vmatpush3.bf16.msra.mxu0 %v6008_v38 }
 0x551   :  { %5517 = vmatmul.mubr.msk.bf16.vlgmr.msra.gmra.mrb[36].mxu1 %vm347_vm5, %v1196_v20  ;;  %5522 = vmatprep.subr.bf16.mxu0 %v6286_v10 }
 0x552   :  { %5532 = vmatprep.mubr.msk.bf16.mxu1 %vm6287_vm0, %v6286_v10 }
 0x554   :  { %5523 = vmatpush3.bf16.msra.mxu0 %v6009_v39 }
 0x555   :  { %5536 = vmatprep.subr.bf16.mxu0 %v6286_v10 }
 0x5dd   :  { %v878_v21 = vpop.f32.mrb[20].mxu0 }
 0x5de   :  { %v5476_v22 = vpop.f32.mrb[21].mxu0 }
 0x5df   :  { %v881_v23 = vpop.f32.mrb[22].mxu0  ;;  %v928_v24 = vpop.f32.mrb[24].mxu1 }
 0x5e0   :  { %v5477_v25 = vpop.f32.mrb[23].mxu0  ;;  %v5482_v26 = vpop.f32.mrb[25].mxu1 }
 0x5e1   :  { %v931_v27 = vpop.f32.mrb[26].mxu1 }
 0x5e2   :  { %v5483_v28 = vpop.f32.mrb[27].mxu1 }
 0x5e5   :  { %v976_v29 = vpop.f32.mrb[24].mxu0 }
 0x5e6   :  { %v5488_v30 = vpop.f32.mrb[25].mxu0 }
 0x5e7   :  { %v979_v31 = vpop.f32.mrb[26].mxu0  ;;  %v1026_v32 = vpop.f32.mrb[28].mxu1 }
 0x5e8   :  { %v5489_v33 = vpop.f32.mrb[27].mxu0  ;;  %v5494_v34 = vpop.f32.mrb[29].mxu1 }
 0x5e9   :  { %v1029_v35 = vpop.f32.mrb[30].mxu1 }
 0x5ea   :  { %v5495_v37 = vpop.f32.mrb[31].mxu1  ;;  %v6011_v35 = vld [vmem:[%s7493_s6 + $0x8] sm:$0xff]  }
 0x61a   :  { %v1091_v41 = vpop.f32.mrb[28].mxu0 }
 0x61b   :  { %v5500_v43 = vpop.f32.mrb[29].mxu0 }
 0x61c   :  { %v1094_v44 = vpop.f32.mrb[30].mxu0  ;;  %v1141_v45 = vpop.f32.mrb[32].mxu1 }
 0x61d   :  { %v5944_v46 = vpack.i.bf16 %v1141_v45, %v928_v24  ;;  %v5501_v47 = vpop.f32.mrb[31].mxu0  ;;  %v5506_v48 = vpop.f32.mrb[33].mxu1 }
 0x61e   :  { %v1144_v49 = vpop.f32.mrb[34].mxu1 }
 0x61f   :  { %5945 = vrot.lane.b32.xlu0 %v5944_v46, %s7514_s28  ;;  %v5507_v50 = vpop.f32.mrb[35].mxu1  ;;  %v5072_v46 = vld [vmem:[%s7503_s16] ss:$0 sm:$0xff] }
 0x622   :  { %v1189_v53 = vpop.f32.mrb[32].mxu0 }
 0x623   :  { %v5949_v52 = vpack.i.bf16 %v1189_v53, %v976_v29  ;;  %v5512_v54 = vpop.f32.mrb[33].mxu0  ;;  %v5073_v53 = vld [vmem:[%s7504_s17] ss:$0 sm:$0xff] }
 0x624   :  { %v1192_v55 = vpop.f32.mrb[34].mxu0  ;;  %v1239_v56 = vpop.f32.mrb[36].mxu1 }
 0x625   :  { %v5954_v57 = vpack.i.bf16 %v1239_v56, %v1026_v32  ;;  %5950 = vrot.lane.b32.xlu1 %v5949_v52, %s7512_s25  ;;  %v5513_v58 = vpop.f32.mrb[35].mxu0  ;;  %v5518_v59 = vpop.f32.mrb[37].mxu1 }
 0x626   :  { %v1242_v60 = vpop.f32.mrb[38].mxu1  ;;  %v5074_v59 = vld [vmem:[#allocation5] ss:$0 sm:$0xff] }
 0x627   :  { %5955 = vrot.lane.b32.xlu0 %v5954_v57, %s7510_s23  ;;  %v5519_v61 = vpop.f32.mrb[39].mxu1 }
 0x691   :  { %v5946_v62 = vpop.permute.xlu0 %5945 }
 0x692   :  { %v5948_v63 = vunpack.i.h.bf16 %v5946_v62  ;;  %v5947_v0 = vunpack.i.l.bf16 %v5946_v62 }
 0x694   :  { %v1257_v4 = vsel %vm347_vm5, %v1091_v41, %v5948_v63  ;;  %v1044_v5 = vsel %vm347_vm5, %v878_v21, %v5947_v0 }
 0x697   :  { %v5951_v1 = vpop.permute.xlu1 %5950 }
 0x698   :  { %v5953_v2 = vunpack.i.h.bf16 %v5951_v1  ;;  %v5952_v3 = vunpack.i.l.bf16 %v5951_v1 }
 0x699   :  { %v5956_v6 = vpop.permute.xlu0 %5955 }
 0x69a   :  { %v1046_v7 = vsel %vm1045_vm7, %v1044_v5, %v5952_v3  ;;  %v1258_v8 = vsel %vm1045_vm7, %v1257_v4, %v5953_v2  ;;  %v5958_v51 = vunpack.i.h.bf16 %v5956_v6  ;;  %v5957_v9 = vunpack.i.l.bf16 %v5956_v6 }
 0x69b   :  { %v6775_v6 = vrot.slane %v6503_v36, 4 }
 0x69c   :  { %v1259_v11 = vsel %vm1047_vm8, %v1258_v8, %v5958_v51  ;;  %v1048_v12 = vsel %vm1047_vm8, %v1046_v7, %v5957_v9 }
 0x69d   :  { %v1260_v13 = vpack.c.bf16 %v1259_v11, %v1048_v12 }
 0x69f   :  { %5525 = vmatmul.mubr.msk.bf16.vlgmr.msra.gmra.mrb[36].mxu0 %vm232_vm1, %v1260_v13  ;;  %v1641_v13 = vsel %vm347_vm5, %v6775_v6, 0 }
 0x6a0   :  { %5537 = vmatpush3.bf16.xpose.msra.mxu0 %v1441_v14  ;;  %5538 = vmatprep.mubr.msk.bf16.mxu0 %vm6287_vm0, %v6286_v10 }
 0x6a1   :  { %5548 = vmatprep.subr.bf16.mxu0 %v6286_v10 }
 0x772   :  { %v1319_v16 = vpop.f32.mrb[36].mxu0 }
 0x773   :  { %v1320_v17 = vadd.f32 %v5068_v15, %v1319_v16  ;;  %v5526_v18 = vpop.f32.mrb[37].mxu0 }
 0x774   :  { %v1322_v19 = vpop.f32.mrb[38].mxu0 }
 0x775   :  { %v1323_v20 = vadd.f32 %v5068_v15, %v1322_v19  ;;  %v5527_v21 = vpop.f32.mrb[39].mxu0  ;;  %v1326_v22 = vadd.f32 %v1320_v17, %v6513_v42 }
 0x777   :  { %v1330_v23 = vsel %vm232_vm1, %v1326_v22, 0.0  ;;  %v1327_v24 = vadd.f32 %v1323_v20, %v6511_v40  ;;  %v6010_v40 = vld [vmem:[%s7493_s6] sm:$0xff]  }
 0x778   :  { %1331 = vadd.xlane.f32.xlu1 %v1330_v23  ;;  %5529 = vmatpush3.bf16.msra.mxu1 %v6010_v40 }
 0x779   :  { %v1333_v25 = vsel %vm232_vm1, %v1327_v24, 0.0  ;;  %5530 = vmatprep.subr.bf16.mxu1 %v6286_v10 }
 0x77a   :  { %1334 = vadd.xlane.f32.xlu0 %v1333_v25 }
 0x77c   :  { %5531 = vmatpush3.bf16.msra.mxu1 %v6011_v35 }
 0x77d   :  { %5542 = vmatprep.subr.bf16.mxu1 %v6286_v10 }
 0x805   :  { %v1332_v26 = vpop.xlane.xlu1 %1331 }
 0x806   :  { %v1337_v27 = vmul.f32 0.03125, %v1332_v26 }
 0x807   :  { %v1335_v28 = vpop.xlane.xlu0 %1334 }
 0x808   :  { %v1339_v29 = vsub.f32 %v1326_v22, %v1337_v27  ;;  %v1338_v30 = vmul.f32 0.03125, %v1335_v28 }
 0x80a   :  { %v1340_v31 = vsub.f32 %v1327_v24, %v1338_v30  ;;  %v1341_v32 = vmul.f32 %v1339_v29, %v1339_v29 }
 0x80c   :  { %v1343_v33 = vsel %vm232_vm1, %v1341_v32, 0.0  ;;  %v1342_v34 = vmul.f32 %v1340_v31, %v1340_v31 }
 0x80d   :  { %1344 = vadd.xlane.f32.xlu0 %v1343_v33 }
 0x80e   :  { %v1346_v42 = vsel %vm232_vm1, %v1342_v34, 0.0 }
 0x80f   :  { %1347 = vadd.xlane.f32.xlu1 %v1346_v42 }
 0x820   :  { %1537 = vrot.lane.b32.xlu1 %v6503_v36, %s6294_s27 }
 0x823   :  { %1487 = vrot.lane.b32.xlu0 %v6503_v36, %s6288_s26 }
 0x827   :  { %1587 = vrot.lane.b32.xlu0 %v6503_v36, %s6292_s24 }
 0x89a   :  { %v1345_v37 = vpop.xlane.xlu0 %1344 }
 0x89b   :  { %v1349_v38 = vmul.f32 0.03125, %v1345_v37 }
 0x89c   :  { %v1348_v39 = vpop.xlane.xlu1 %1347 }
 0x89d   :  { %v1351_v41 = vadd.f32 1e-06, %v1349_v38  ;;  %v1350_v43 = vmul.f32 0.03125, %v1348_v39 }
 0x89e   :  { %v1488_v56 = vpop.permute.xlu0 %1487 }
 0x89f   :  { %6066 = vrsqrt.f32 %v1351_v41  ;;  %v1352_v44 = vadd.f32 1e-06, %v1350_v43  ;;  %v1493_v58 = vsel %vm347_vm5, %v1488_v56, 0 }
 0x8a0   :  { %v1538_v2 = vpop.permute.xlu1 %1537 }
 0x8a1   :  { %6068 = vrsqrt.f32 %v1352_v44  ;;  %v1543_v4 = vsel %vm347_vm5, %v1538_v2, 0 }
 0x8a2   :  { %v1588_v7 = vpop.permute.xlu0 %1587 }
 0x8a3   :  { %v1593_v9 = vsel %vm347_vm5, %v1588_v7, 0 }
 0x8a9   :  { %v6067_v45 = vpop.eup %6066 }
 0x8aa   :  { %v1355_v47 = vmul.f32 %v6067_v45, %v1339_v29 }
 0x8ab   :  { %v6069_v48 = vpop.eup %6068 }
 0x8ac   :  { %v1361_v49 = vmul.f32 %v5072_v46, %v1355_v47  ;;  %v1356_v50 = vmul.f32 %v6069_v48, %v1340_v31 }
 0x8ae   :  { %v1362_v52 = vmul.f32 %v5072_v46, %v1356_v50  ;;  %v6754_v54 = vadd.f32 %v5073_v53, %v1361_v49 }
 0x8b0   :  { %v6756_v55 = vadd.f32 %v5073_v53, %v1362_v52 }
 0x8b2   :  { %v1369_v57 = vpack.c.bf16 %v6756_v55, %v6754_v54 }
 0x8b4   :  { %5533 = vmatmul.mubr.msk.bf16.vlgmr.msra.gmra.mrb[40].mxu1 %vm232_vm1, %v1369_v57 }
 0x8b5   :  { %5543 = vmatpush3.bf16.xpose.msra.mxu1 %v1493_v58  ;;  %5544 = vmatprep.mubr.msk.bf16.mxu1 %vm6287_vm0, %v6286_v10 }
 0x8b6   :  { %5554 = vmatprep.subr.bf16.mxu1 %v6286_v10 }
 0x987   :  { %v1428_v60 = vpop.f32.mrb[40].mxu1 }
 0x988   :  { %v5534_v61 = vpop.f32.mrb[41].mxu1  ;;  %v1429_v63 = vadd.f32 %v5074_v59, %v1428_v60 }
 0x989   :  { %v1431_v62 = vpop.f32.mrb[42].mxu1 }
 0x98a   :  { %v1432_v0 = vadd.f32 %v5074_v59, %v1431_v62  ;;  %v5535_v1 = vpop.f32.mrb[43].mxu1 }
 0x98c   :  { %v1435_v3 = vpack.c.bf16 %v1432_v0, %v1429_v63 }
 0x98e   :  { %1585 = vrot.lane.b32.xlu0 %v1435_v3, %s6292_s24  ;;  %1484 = vrot.lane.b32.xlu1 %v1435_v3, %s6288_s26  ;;  %v1635_v5 = vrot.slane %v1435_v3, 4 }
 0x98f   :  { %5539 = vmatmul.mubr.msk.bf16.vlgmr.msra.gmra.mrb[40].mxu0 %vm347_vm5, %v1435_v3 }
 0x990   :  { %5549 = vmatpush3.bf16.xpose.msra.mxu0 %v1543_v4  ;;  %5550 = vmatprep.mubr.msk.bf16.mxu0 %vm6287_vm0, %v6286_v10 }
 0x991   :  { %5560 = vmatprep.subr.bf16.mxu0 %v6286_v10 }
 0x992   :  { %1535 = vrot.lane.b32.xlu1 %v1435_v3, %s6294_s27  ;;  %1683 = vrot.lane.b32.xlu0 %v1635_v5, %s6288_s26 }
 0x996   :  { %1685 = vrot.lane.b32.xlu1 %v6775_v6, %s6288_s26  ;;  %1785 = vrot.lane.b32.xlu0 %v6775_v6, %s6292_s24 }
 0x99a   :  { %1735 = vrot.lane.b32.xlu1 %v6775_v6, %s6294_s27  ;;  %1783 = vrot.lane.b32.xlu0 %v1635_v5, %s6292_s24 }
 0x99e   :  { %1733 = vrot.lane.b32.xlu1 %v1635_v5, %s6294_s27  ;;  %1925 = vrot.lane.b32.xlu0 %v6503_v36, %s6289_s29 }
 0x9a2   :  { %1975 = vrot.lane.b32.xlu1 %v6503_v36, %s6291_s9 }
 0xa00   :  { %v1586_v8 = vpop.permute.xlu0 %1585  ;;  %v1485_v51 = vpop.permute.xlu1 %1484 }
 0xa01   :  { %5545 = vmatmul.mubr.msk.bf16.vlgmr.msra.gmra.mrb[44].mxu1 %vm347_vm5, %v1485_v51 }
 0xa02   :  { %5555 = vmatpush3.bf16.xpose.msra.mxu1 %v1593_v9  ;;  %5556 = vmatprep.mubr.msk.bf16.mxu1 %vm6287_vm0, %v6286_v10 }
 0xa03   :  { %5566 = vmatprep.subr.bf16.mxu1 %v6286_v10 }
 0xa04   :  { %v1536_v11 = vpop.permute.xlu1 %1535  ;;  %v1684_v12 = vpop.permute.xlu0 %1683 }
 0xa05   :  { %5551 = vmatmul.mubr.msk.bf16.vlgmr.msra.gmra.mrb[44].mxu0 %vm347_vm5, %v1536_v11 }
 0xa06   :  { %5561 = vmatpush3.bf16.xpose.msra.mxu0 %v1641_v13  ;;  %5562 = vmatprep.mubr.msk.bf16.mxu0 %vm6287_vm0, %v6286_v10 }
 0xa07   :  { %5572 = vmatprep.subr.bf16.mxu0 %v6286_v10 }
 0xa08   :  { %v1686_v14 = vpop.permute.xlu1 %1685  ;;  %v1786_v15 = vpop.permute.xlu0 %1785 }
 0xa09   :  { %v1691_v16 = vsel %vm347_vm5, %v1686_v14, 0  ;;  %5557 = vmatmul.mubr.msk.bf16.vlgmr.msra.gmra.mrb[48].mxu1 %vm347_vm5, %v1586_v8  ;;  %v1791_v21 = vsel %vm347_vm5, %v1786_v15, 0 }
 0xa0a   :  { %5567 = vmatpush3.bf16.xpose.msra.mxu1 %v1691_v16  ;;  %5568 = vmatprep.mubr.msk.bf16.mxu1 %vm6287_vm0, %v6286_v10 }
 0xa0b   :  { %5578 = vmatprep.subr.bf16.mxu1 %v6286_v10 }
 0xa0c   :  { %v1736_v17 = vpop.permute.xlu1 %1735  ;;  %v1784_v18 = vpop.permute.xlu0 %1783 }
 0xa0d   :  { %v1741_v19 = vsel %vm347_vm5, %v1736_v17, 0  ;;  %5563 = vmatmul.mubr.msk.bf16.vlgmr.msra.gmra.mrb[48].mxu0 %vm347_vm5, %v1635_v5 }
 0xa0e   :  { %5573 = vmatpush3.bf16.xpose.msra.mxu0 %v1741_v19  ;;  %5574 = vmatprep.mubr.msk.bf16.mxu0 %vm6287_vm0, %v6286_v10 }
 0xa0f   :  { %5584 = vmatprep.subr.bf16.mxu0 %v6286_v10 }
 0xa10   :  { %v1734_v20 = vpop.permute.xlu1 %1733  ;;  %v1926_v22 = vpop.permute.xlu0 %1925 }
 0xa11   :  { %5569 = vmatmul.mubr.msk.bf16.vlgmr.msra.gmra.mrb[52].mxu1 %vm347_vm5, %v1684_v12  ;;  %v1931_v23 = vsel %vm840_vm6, %v1926_v22, 0 }
 0xa12   :  { %5579 = vmatpush3.bf16.xpose.msra.mxu1 %v1791_v21  ;;  %5580 = vmatprep.mubr.msk.bf16.mxu1 %vm6287_vm0, %v6286_v10 }
 0xa13   :  { %5590 = vmatprep.subr.bf16.mxu1 %v6286_v10 }
 0xa14   :  { %v1976_v24 = vpop.permute.xlu1 %1975 }
 0xa15   :  { %5575 = vmatmul.mubr.msk.bf16.vlgmr.msra.gmra.mrb[52].mxu0 %vm347_vm5, %v1734_v20  ;;  %v1981_v25 = vsel %vm840_vm6, %v1976_v24, 0 }
 0xa16   :  { %5585 = vmatpush3.bf16.msra.mxu0 %v1931_v23  ;;  %5586 = vmatprep.mubr.msk.bf16.mxu0 %vm6287_vm0, %v6286_v10 }
 0xa17   :  { %5596 = vmatprep.subr.bf16.mxu0 %v6286_v10 }
 0xa19   :  { %5581 = vmatmul.mubr.msk.bf16.vlgmr.msra.gmra.mrb[56].mxu1 %vm347_vm5, %v1784_v18 }
 0xa1a   :  { %5591 = vmatpush3.bf16.msra.mxu1 %v1981_v25  ;;  %5592 = vmatprep.mubr.msk.bf16.mxu1 %vm6287_vm0, %v6286_v10 }
 0xa1b   :  { %5602 = vmatprep.subr.bf16.mxu1 %v6286_v10 }
 0xa62   :  { %v1477_v26 = vpop.f32.mrb[40].mxu0 }
 0xa63   :  { %v5540_v27 = vpop.f32.mrb[41].mxu0  ;;  %v1833_v28 = vsel %vm347_vm5, %v1477_v26, -inf }
 0xa64   :  { %1834 = vmax.xlane.f32.xlu1 %v1833_v28  ;;  %v1480_v29 = vpop.f32.mrb[42].mxu0 }
 0xa65   :  { %v5541_v30 = vpop.f32.mrb[43].mxu0 }
 0xad4   :  { %v1529_v31 = vpop.f32.mrb[44].mxu1 }
 0xad5   :  { %v5546_v32 = vpop.f32.mrb[45].mxu1  ;;  %v1836_v33 = vsel %vm347_vm5, %v1529_v31, -inf }
 0xad6   :  { %1837 = vmax.xlane.f32.xlu0 %v1836_v33  ;;  %v1532_v34 = vpop.f32.mrb[46].mxu1 }
 0xad7   :  { %v5547_v42 = vpop.f32.mrb[47].mxu1 }
 0xad8   :  { %v1579_v40 = vpop.f32.mrb[44].mxu0 }
 0xad9   :  { %v5552_v35 = vpop.f32.mrb[45].mxu0  ;;  %v1839_v37 = vsel %vm347_vm5, %v1579_v40, -inf }
 0xada   :  { %v1582_v38 = vpop.f32.mrb[46].mxu0  ;;  %1840 = vmax.xlane.f32.xlu0 %v1839_v37 }
 0xadb   :  { %v5553_v39 = vpop.f32.mrb[47].mxu0 }
 0xadc   :  { %v1629_v41 = vpop.f32.mrb[48].mxu1 }
 0xadd   :  { %v5558_v43 = vpop.f32.mrb[49].mxu1  ;;  %v1842_v44 = vsel %vm347_vm5, %v1629_v41, -inf }
 0xade   :  { %1843 = vmax.xlane.f32.xlu1 %v1842_v44  ;;  %v1632_v45 = vpop.f32.mrb[50].mxu1 }
 0xadf   :  { %v5559_v46 = vpop.f32.mrb[51].mxu1 }
 0xae0   :  { %v1677_v47 = vpop.f32.mrb[48].mxu0 }
 0xae1   :  { %v5564_v48 = vpop.f32.mrb[49].mxu0  ;;  %v1845_v49 = vsel %vm347_vm5, %v1677_v47, -inf }
 0xae2   :  { %v1680_v50 = vpop.f32.mrb[50].mxu0  ;;  %1846 = vmax.xlane.f32.xlu0 %v1845_v49 }
 0xae3   :  { %v5565_v53 = vpop.f32.mrb[51].mxu0 }
 0xae4   :  { %v1727_v52 = vpop.f32.mrb[52].mxu1 }
 0xae5   :  { %v5570_v56 = vpop.f32.mrb[53].mxu1  ;;  %v1848_v57 = vsel %vm347_vm5, %v1727_v52, -inf }
 0xae6   :  { %1849 = vmax.xlane.f32.xlu1 %v1848_v57  ;;  %v1730_v58 = vpop.f32.mrb[54].mxu1 }
 0xae7   :  { %v5571_v59 = vpop.f32.mrb[55].mxu1 }
 0xae8   :  { %v1777_v60 = vpop.f32.mrb[52].mxu0 }
 0xae9   :  { %v5576_v61 = vpop.f32.mrb[53].mxu0  ;;  %v1851_v62 = vsel %vm347_vm5, %v1777_v60, -inf }
 0xaea   :  { %v1780_v63 = vpop.f32.mrb[54].mxu0  ;;  %1852 = vmax.xlane.f32.xlu0 %v1851_v62 }
 0xaeb   :  { %v5577_v0 = vpop.f32.mrb[55].mxu0 }
 0xaec   :  { %v1827_v1 = vpop.f32.mrb[56].mxu1 }
 0xaed   :  { %v5582_v2 = vpop.f32.mrb[57].mxu1  ;;  %v1854_v3 = vsel %vm347_vm5, %v1827_v1, -inf }
 0xaee   :  { %1855 = vmax.xlane.f32.xlu1 %v1854_v3  ;;  %v1830_v4 = vpop.f32.mrb[58].mxu1 }
 0xaef   :  { %v5583_v5 = vpop.f32.mrb[59].mxu1 }
 0xaf1   :  { %v1835_v7 = vpop.xlane.xlu1 %1834 }
 0xaf2   :  { %v1857_v8 = vsub.f32 %v1477_v26, %v1835_v7 }
 0xaf4   :  { %v1865_v51 = vmul.f32 1.442695, %v1857_v8 }
 0xaf6   :  { %6070 = vpow2.f32 %v1865_v51 }
 0xaff   :  { %2023 = vrot.lane.b32.xlu1 %v6503_v36, %s6293_s19 }
 0xb00   :  { %2073 = vrot.lane.b32.xlu0 %v6503_v36, %s6290_s0  ;;  %v6837_v9 = vpop.eup %6070 }
 0xb01   :  { %v1881_v11 = vsel %vm347_vm5, %v6837_v9, 0.0 }
 0xb1f   :  { %1882 = vadd.xlane.f32.xlu0 %v1881_v11 }
 0xb63   :  { %v1838_v12 = vpop.xlane.xlu0 %1837 }
 0xb64   :  { %v1858_v13 = vsub.f32 %v1529_v31, %v1838_v12 }
 0xb66   :  { %v1867_v14 = vmul.f32 1.442695, %v1858_v13 }
 0xb67   :  { %v1841_v15 = vpop.xlane.xlu0 %1840 }
 0xb68   :  { %6072 = vpow2.f32 %v1867_v14  ;;  %v1859_v16 = vsub.f32 %v1579_v40, %v1841_v15 }
 0xb6a   :  { %v1869_v17 = vmul.f32 1.442695, %v1859_v16 }
 0xb6b   :  { %v1844_v22 = vpop.xlane.xlu1 %1843 }
 0xb6c   :  { %6074 = vpow2.f32 %v1869_v17  ;;  %v1860_v23 = vsub.f32 %v1629_v41, %v1844_v22 }
 0xb6e   :  { %v1871_v27 = vmul.f32 1.442695, %v1860_v23 }
 0xb6f   :  { %v1847_v24 = vpop.xlane.xlu0 %1846 }
 0xb70   :  { %v1861_v26 = vsub.f32 %v1677_v47, %v1847_v24  ;;  %6076 = vpow2.f32 %v1871_v27 }
 0xb72   :  { %v6073_v18 = vpop.eup %6072  ;;  %v1873_v31 = vmul.f32 1.442695, %v1861_v26 }
 0xb73   :  { %v1884_v19 = vsel %vm347_vm5, %v6073_v18, 0.0  ;;  %v1850_v25 = vpop.xlane.xlu1 %1849 }
 0xb74   :  { %1885 = vadd.xlane.f32.xlu1 %v1884_v19  ;;  %v1862_v28 = vsub.f32 %v1727_v52, %v1850_v25  ;;  %6078 = vpow2.f32 %v1873_v31 }
 0xb76   :  { %v6842_v20 = vpop.eup %6074  ;;  %v1875_v33 = vmul.f32 1.442695, %v1862_v28 }
 0xb77   :  { %v1887_v21 = vsel %vm347_vm5, %v6842_v20, 0.0  ;;  %v1853_v29 = vpop.xlane.xlu0 %1852 }
 0xb78   :  { %1888 = vadd.xlane.f32.xlu0 %v1887_v21  ;;  %v1863_v32 = vsub.f32 %v1777_v60, %v1853_v29  ;;  %6080 = vpow2.f32 %v1875_v33 }
 0xb7a   :  { %v1877_v42 = vmul.f32 1.442695, %v1863_v32  ;;  %v6077_v35 = vpop.eup %6076 }
 0xb7b   :  { %v1856_v30 = vpop.xlane.xlu1 %1855  ;;  %v1890_v38 = vsel %vm347_vm5, %v6077_v35, 0.0  ;;  %v2074_v48 = vpop.permute.xlu0 %2073 }
 0xb7c   :  { %v1864_v34 = vsub.f32 %v1827_v1, %v1856_v30  ;;  %6082 = vpow2.f32 %v1877_v42  ;;  %v2079_v62 = vsel %vm840_vm6, %v2074_v48, 0 }
 0xb7e   :  { %v1879_v40 = vmul.f32 1.442695, %v1864_v34  ;;  %v6079_v37 = vpop.eup %6078 }
 0xb7f   :  { %v1893_v43 = vsel %vm347_vm5, %v6079_v37, 0.0  ;;  %v2024_v49 = vpop.permute.xlu1 %2023 }
 0xb80   :  { %6084 = vpow2.f32 %v1879_v40  ;;  %v2029_v60 = vsel %vm840_vm6, %v2024_v49, 0  ;;  %v6012_v49 = vld [vmem:[%s7497_s10 + $0x10] sm:$0xff]  }
 0xb82   :  { %v6081_v39 = vpop.eup %6080 }
 0xb83   :  { %v1896_v44 = vsel %vm347_vm5, %v6081_v39, 0.0 }
 0xb85   :  { %2136 = vrot.lane.b32.xlu1 %v6775_v6, %s6289_s29 }
 0xb86   :  { %v6851_v41 = vpop.eup %6082 }
 0xb87   :  { %v1899_v46 = vsel %vm347_vm5, %v6851_v41, 0.0 }
 0xb8a   :  { %v6855_v45 = vpop.eup %6084 }
 0xb8b   :  { %v1902_v47 = vsel %vm347_vm5, %v6855_v45, 0.0 }
 0xb8e   :  { %2186 = vrot.lane.b32.xlu0 %v6775_v6, %s6291_s9 }
 0xba9   :  { %1891 = vadd.xlane.f32.xlu1 %v1890_v38 }
 0xbac   :  { %v1883_v50 = vpop.xlane.xlu0 %1882 }
 0xbad   :  { %1894 = vadd.xlane.f32.xlu0 %v1893_v43  ;;  %1897 = vadd.xlane.f32.xlu1 %v1896_v44  ;;  %6086 = vrcp.f32 %v1883_v50 }
 0xbb1   :  { %1900 = vadd.xlane.f32.xlu0 %v1899_v46  ;;  %1903 = vadd.xlane.f32.xlu1 %v1902_v47 }
 0xbb7   :  { %v6087_v52 = vpop.eup %6086 }
 0xbb8   :  { %v1913_v57 = vmul.f32 %v6087_v52, %v6837_v9 }
 0xbc2   :  { %2234 = vrot.lane.b32.xlu1 %v6775_v6, %s6293_s19 }
 0xbc7   :  { %2284 = vrot.lane.b32.xlu0 %v6775_v6, %s6290_s0 }
 0xc01   :  { %v1886_v53 = vpop.xlane.xlu1 %1885 }
 0xc02   :  { %6088 = vrcp.f32 %v1886_v53 }
 0xc05   :  { %v1889_v63 = vpop.xlane.xlu0 %1888  ;;  %v2137_v0 = vpop.permute.xlu1 %2136 }
 0xc06   :  { %6090 = vrcp.f32 %v1889_v63  ;;  %v2142_v15 = vsel %vm840_vm6, %v2137_v0, 0 }
 0xc09   :  { %v2187_v1 = vpop.permute.xlu0 %2186 }
 0xc0a   :  { %v2192_v19 = vsel %vm840_vm6, %v2187_v1, 0 }
 0xc0c   :  { %v6089_v56 = vpop.eup %6088 }
 0xc0d   :  { %v1914_v58 = vmul.f32 %v6089_v56, %v6073_v18 }
 0xc0f   :  { %v1921_v59 = vpack.c.bf16 %v1914_v58, %v1913_v57  ;;  %v6013_v57 = vld [vmem:[%s7497_s10 + $0x18] sm:$0xff]  }
 0xc10   :  { %v6091_v8 = vpop.eup %6090 }
 0xc11   :  { %5587 = vmatmul.mubr.msk.bf16.vlgmr.msra.gmra.mrb[56].mxu0 %vm347_vm5, %v1921_v59  ;;  %v1974_v61 = vrot.slane %v1921_v59, 4  ;;  %v1915_v9 = vmul.f32 %v6091_v8, %v6842_v20 }
 0xc12   :  { %5597 = vmatpush3.bf16.msra.mxu0 %v2029_v60  ;;  %5598 = vmatprep.mubr.msk.bf16.mxu0 %vm6287_vm0, %v6286_v10 }
 0xc13   :  { %5593 = vmatmul.mubr.msk.bf16.vlgmr.msra.gmra.mrb[60].mxu1 %vm347_vm5, %v1974_v61  ;;  %5608 = vmatprep.subr.bf16.mxu0 %v6286_v10 }
 0xc14   :  { %5603 = vmatpush3.bf16.msra.mxu1 %v2079_v62  ;;  %5604 = vmatprep.mubr.msk.bf16.mxu1 %vm6287_vm0, %v6286_v10 }
 0xc15   :  { %5614 = vmatprep.subr.bf16.mxu1 %v6286_v10 }
 0xc36   :  { %v1892_v2 = vpop.xlane.xlu1 %1891 }
 0xc37   :  { %6092 = vrcp.f32 %v1892_v2 }
 0xc3a   :  { %v1895_v3 = vpop.xlane.xlu0 %1894  ;;  %v1898_v4 = vpop.xlane.xlu1 %1897 }
 0xc3b   :  { %6094 = vrcp.f32 %v1895_v3 }
 0xc3c   :  { %6096 = vrcp.f32 %v1898_v4 }
 0xc3e   :  { %v1901_v5 = vpop.xlane.xlu0 %1900  ;;  %v1904_v7 = vpop.xlane.xlu1 %1903 }
 0xc3f   :  { %6098 = vrcp.f32 %v1901_v5 }
 0xc40   :  { %6100 = vrcp.f32 %v1904_v7 }
 0xc41   :  { %v6093_v51 = vpop.eup %6092 }
 0xc42   :  { %v1916_v11 = vmul.f32 %v6093_v51, %v6077_v35  ;;  %v2235_v23 = vpop.permute.xlu1 %2234  ;;  %v2285_v24 = vpop.permute.xlu0 %2284 }
 0xc43   :  { %v2240_v27 = vsel %vm840_vm6, %v2235_v23, 0  ;;  %v2290_v29 = vsel %vm840_vm6, %v2285_v24, 0 }
 0xc44   :  { %v1922_v12 = vpack.c.bf16 %v1916_v11, %v1915_v9 }
 0xc45   :  { %v6095_v13 = vpop.eup %6094 }
 0xc46   :  { %v6097_v14 = vpop.eup %6096  ;;  %v1917_v16 = vmul.f32 %v6095_v13, %v6079_v37  ;;  %5599 = vmatmul.mubr.msk.bf16.vlgmr.msra.gmra.mrb[60].mxu0 %vm347_vm5, %v1922_v12  ;;  %v2072_v17 = vrot.slane %v1922_v12, 4 }
 0xc47   :  { %v1918_v18 = vmul.f32 %v6097_v14, %v6081_v39  ;;  %5609 = vmatpush3.bf16.msra.mxu0 %v2142_v15  ;;  %5610 = vmatprep.mubr.msk.bf16.mxu0 %vm6287_vm0, %v6286_v10 }
 0xc48   :  { %5605 = vmatmul.mubr.msk.bf16.vlgmr.msra.gmra.mrb[64].mxu1 %vm347_vm5, %v2072_v17  ;;  %5620 = vmatprep.subr.bf16.mxu0 %v6286_v10 }
 0xc49   :  { %5615 = vmatpush3.bf16.msra.mxu1 %v2192_v19  ;;  %5616 = vmatprep.mubr.msk.bf16.mxu1 %vm6287_vm0, %v6286_v10  ;;  %v6099_v20 = vpop.eup %6098  ;;  %v1923_v21 = vpack.c.bf16 %v1918_v18, %v1917_v16 }
 0xc4a   :  { %5626 = vmatprep.subr.bf16.mxu1 %v6286_v10  ;;  %v6101_v22 = vpop.eup %6100  ;;  %v1919_v25 = vmul.f32 %v6099_v20, %v6851_v41 }
 0xc4b   :  { %v1920_v26 = vmul.f32 %v6101_v22, %v6855_v45  ;;  %v2185_v28 = vrot.slane %v1923_v21, 4 }
 0xc4d   :  { %v1924_v30 = vpack.c.bf16 %v1920_v26, %v1919_v25  ;;  %v5098_v26 = vld [vmem:[%s7498_s11 + $0x1] ss:$0 sm:$0xff] }
 0xc4e   :  { %5611 = vmatmul.mubr.msk.bf16.vlgmr.msra.gmra.mrb[64].mxu0 %vm347_vm5, %v1923_v21 }
 0xc4f   :  { %5621 = vmatpush3.bf16.msra.mxu0 %v2240_v27  ;;  %5622 = vmatprep.mubr.msk.bf16.mxu0 %vm6287_vm0, %v6286_v10  ;;  %v2283_v31 = vrot.slane %v1924_v30, 4 }
 0xc50   :  { %5617 = vmatmul.mubr.msk.bf16.vlgmr.msra.gmra.mrb[68].mxu1 %vm347_vm5, %v2185_v28  ;;  %5632 = vmatprep.subr.bf16.mxu0 %v6286_v10 }
 0xc51   :  { %5627 = vmatpush3.bf16.msra.mxu1 %v2290_v29  ;;  %5628 = vmatprep.mubr.msk.bf16.mxu1 %vm6287_vm0, %v6286_v10 }
 0xc52   :  { %5640 = vmatprep.subr.bf16.mxu1 %v6286_v10 }
 0xc56   :  { %5623 = vmatmul.mubr.msk.bf16.vlgmr.msra.gmra.mrb[68].mxu0 %vm347_vm5, %v1924_v30 }
 0xc57   :  { %5636 = vmatprep.mubr.msk.bf16.mxu0 %vm6287_vm0, %v6286_v10  ;;  %5633 = vmatpush3.bf16.msra.mxu0 %v6012_v49  ;;  %v6017_v49 = vld [vmem:[%s7501_s14 + $0x8] sm:$0xff]  }
 0xc58   :  { %5629 = vmatmul.mubr.msk.bf16.vlgmr.msra.gmra.mrb[72].mxu1 %vm347_vm5, %v2283_v31  ;;  %5634 = vmatprep.subr.bf16.mxu0 %v6286_v10 }
 0xc59   :  { %5644 = vmatprep.mubr.msk.bf16.mxu1 %vm6287_vm0, %v6286_v10 }
 0xc5b   :  { %5635 = vmatpush3.bf16.msra.mxu0 %v6013_v57 }
 0xc5c   :  { %5648 = vmatprep.subr.bf16.mxu0 %v6286_v10 }
 0xce4   :  { %v1967_v32 = vpop.f32.mrb[56].mxu0 }
 0xce5   :  { %v5588_v33 = vpop.f32.mrb[57].mxu0 }
 0xce6   :  { %v1970_v34 = vpop.f32.mrb[58].mxu0  ;;  %v2017_v42 = vpop.f32.mrb[60].mxu1 }
 0xce7   :  { %v5589_v40 = vpop.f32.mrb[59].mxu0  ;;  %v5594_v35 = vpop.f32.mrb[61].mxu1 }
 0xce8   :  { %v2020_v37 = vpop.f32.mrb[62].mxu1 }
 0xce9   :  { %v5595_v38 = vpop.f32.mrb[63].mxu1 }
 0xd19   :  { %v2065_v39 = vpop.f32.mrb[60].mxu0 }
 0xd1a   :  { %v5600_v41 = vpop.f32.mrb[61].mxu0 }
 0xd1b   :  { %v2068_v43 = vpop.f32.mrb[62].mxu0  ;;  %v2115_v44 = vpop.f32.mrb[64].mxu1 }
 0xd1c   :  { %v5601_v45 = vpop.f32.mrb[63].mxu0  ;;  %v5606_v46 = vpop.f32.mrb[65].mxu1 }
 0xd1d   :  { %v2118_v47 = vpop.f32.mrb[66].mxu1 }
 0xd1e   :  { %v5607_v48 = vpop.f32.mrb[67].mxu1  ;;  %v6015_v47 = vld [vmem:[%s7499_s12 + $0x8] sm:$0xff]  }
 0xd1f   :  { %v6016_v48 = vld [vmem:[%s7501_s14] sm:$0xff]  }
 0xd21   :  { %v2178_v50 = vpop.f32.mrb[64].mxu0 }
 0xd22   :  { %v5612_v53 = vpop.f32.mrb[65].mxu0 }
 0xd23   :  { %v2181_v52 = vpop.f32.mrb[66].mxu0  ;;  %v2228_v56 = vpop.f32.mrb[68].mxu1 }
 0xd24   :  { %v5959_v58 = vpack.i.bf16 %v2228_v56, %v2017_v42  ;;  %v5613_v59 = vpop.f32.mrb[67].mxu0  ;;  %v5618_v60 = vpop.f32.mrb[69].mxu1 }
 0xd25   :  { %v2231_v61 = vpop.f32.mrb[70].mxu1 }
 0xd26   :  { %5960 = vrot.lane.b32.xlu1 %v5959_v58, %s7514_s28  ;;  %v5619_v62 = vpop.f32.mrb[71].mxu1  ;;  %v5102_v61 = vld [vmem:[%s7503_s16 + $0x1] ss:$0 sm:$0xff] }
 0xd29   :  { %v2276_v63 = vpop.f32.mrb[68].mxu0 }
 0xd2a   :  { %v5964_v0 = vpack.i.bf16 %v2276_v63, %v2065_v39  ;;  %v5624_v1 = vpop.f32.mrb[69].mxu0 }
 0xd2b   :  { %v2279_v2 = vpop.f32.mrb[70].mxu0  ;;  %v2326_v3 = vpop.f32.mrb[72].mxu1  ;;  %v5103_v1 = vld [vmem:[%s7504_s17 + $0x1] ss:$0 sm:$0xff] }
 0xd2c   :  { %v5969_v4 = vpack.i.bf16 %v2326_v3, %v2115_v44  ;;  %5965 = vrot.lane.b32.xlu0 %v5964_v0, %s7512_s25  ;;  %v5625_v5 = vpop.f32.mrb[71].mxu0  ;;  %v5630_v7 = vpop.f32.mrb[73].mxu1 }
 0xd2d   :  { %v2329_v8 = vpop.f32.mrb[74].mxu1  ;;  %v6018_v7 = vld [vmem:[%s7501_s14 + $0x10] sm:$0xff]  }
 0xd2e   :  { %5970 = vrot.lane.b32.xlu1 %v5969_v4, %s7510_s23  ;;  %v5631_v51 = vpop.f32.mrb[75].mxu1  ;;  %v6019_v8 = vld [vmem:[%s7501_s14 + $0x18] sm:$0xff]  }
 0xd2f   :  { %v5104_v51 = vld [vmem:[%s7500_s13] ss:$0 sm:$0xff] }
 0xd98   :  { %v5961_v9 = vpop.permute.xlu1 %5960 }
 0xd99   :  { %v5963_v11 = vunpack.i.h.bf16 %v5961_v9  ;;  %v5962_v12 = vunpack.i.l.bf16 %v5961_v9 }
 0xd9b   :  { %v2344_v16 = vsel %vm347_vm5, %v2178_v50, %v5963_v11  ;;  %v2133_v17 = vsel %vm347_vm5, %v1967_v32, %v5962_v12 }
 0xd9e   :  { %v5966_v13 = vpop.permute.xlu0 %5965 }
 0xd9f   :  { %v5968_v14 = vunpack.i.h.bf16 %v5966_v13  ;;  %v5967_v15 = vunpack.i.l.bf16 %v5966_v13 }
 0xda0   :  { %v5971_v18 = vpop.permute.xlu1 %5970 }
 0xda1   :  { %v2134_v19 = vsel %vm1045_vm7, %v2133_v17, %v5967_v15  ;;  %v2345_v20 = vsel %vm1045_vm7, %v2344_v16, %v5968_v14  ;;  %v5973_v21 = vunpack.i.h.bf16 %v5971_v18  ;;  %v5972_v22 = vunpack.i.l.bf16 %v5971_v18 }
 0xda3   :  { %v2346_v23 = vsel %vm1047_vm8, %v2345_v20, %v5973_v21  ;;  %v2135_v24 = vsel %vm1047_vm8, %v2134_v19, %v5972_v22  ;;  %v5108_v19 = vld [vmem:[%s7502_s15] ss:$0 sm:$0xff] }
 0xda4   :  { %v2347_v25 = vpack.c.bf16 %v2346_v23, %v2135_v24 }
 0xda6   :  { %5637 = vmatmul.mubr.msk.bf16.vlgmr.msra.gmra.mrb[72].mxu0 %vm232_vm1, %v2347_v25 }
 0xda7   :  { %5656 = vmatprep.mubr.msk.bf16.mxu0 %vm6287_vm0, %v6286_v10  ;;  %5649 = vmatpush3.bf16.msra.mxu0 %v6016_v48  ;;  %v5114_v48 = vld [vmem:[%s7503_s16 + $0x2] ss:$0 sm:$0xff] }
 0xda8   :  { %5650 = vmatprep.subr.bf16.mxu0 %v6286_v10 }
 0xdab   :  { %5651 = vmatpush3.bf16.msra.mxu0 %v6017_v49 }
 0xdac   :  { %5652 = vmatprep.subr.bf16.mxu0 %v6286_v10 }
 0xdaf   :  { %5653 = vmatpush3.bf16.msra.mxu0 %v6018_v7 }
 0xdb0   :  { %5654 = vmatprep.subr.bf16.mxu0 %v6286_v10 }
 0xdb3   :  { %5655 = vmatpush3.bf16.msra.mxu0 %v6019_v8 }
 0xdb4   :  { %5674 = vmatprep.subr.bf16.mxu0 %v6286_v10 }
 0xe79   :  { %v2407_v27 = vpop.f32.mrb[72].mxu0 }
 0xe7a   :  { %v2408_v28 = vadd.f32 %v5098_v26, %v2407_v27  ;;  %v5638_v29 = vpop.f32.mrb[73].mxu0 }
 0xe7b   :  { %v2410_v30 = vpop.f32.mrb[74].mxu0 }
 0xe7c   :  { %v2411_v31 = vadd.f32 %v5098_v26, %v2410_v30  ;;  %v5639_v32 = vpop.f32.mrb[75].mxu0  ;;  %v2414_v33 = vadd.f32 %v2408_v28, %v6754_v54 }
 0xe7e   :  { %v2418_v34 = vsel %vm232_vm1, %v2414_v33, 0.0  ;;  %v2415_v42 = vadd.f32 %v2411_v31, %v6756_v55  ;;  %v6014_v55 = vld [vmem:[%s7499_s12] sm:$0xff]  }
 0xe7f   :  { %2419 = vadd.xlane.f32.xlu0 %v2418_v34  ;;  %5641 = vmatpush3.bf16.msra.mxu1 %v6014_v55 }
 0xe80   :  { %v2421_v40 = vsel %vm232_vm1, %v2415_v42, 0.0  ;;  %5642 = vmatprep.subr.bf16.mxu1 %v6286_v10 }
 0xe81   :  { %2422 = vadd.xlane.f32.xlu1 %v2421_v40 }
 0xe83   :  { %5643 = vmatpush3.bf16.msra.mxu1 %v6015_v47 }
 0xe84   :  { %5660 = vmatprep.subr.bf16.mxu1 %v6286_v10 }
 0xf0c   :  { %v2420_v35 = vpop.xlane.xlu0 %2419 }
 0xf0d   :  { %v2424_v37 = vmul.f32 0.03125, %v2420_v35 }
 0xf0e   :  { %v2423_v38 = vpop.xlane.xlu1 %2422 }
 0xf0f   :  { %v2426_v39 = vsub.f32 %v2414_v33, %v2424_v37  ;;  %v2425_v41 = vmul.f32 0.03125, %v2423_v38 }
 0xf11   :  { %v2427_v43 = vsub.f32 %v2415_v42, %v2425_v41  ;;  %v2428_v44 = vmul.f32 %v2426_v39, %v2426_v39  ;;  %v6021_v41 = vld [vmem:[%s7491_s4 + $0x18] sm:$0xff]  }
 0xf13   :  { %v2430_v45 = vsel %vm232_vm1, %v2428_v44, 0.0  ;;  %v2429_v46 = vmul.f32 %v2427_v43, %v2427_v43 }
 0xf14   :  { %2431 = vadd.xlane.f32.xlu0 %v2430_v45 }
 0xf15   :  { %v2433_v54 = vsel %vm232_vm1, %v2429_v46, 0.0 }
 0xf18   :  { %2434 = vadd.xlane.f32.xlu0 %v2433_v54 }
 0xfa1   :  { %v2432_v50 = vpop.xlane.xlu0 %2431 }
 0xfa2   :  { %v2436_v53 = vmul.f32 0.03125, %v2432_v50 }
 0xfa4   :  { %v2438_v52 = vadd.f32 1e-06, %v2436_v53 }
 0xfa5   :  { %v2435_v56 = vpop.xlane.xlu0 %2434 }
 0xfa6   :  { %6102 = vrsqrt.f32 %v2438_v52  ;;  %v2437_v57 = vmul.f32 0.03125, %v2435_v56  ;;  %v5115_v56 = vld [vmem:[%s7504_s17 + $0x2] ss:$0 sm:$0xff] }
 0xfa8   :  { %v2439_v58 = vadd.f32 1e-06, %v2437_v57 }
 0xfaa   :  { %6104 = vrsqrt.f32 %v2439_v58 }
 0xfb0   :  { %v6103_v59 = vpop.eup %6102 }
 0xfb1   :  { %v2442_v60 = vmul.f32 %v6103_v59, %v2426_v39  ;;  %v6020_v39 = vld [vmem:[%s7491_s4 + $0x10] sm:$0xff]  }
 0xfb3   :  { %v2448_v63 = vmul.f32 %v5102_v61, %v2442_v60 }
 0xfb4   :  { %v6105_v62 = vpop.eup %6104 }
 0xfb5   :  { %v2443_v0 = vmul.f32 %v6105_v62, %v2427_v43  ;;  %v2454_v3 = vadd.f32 %v5103_v1, %v2448_v63 }
 0xfb7   :  { %v2449_v2 = vmul.f32 %v5102_v61, %v2443_v0  ;;  %v5120_v61 = vld [vmem:[%s7492_s5 + $0x1] ss:$0 sm:$0xff] }
 0xfb9   :  { %v2455_v4 = vadd.f32 %v5103_v1, %v2449_v2 }
 0xfbb   :  { %v2456_v5 = vpack.c.bf16 %v2455_v4, %v2454_v3 }
 0xfbd   :  { %5645 = vmatmul.mubr.msk.bf16.vlgmr.msra.gmra.mrb[76].mxu1 %vm232_vm1, %v2456_v5 }
 0xfbe   :  { %5664 = vmatprep.mubr.msk.bf16.mxu1 %vm6287_vm0, %v6286_v10  ;;  %5661 = vmatpush3.bf16.msra.mxu1 %v6020_v39 }
 0xfbf   :  { %5662 = vmatprep.subr.bf16.mxu1 %v6286_v10 }
 0xfc2   :  { %5663 = vmatpush3.bf16.msra.mxu1 %v6021_v41 }
 0xfc3   :  { %5668 = vmatprep.subr.bf16.mxu1 %v6286_v10 }
0x1090   :  { %v2515_v9 = vpop.f32.mrb[76].mxu1 }
0x1091   :  { %v2516_v11 = vadd.f32 %v5104_v51, %v2515_v9  ;;  %v5646_v12 = vpop.f32.mrb[77].mxu1 }
0x1092   :  { %v2518_v13 = vpop.f32.mrb[78].mxu1 }
0x1093   :  { %v2519_v14 = vadd.f32 %v5104_v51, %v2518_v13  ;;  %v5647_v15 = vpop.f32.mrb[79].mxu1  ;;  %v2522_v16 = vmax.f32 %v2516_v11, 0.0 }
0x1095   :  { %v2523_v17 = vmax.f32 %v2519_v14, 0.0 }
0x1097   :  { %v2524_v18 = vpack.c.bf16 %v2523_v17, %v2522_v16 }
0x1099   :  { %5657 = vmatmul.mubr.msk.bf16.vlgmr.msra.gmra.mrb[76].mxu0 %vm124_vm2, %v2524_v18 }
0x109a   :  { %5676 = vmatprep.mubr.msk.bf16.mxu0 %vm6287_vm0, %v6286_v10 }
0x116c   :  { %v2599_v20 = vpop.f32.mrb[76].mxu0 }
0x116d   :  { %v2600_v21 = vadd.f32 %v5108_v19, %v2599_v20  ;;  %v5658_v22 = vpop.f32.mrb[77].mxu0 }
0x116e   :  { %v2602_v23 = vpop.f32.mrb[78].mxu0 }
0x116f   :  { %v2603_v24 = vadd.f32 %v5108_v19, %v2602_v23  ;;  %v5659_v25 = vpop.f32.mrb[79].mxu0  ;;  %v2606_v26 = vadd.f32 %v2600_v21, %v2454_v3 }
0x1171   :  { %v2610_v27 = vsel %vm232_vm1, %v2606_v26, 0.0  ;;  %v2607_v28 = vadd.f32 %v2603_v24, %v2455_v4 }
0x1172   :  { %2611 = vadd.xlane.f32.xlu1 %v2610_v27 }
0x1173   :  { %v2613_v29 = vsel %vm232_vm1, %v2607_v28, 0.0 }
0x1174   :  { %2614 = vadd.xlane.f32.xlu0 %v2613_v29 }
0x11ff   :  { %v2612_v30 = vpop.xlane.xlu1 %2611 }
0x1200   :  { %v2616_v31 = vmul.f32 0.03125, %v2612_v30 }
0x1201   :  { %v2615_v32 = vpop.xlane.xlu0 %2614 }
0x1202   :  { %v2618_v33 = vsub.f32 %v2606_v26, %v2616_v31  ;;  %v2617_v34 = vmul.f32 0.03125, %v2615_v32 }
0x1204   :  { %v2619_v42 = vsub.f32 %v2607_v28, %v2617_v34  ;;  %v2620_v40 = vmul.f32 %v2618_v33, %v2618_v33 }
0x1206   :  { %v2622_v35 = vsel %vm232_vm1, %v2620_v40, 0.0  ;;  %v2621_v37 = vmul.f32 %v2619_v42, %v2619_v42 }
0x1207   :  { %2623 = vadd.xlane.f32.xlu1 %v2622_v35 }
0x1208   :  { %v2625_v38 = vsel %vm232_vm1, %v2621_v37, 0.0 }
0x1209   :  { %2626 = vadd.xlane.f32.xlu0 %v2625_v38 }
0x1294   :  { %v2624_v43 = vpop.xlane.xlu1 %2623 }
0x1295   :  { %v2628_v44 = vmul.f32 0.03125, %v2624_v43 }
0x1296   :  { %v2627_v45 = vpop.xlane.xlu0 %2626 }
0x1297   :  { %v2630_v46 = vadd.f32 1e-06, %v2628_v44  ;;  %v2629_v54 = vmul.f32 0.03125, %v2627_v45 }
0x1299   :  { %6106 = vrsqrt.f32 %v2630_v46  ;;  %v2631_v55 = vadd.f32 1e-06, %v2629_v54 }
0x129b   :  { %6108 = vrsqrt.f32 %v2631_v55 }
0x12a3   :  { %v6107_v47 = vpop.eup %6106 }
0x12a4   :  { %v2634_v49 = vmul.f32 %v6107_v47, %v2618_v33 }
0x12a5   :  { %v6109_v50 = vpop.eup %6108 }
0x12a6   :  { %v2640_v53 = vmul.f32 %v5114_v48, %v2634_v49  ;;  %v2635_v52 = vmul.f32 %v6109_v50, %v2619_v42 }
0x12a8   :  { %v2641_v57 = vmul.f32 %v5114_v48, %v2635_v52  ;;  %v6994_v58 = vadd.f32 %v5115_v56, %v2640_v53 }
0x12aa   :  { %v6996_v59 = vadd.f32 %v5115_v56, %v2641_v57 }
0x12ac   :  { %v2648_v60 = vpack.c.bf16 %v6996_v59, %v6994_v58 }
0x12ae   :  { %5665 = vmatmul.mubr.msk.bf16.vlgmr.msra.gmra.mrb[80].mxu1 %vm232_vm1, %v2648_v60 }
0x12af   :  { %5670 = vmatprep.mubr.msk.bf16.mxu1 %vm6287_vm0, %v6286_v10 }
0x1381   :  { %v2708_v62 = vpop.f32.mrb[80].mxu1 }
0x1382   :  { %v5666_v63 = vpop.f32.mrb[81].mxu1  ;;  %v2709_v1 = vadd.f32 %v5120_v61, %v2708_v62 }
0x1383   :  { %v2711_v0 = vpop.f32.mrb[82].mxu1 }
0x1384   :  { %v2712_v2 = vadd.f32 %v5120_v61, %v2711_v0  ;;  %v5667_v3 = vpop.f32.mrb[83].mxu1 }
0x1386   :  { %v7006_v4 = vpack.c.bf16 %v2712_v2, %v2709_v1 }
0x1388   :  { %2767 = vrot.lane.b32.xlu0 %v7006_v4, %s6291_s9  ;;  %2717 = vrot.lane.b32.xlu1 %v7006_v4, %s6289_s29  ;;  %v7021_v5 = vrot.slane %v7006_v4, 4 }
0x138c   :  { %2867 = vrot.lane.b32.xlu0 %v7006_v4, %s6290_s0  ;;  %2765 = vrot.lane.b32.xlu1 %v7006_v4, %s6288_s26 }
0x1390   :  { %2865 = vrot.lane.b32.xlu0 %v7006_v4, %s6292_s24  ;;  %2817 = vrot.lane.b32.xlu1 %v7006_v4, %s6293_s19 }
0x1394   :  { %2815 = vrot.lane.b32.xlu1 %v7006_v4, %s6294_s27  ;;  %2966 = vrot.lane.b32.xlu0 %v7021_v5, %s6291_s9 }
0x1398   :  { %3016 = vrot.lane.b32.xlu0 %v7021_v5, %s6293_s19  ;;  %2916 = vrot.lane.b32.xlu1 %v7021_v5, %s6289_s29  ;;  %s7522_s19 = smov 8   ;;  %s6301_s29 = smov 32  }
0x139c   :  { %3014 = vrot.lane.b32.xlu0 %v7021_v5, %s6294_s27  ;;  %2964 = vrot.lane.b32.xlu1 %v7021_v5, %s6288_s26 }
0x13a0   :  { %3066 = vrot.lane.b32.xlu1 %v7021_v5, %s6290_s0 }
0x13a4   :  { %3064 = vrot.lane.b32.xlu1 %v7021_v5, %s6292_s24 }
0x13a8   :  { %3206 = vrot.lane.b32.xlu1 %v7006_v4, %s6295_s1 }
0x13fa   :  { %v2768_v7 = vpop.permute.xlu0 %2767  ;;  %v2718_v8 = vpop.permute.xlu1 %2717 }
0x13fb   :  { %v2773_v51 = vsel %vm347_vm5, %v2768_v7, 0  ;;  %v2723_v9 = vsel %vm347_vm5, %v2718_v8, 0 }
0x13fc   :  { %5669 = vmatpush3.bf16.xpose.msra.mxu1 %v2723_v9  ;;  %5675 = vmatpush3.bf16.xpose.msra.mxu0 %v2773_v51 }
0x13fd   :  { %5680 = vmatprep.subr.bf16.mxu1 %v6286_v10  ;;  %5686 = vmatprep.subr.bf16.mxu0 %v6286_v10 }
0x13fe   :  { %v2868_v11 = vpop.permute.xlu0 %2867  ;;  %v2766_v12 = vpop.permute.xlu1 %2765 }
0x13ff   :  { %v2873_v15 = vsel %vm347_vm5, %v2868_v11, 0 }
0x1402   :  { %v2866_v13 = vpop.permute.xlu0 %2865  ;;  %v2818_v14 = vpop.permute.xlu1 %2817 }
0x1403   :  { %v2823_v16 = vsel %vm347_vm5, %v2818_v14, 0  ;;  %5671 = vmatmul.mubr.msk.bf16.vlgmr.msra.gmra.mrb[84].mxu1 %vm347_vm5, %v7006_v4  ;;  %5677 = vmatmul.mubr.msk.bf16.vlgmr.msra.gmra.mrb[80].mxu0 %vm347_vm5, %v2766_v12 }
0x1404   :  { %5681 = vmatpush3.bf16.xpose.msra.mxu1 %v2823_v16  ;;  %5687 = vmatpush3.bf16.xpose.msra.mxu0 %v2873_v15 }
0x1405   :  { %5682 = vmatprep.mubr.msk.bf16.mxu1 %vm6287_vm0, %v6286_v10  ;;  %5688 = vmatprep.mubr.msk.bf16.mxu0 %vm6287_vm0, %v6286_v10 }
0x1406   :  { %v2816_v17 = vpop.permute.xlu1 %2815  ;;  %5692 = vmatprep.subr.bf16.mxu1 %v6286_v10  ;;  %5698 = vmatprep.subr.bf16.mxu0 %v6286_v10  ;;  %v2967_v18 = vpop.permute.xlu0 %2966 }
0x1407   :  { %v2972_v20 = vsel %vm347_vm5, %v2967_v18, 0 }
0x140a   :  { %v2917_v19 = vpop.permute.xlu1 %2916  ;;  %v3017_v23 = vpop.permute.xlu0 %3016 }
0x140b   :  { %v2922_v21 = vsel %vm347_vm5, %v2917_v19, 0  ;;  %5683 = vmatmul.mubr.msk.bf16.vlgmr.msra.gmra.mrb[88].mxu1 %vm347_vm5, %v2816_v17  ;;  %5689 = vmatmul.mubr.msk.bf16.vlgmr.msra.gmra.mrb[84].mxu0 %vm347_vm5, %v2866_v13  ;;  %v3022_v25 = vsel %vm347_vm5, %v3017_v23, 0 }
0x140c   :  { %5693 = vmatpush3.bf16.xpose.msra.mxu1 %v2922_v21  ;;  %5699 = vmatpush3.bf16.xpose.msra.mxu0 %v2972_v20 }
0x140d   :  { %5694 = vmatprep.mubr.msk.bf16.mxu1 %vm6287_vm0, %v6286_v10  ;;  %5700 = vmatprep.mubr.msk.bf16.mxu0 %vm6287_vm0, %v6286_v10 }
0x140e   :  { %v2965_v22 = vpop.permute.xlu1 %2964  ;;  %5704 = vmatprep.subr.bf16.mxu1 %v6286_v10  ;;  %5710 = vmatprep.subr.bf16.mxu0 %v6286_v10  ;;  %v3015_v28 = vpop.permute.xlu0 %3014 }
0x1412   :  { %v3067_v24 = vpop.permute.xlu1 %3066 }
0x1413   :  { %v3072_v26 = vsel %vm347_vm5, %v3067_v24, 0  ;;  %5695 = vmatmul.mubr.msk.bf16.vlgmr.msra.gmra.mrb[92].mxu1 %vm347_vm5, %v7021_v5  ;;  %5701 = vmatmul.mubr.msk.bf16.vlgmr.msra.gmra.mrb[88].mxu0 %vm347_vm5, %v2965_v22 }
0x1414   :  { %5705 = vmatpush3.bf16.xpose.msra.mxu1 %v3022_v25  ;;  %5711 = vmatpush3.bf16.xpose.msra.mxu0 %v3072_v26 }
0x1415   :  { %5706 = vmatprep.mubr.msk.bf16.mxu1 %vm6287_vm0, %v6286_v10  ;;  %5712 = vmatprep.mubr.msk.bf16.mxu0 %vm6287_vm0, %v6286_v10 }
0x1416   :  { %v3065_v27 = vpop.permute.xlu1 %3064  ;;  %5716 = vmatprep.subr.bf16.mxu1 %v6286_v10  ;;  %5722 = vmatprep.subr.bf16.mxu0 %v6286_v10 }
0x141a   :  { %v3207_v29 = vpop.permute.xlu1 %3206 }
0x141b   :  { %v3212_v30 = vsel %vm840_vm6, %v3207_v29, 0  ;;  %5707 = vmatmul.mubr.msk.bf16.vlgmr.msra.gmra.mrb[96].mxu1 %vm347_vm5, %v3015_v28  ;;  %5713 = vmatmul.mubr.msk.bf16.vlgmr.msra.gmra.mrb[92].mxu0 %vm347_vm5, %v3065_v27 }
0x141c   :  { %5717 = vmatpush3.bf16.msra.mxu1 %v3212_v30  ;;  %5718 = vmatprep.mubr.msk.bf16.mxu1 %vm6287_vm0, %v6286_v10 }
0x141d   :  { %5728 = vmatprep.subr.bf16.mxu1 %v6286_v10  ;;  %5724 = vmatprep.mubr.msk.bf16.mxu0 %vm6287_vm0, %v6286_v10 }
0x14d6   :  { %v2759_v31 = vpop.f32.mrb[84].mxu1  ;;  %v2809_v32 = vpop.f32.mrb[80].mxu0 }
0x14d7   :  { %v5672_v33 = vpop.f32.mrb[85].mxu1  ;;  %v5678_v34 = vpop.f32.mrb[81].mxu0  ;;  %v3117_v42 = vsel %vm347_vm5, %v2809_v32, -inf  ;;  %v3114_v40 = vsel %vm347_vm5, %v2759_v31, -inf }
0x14d8   :  { %v2812_v35 = vpop.f32.mrb[82].mxu0  ;;  %3118 = vmax.xlane.f32.xlu1 %v3117_v42  ;;  %3115 = vmax.xlane.f32.xlu0 %v3114_v40  ;;  %v2762_v37 = vpop.f32.mrb[86].mxu1 }
0x14d9   :  { %v5673_v38 = vpop.f32.mrb[87].mxu1  ;;  %v5679_v39 = vpop.f32.mrb[83].mxu0 }
0x14de   :  { %v2859_v41 = vpop.f32.mrb[88].mxu1  ;;  %v2909_v43 = vpop.f32.mrb[84].mxu0 }
0x14df   :  { %v5684_v44 = vpop.f32.mrb[89].mxu1  ;;  %v5690_v45 = vpop.f32.mrb[85].mxu0  ;;  %v3120_v46 = vsel %vm347_vm5, %v2859_v41, -inf  ;;  %v3123_v49 = vsel %vm347_vm5, %v2909_v43, -inf }
0x14e0   :  { %v2912_v54 = vpop.f32.mrb[86].mxu0  ;;  %3121 = vmax.xlane.f32.xlu0 %v3120_v46  ;;  %v2862_v55 = vpop.f32.mrb[90].mxu1 }
0x14e1   :  { %v5685_v47 = vpop.f32.mrb[91].mxu1  ;;  %v5691_v48 = vpop.f32.mrb[87].mxu0 }
0x14e4   :  { %3124 = vmax.xlane.f32.xlu0 %v3123_v49 }
0x14e6   :  { %v7089_v50 = vpop.f32.mrb[92].mxu1  ;;  %v7091_v53 = vpop.f32.mrb[88].mxu0 }
0x14e7   :  { %v5696_v52 = vpop.f32.mrb[93].mxu1  ;;  %v5702_v56 = vpop.f32.mrb[89].mxu0  ;;  %v3129_v57 = vsel %vm347_vm5, %v7091_v53, -inf  ;;  %v3126_v60 = vsel %vm347_vm5, %v7089_v50, -inf }
0x14e8   :  { %v3011_v61 = vpop.f32.mrb[90].mxu0  ;;  %3130 = vmax.xlane.f32.xlu0 %v3129_v57  ;;  %3127 = vmax.xlane.f32.xlu1 %v3126_v60  ;;  %v2961_v62 = vpop.f32.mrb[94].mxu1 }
0x14e9   :  { %v5697_v63 = vpop.f32.mrb[95].mxu1  ;;  %v5703_v0 = vpop.f32.mrb[91].mxu0 }
0x14ee   :  { %v3058_v1 = vpop.f32.mrb[96].mxu1  ;;  %v3108_v2 = vpop.f32.mrb[92].mxu0 }
0x14ef   :  { %v5708_v3 = vpop.f32.mrb[97].mxu1  ;;  %v5714_v7 = vpop.f32.mrb[93].mxu0  ;;  %v3135_v8 = vsel %vm347_vm5, %v3108_v2, -inf  ;;  %v3132_v51 = vsel %vm347_vm5, %v3058_v1, -inf }
0x14f0   :  { %v3111_v9 = vpop.f32.mrb[94].mxu0  ;;  %3136 = vmax.xlane.f32.xlu0 %v3135_v8  ;;  %3133 = vmax.xlane.f32.xlu1 %v3132_v51  ;;  %v3061_v11 = vpop.f32.mrb[98].mxu1 }
0x14f1   :  { %v5709_v12 = vpop.f32.mrb[99].mxu1  ;;  %v5715_v13 = vpop.f32.mrb[95].mxu0 }
0x1501   :  { %3304 = vrot.lane.b32.xlu1 %v7006_v4, %s6296_s8 }
0x1505   :  { %3354 = vrot.lane.b32.xlu1 %v7006_v4, %s6297_s20 }
0x1506   :  { %3256 = vrot.lane.b32.xlu0 %v7006_v4, %s6298_s3 }
0x1565   :  { %v3119_v14 = vpop.xlane.xlu1 %3118  ;;  %v3116_v15 = vpop.xlane.xlu0 %3115 }
0x1566   :  { %v3139_v16 = vsub.f32 %v2809_v32, %v3119_v14  ;;  %v3138_v17 = vsub.f32 %v2759_v31, %v3116_v15 }
0x1568   :  { %v3148_v18 = vmul.f32 1.442695, %v3139_v16  ;;  %v3146_v19 = vmul.f32 1.442695, %v3138_v17 }
0x156a   :  { %6110 = vpow2.f32 %v3148_v18 }
0x156b   :  { %6112 = vpow2.f32 %v3146_v19 }
0x156d   :  { %v3122_v20 = vpop.xlane.xlu0 %3121 }
0x156e   :  { %v3140_v21 = vsub.f32 %v2859_v41, %v3122_v20 }
0x1570   :  { %v3150_v22 = vmul.f32 1.442695, %v3140_v21 }
0x1571   :  { %v3125_v23 = vpop.xlane.xlu0 %3124 }
0x1572   :  { %6114 = vpow2.f32 %v3150_v22  ;;  %v3141_v24 = vsub.f32 %v2909_v43, %v3125_v23 }
0x1574   :  { %v6111_v25 = vpop.eup %6110  ;;  %v3152_v26 = vmul.f32 1.442695, %v3141_v24 }
0x1575   :  { %v6113_v27 = vpop.eup %6112  ;;  %v3165_v28 = vsel %vm347_vm5, %v6111_v25, 0.0  ;;  %v3131_v29 = vpop.xlane.xlu0 %3130 }
0x1576   :  { %6116 = vpow2.f32 %v3152_v26  ;;  %3166 = vadd.xlane.f32.xlu0 %v3165_v28  ;;  %v3162_v4 = vsel %vm347_vm5, %v6113_v27, 0.0  ;;  %v3128_v35 = vpop.xlane.xlu1 %3127  ;;  %v3143_v39 = vsub.f32 %v7091_v53, %v3131_v29 }
0x1577   :  { %3163 = vadd.xlane.f32.xlu1 %v3162_v4  ;;  %v3142_v37 = vsub.f32 %v7089_v50, %v3128_v35 }
0x1578   :  { %v3156_v44 = vmul.f32 1.442695, %v3143_v39 }
0x1579   :  { %v3154_v41 = vmul.f32 1.442695, %v3142_v37 }
0x157b   :  { %6118 = vpow2.f32 %v3154_v41 }
0x157c   :  { %v7107_v30 = vpop.eup %6114  ;;  %6120 = vpow2.f32 %v3156_v44 }
0x157d   :  { %v3137_v31 = vpop.xlane.xlu0 %3136  ;;  %v3168_v32 = vsel %vm347_vm5, %v7107_v30, 0.0  ;;  %v3134_v38 = vpop.xlane.xlu1 %3133 }
0x157e   :  { %3169 = vadd.xlane.f32.xlu1 %v3168_v32  ;;  %v3144_v43 = vsub.f32 %v3058_v1, %v3134_v38  ;;  %v3145_v45 = vsub.f32 %v3108_v2, %v3137_v31 }
0x1580   :  { %v7111_v33 = vpop.eup %6116  ;;  %v3158_v46 = vmul.f32 1.442695, %v3144_v43  ;;  %v3160_v54 = vmul.f32 1.442695, %v3145_v45 }
0x1581   :  { %v3257_v34 = vpop.permute.xlu0 %3256  ;;  %v3171_v42 = vsel %vm347_vm5, %v7111_v33, 0.0  ;;  %v3305_v57 = vpop.permute.xlu1 %3304 }
0x1582   :  { %v3262_v40 = vsel %vm840_vm6, %v3257_v34, 0  ;;  %3172 = vadd.xlane.f32.xlu0 %v3171_v42  ;;  %6122 = vpow2.f32 %v3158_v46  ;;  %v3310_v51 = vsel %vm840_vm6, %v3305_v57, 0 }
0x1583   :  { %5723 = vmatpush3.bf16.msra.mxu0 %v3262_v40  ;;  %6124 = vpow2.f32 %v3160_v54 }
0x1584   :  { %5734 = vmatprep.subr.bf16.mxu0 %v6286_v10 }
0x1585   :  { %v7123_v55 = vpop.eup %6118  ;;  %v3355_v60 = vpop.permute.xlu1 %3354 }
0x1586   :  { %v7125_v47 = vpop.eup %6120  ;;  %v3174_v48 = vsel %vm347_vm5, %v7123_v55, 0.0  ;;  %v3360_v9 = vsel %vm840_vm6, %v3355_v60, 0  ;;  %v6022_v60 = vld [vmem:[%s7497_s10 + $0x20] sm:$0xff]  }
0x1587   :  { %v3177_v50 = vsel %vm347_vm5, %v7125_v47, 0.0 }
0x158c   :  { %v7129_v49 = vpop.eup %6122 }
0x158d   :  { %v3180_v53 = vsel %vm347_vm5, %v7129_v49, 0.0  ;;  %v7135_v52 = vpop.eup %6124 }
0x158e   :  { %v3183_v56 = vsel %vm347_vm5, %v7135_v52, 0.0 }
0x158f   :  { %3467 = vrot.lane.b32.xlu1 %v7021_v5, %s6298_s3 }
0x1598   :  { %3417 = vrot.lane.b32.xlu0 %v7021_v5, %s6295_s1 }
0x15b3   :  { %3175 = vadd.xlane.f32.xlu1 %v3174_v48 }
0x15b7   :  { %3178 = vadd.xlane.f32.xlu0 %v3177_v50  ;;  %3181 = vadd.xlane.f32.xlu1 %v3180_v53 }
0x15bb   :  { %3184 = vadd.xlane.f32.xlu0 %v3183_v56 }
0x15c8   :  { %3565 = vrot.lane.b32.xlu1 %v7021_v5, %s6297_s20 }
0x15d1   :  { %3515 = vrot.lane.b32.xlu0 %v7021_v5, %s6296_s8 }
0x1603   :  { %v3167_v61 = vpop.xlane.xlu0 %3166 }
0x1604   :  { %6126 = vrcp.f32 %v3167_v61  ;;  %v3164_v62 = vpop.xlane.xlu1 %3163 }
0x1605   :  { %6128 = vrcp.f32 %v3164_v62 }
0x160b   :  { %v3170_v63 = vpop.xlane.xlu1 %3169 }
0x160c   :  { %6130 = vrcp.f32 %v3170_v63 }
0x160e   :  { %v6127_v0 = vpop.eup %6126 }
0x160f   :  { %v6129_v1 = vpop.eup %6128  ;;  %v3195_v2 = vmul.f32 %v6127_v0, %v6111_v25  ;;  %v3173_v3 = vpop.xlane.xlu0 %3172 }
0x1610   :  { %v3194_v7 = vmul.f32 %v6129_v1, %v6113_v27  ;;  %6132 = vrcp.f32 %v3173_v3  ;;  %v3468_v17 = vpop.permute.xlu1 %3467  ;;  %v6023_v1 = vld [vmem:[%s7497_s10 + $0x28] sm:$0xff]  }
0x1611   :  { %v3473_v20 = vsel %vm840_vm6, %v3468_v17, 0 }
0x1612   :  { %v3202_v8 = vpack.c.bf16 %v3195_v2, %v3194_v7 }
0x1613   :  { %v3418_v15 = vpop.permute.xlu0 %3417 }
0x1614   :  { %5719 = vmatmul.mubr.msk.bf16.vlgmr.msra.gmra.mrb[100].mxu1 %vm347_vm5, %v3202_v8  ;;  %v3255_v5 = vrot.slane %v3202_v8, 4  ;;  %v3423_v18 = vsel %vm840_vm6, %v3418_v15, 0 }
0x1615   :  { %5729 = vmatpush3.bf16.msra.mxu1 %v3310_v51  ;;  %5730 = vmatprep.mubr.msk.bf16.mxu1 %vm6287_vm0, %v6286_v10 }
0x1616   :  { %5725 = vmatmul.mubr.msk.bf16.vlgmr.msra.gmra.mrb[96].mxu0 %vm347_vm5, %v3255_v5  ;;  %5740 = vmatprep.subr.bf16.mxu1 %v6286_v10  ;;  %v6131_v11 = vpop.eup %6130 }
0x1617   :  { %5735 = vmatpush3.bf16.msra.mxu0 %v3360_v9  ;;  %5736 = vmatprep.mubr.msk.bf16.mxu0 %vm6287_vm0, %v6286_v10  ;;  %v3196_v13 = vmul.f32 %v6131_v11, %v7107_v30 }
0x1618   :  { %5746 = vmatprep.subr.bf16.mxu0 %v6286_v10 }
0x161a   :  { %v6133_v12 = vpop.eup %6132 }
0x161b   :  { %v3197_v14 = vmul.f32 %v6133_v12, %v7111_v33 }
0x161d   :  { %v3203_v16 = vpack.c.bf16 %v3197_v14, %v3196_v13 }
0x161f   :  { %5731 = vmatmul.mubr.msk.bf16.vlgmr.msra.gmra.mrb[104].mxu1 %vm347_vm5, %v3203_v16  ;;  %v3353_v19 = vrot.slane %v3203_v16, 4 }
0x1620   :  { %5741 = vmatpush3.bf16.msra.mxu1 %v3423_v18  ;;  %5742 = vmatprep.mubr.msk.bf16.mxu1 %vm6287_vm0, %v6286_v10 }
0x1621   :  { %5737 = vmatmul.mubr.msk.bf16.vlgmr.msra.gmra.mrb[100].mxu0 %vm347_vm5, %v3353_v19  ;;  %5752 = vmatprep.subr.bf16.mxu1 %v6286_v10 }
0x1622   :  { %5747 = vmatpush3.bf16.msra.mxu0 %v3473_v20  ;;  %5748 = vmatprep.mubr.msk.bf16.mxu0 %vm6287_vm0, %v6286_v10 }
0x1623   :  { %5758 = vmatprep.subr.bf16.mxu0 %v6286_v10 }
0x1640   :  { %v3176_v21 = vpop.xlane.xlu1 %3175 }
0x1641   :  { %6134 = vrcp.f32 %v3176_v21 }
0x1644   :  { %v3179_v22 = vpop.xlane.xlu0 %3178  ;;  %v3182_v23 = vpop.xlane.xlu1 %3181 }
0x1645   :  { %6136 = vrcp.f32 %v3179_v22 }
0x1646   :  { %6138 = vrcp.f32 %v3182_v23 }
0x1648   :  { %v3185_v24 = vpop.xlane.xlu0 %3184  ;;  %v3566_v32 = vpop.permute.xlu1 %3565 }
0x1649   :  { %6140 = vrcp.f32 %v3185_v24  ;;  %v3571_v35 = vsel %vm840_vm6, %v3566_v32, 0 }
0x164b   :  { %v6135_v25 = vpop.eup %6134 }
0x164c   :  { %v3198_v27 = vmul.f32 %v6135_v25, %v7123_v55  ;;  %v3516_v4 = vpop.permute.xlu0 %3515 }
0x164d   :  { %v3521_v34 = vsel %vm840_vm6, %v3516_v4, 0 }
0x164f   :  { %v6137_v26 = vpop.eup %6136 }
0x1650   :  { %v3199_v28 = vmul.f32 %v6137_v26, %v7125_v47  ;;  %v6139_v29 = vpop.eup %6138 }
0x1651   :  { %v3200_v40 = vmul.f32 %v6139_v29, %v7129_v49 }
0x1652   :  { %v3204_v30 = vpack.c.bf16 %v3199_v28, %v3198_v27 }
0x1653   :  { %v6141_v31 = vpop.eup %6140 }
0x1654   :  { %v3201_v33 = vmul.f32 %v6141_v31, %v7135_v52  ;;  %5743 = vmatmul.mubr.msk.bf16.vlgmr.msra.gmra.mrb[108].mxu1 %vm347_vm5, %v3204_v30  ;;  %v3466_v42 = vrot.slane %v3204_v30, 4 }
0x1655   :  { %5753 = vmatpush3.bf16.msra.mxu1 %v3521_v34  ;;  %5754 = vmatprep.mubr.msk.bf16.mxu1 %vm6287_vm0, %v6286_v10  ;;  %v5144_v34 = vld [vmem:[%s7498_s11 + $0x2] ss:$0 sm:$0xff] }
0x1656   :  { %5749 = vmatmul.mubr.msk.bf16.vlgmr.msra.gmra.mrb[104].mxu0 %vm347_vm5, %v3466_v42  ;;  %5764 = vmatprep.subr.bf16.mxu1 %v6286_v10  ;;  %v3205_v37 = vpack.c.bf16 %v3201_v33, %v3200_v40 }
0x1657   :  { %5759 = vmatpush3.bf16.msra.mxu0 %v3571_v35  ;;  %5760 = vmatprep.mubr.msk.bf16.mxu0 %vm6287_vm0, %v6286_v10 }
0x1658   :  { %5772 = vmatprep.subr.bf16.mxu0 %v6286_v10  ;;  %v3564_v38 = vrot.slane %v3205_v37, 4 }
0x165c   :  { %5755 = vmatmul.mubr.msk.bf16.vlgmr.msra.gmra.mrb[112].mxu1 %vm347_vm5, %v3205_v37 }
0x165d   :  { %5768 = vmatprep.mubr.msk.bf16.mxu1 %vm6287_vm0, %v6286_v10  ;;  %5765 = vmatpush3.bf16.msra.mxu1 %v6022_v60 }
0x165e   :  { %5761 = vmatmul.mubr.msk.bf16.vlgmr.msra.gmra.mrb[108].mxu0 %vm347_vm5, %v3564_v38  ;;  %5766 = vmatprep.subr.bf16.mxu1 %v6286_v10 }
0x165f   :  { %5776 = vmatprep.mubr.msk.bf16.mxu0 %vm6287_vm0, %v6286_v10 }
0x1661   :  { %5767 = vmatpush3.bf16.msra.mxu1 %v6023_v1 }
0x1662   :  { %5780 = vmatprep.subr.bf16.mxu1 %v6286_v10 }
0x16e7   :  { %v3248_v39 = vpop.f32.mrb[100].mxu1 }
0x16e8   :  { %v5720_v41 = vpop.f32.mrb[101].mxu1 }
0x16e9   :  { %v3251_v43 = vpop.f32.mrb[102].mxu1  ;;  %v3298_v44 = vpop.f32.mrb[96].mxu0 }
0x16ea   :  { %v5721_v45 = vpop.f32.mrb[103].mxu1  ;;  %v5726_v46 = vpop.f32.mrb[97].mxu0 }
0x16eb   :  { %v3301_v54 = vpop.f32.mrb[98].mxu0 }
0x16ec   :  { %v5727_v55 = vpop.f32.mrb[99].mxu0 }
0x16f2   :  { %v3346_v47 = vpop.f32.mrb[104].mxu1 }
0x16f3   :  { %v5732_v48 = vpop.f32.mrb[105].mxu1 }
0x16f4   :  { %v3349_v49 = vpop.f32.mrb[106].mxu1  ;;  %v3396_v50 = vpop.f32.mrb[100].mxu0 }
0x16f5   :  { %v5733_v53 = vpop.f32.mrb[107].mxu1  ;;  %v5738_v52 = vpop.f32.mrb[101].mxu0 }
0x16f6   :  { %v3399_v56 = vpop.f32.mrb[102].mxu0 }
0x16f7   :  { %v5739_v57 = vpop.f32.mrb[103].mxu0  ;;  %v6025_v56 = vld [vmem:[%s7493_s6 + $0x18] sm:$0xff]  }
0x1727   :  { %v3459_v61 = vpop.f32.mrb[108].mxu1 }
0x1728   :  { %v5744_v62 = vpop.f32.mrb[109].mxu1 }
0x1729   :  { %v3462_v63 = vpop.f32.mrb[110].mxu1  ;;  %v3509_v0 = vpop.f32.mrb[104].mxu0 }
0x172a   :  { %v5974_v2 = vpack.i.bf16 %v3509_v0, %v3298_v44  ;;  %v5745_v3 = vpop.f32.mrb[111].mxu1  ;;  %v5750_v7 = vpop.f32.mrb[105].mxu0 }
0x172b   :  { %v3512_v8 = vpop.f32.mrb[106].mxu0  ;;  %v5148_v7 = vld [vmem:[%s7503_s16 + $0x3] ss:$0 sm:$0xff] }
0x172c   :  { %5975 = vrot.lane.b32.xlu0 %v5974_v2, %s7522_s19  ;;  %v5751_v51 = vpop.f32.mrb[107].mxu0 }
0x172f   :  { %v3557_v5 = vpop.f32.mrb[112].mxu1 }
0x1730   :  { %v5979_v9 = vpack.i.bf16 %v3557_v5, %v3346_v47  ;;  %v5756_v11 = vpop.f32.mrb[113].mxu1 }
0x1731   :  { %v3560_v12 = vpop.f32.mrb[114].mxu1  ;;  %v3607_v13 = vpop.f32.mrb[108].mxu0  ;;  %v5149_v11 = vld [vmem:[%s7504_s17 + $0x3] ss:$0 sm:$0xff] }
0x1732   :  { %v5984_v14 = vpack.i.bf16 %v3607_v13, %v3396_v50  ;;  %v5762_v15 = vpop.f32.mrb[109].mxu0  ;;  %5980 = vrot.lane.b32.xlu1 %v5979_v9, %s7523_s21  ;;  %v5757_v16 = vpop.f32.mrb[115].mxu1 }
0x1733   :  { %v3610_v17 = vpop.f32.mrb[110].mxu0 }
0x1734   :  { %5985 = vrot.lane.b32.xlu0 %v5984_v14, %s7524_s22  ;;  %v5763_v18 = vpop.f32.mrb[111].mxu0 }
0x1735   :  { %v5154_v18 = vld [vmem:[#allocation5 + $0x1] ss:$0 sm:$0xff] }
0x179e   :  { %v5976_v19 = vpop.permute.xlu0 %5975 }
0x179f   :  { %v5978_v20 = vunpack.i.h.bf16 %v5976_v19  ;;  %v5977_v21 = vunpack.i.l.bf16 %v5976_v19 }
0x17a1   :  { %v3414_v25 = vsel %vm347_vm5, %v3248_v39, %v5977_v21  ;;  %v3625_v26 = vsel %vm347_vm5, %v3459_v61, %v5978_v20 }
0x17a4   :  { %v5981_v22 = vpop.permute.xlu1 %5980 }
0x17a5   :  { %v5983_v23 = vunpack.i.h.bf16 %v5981_v22  ;;  %v5982_v24 = vunpack.i.l.bf16 %v5981_v22 }
0x17a6   :  { %v5986_v27 = vpop.permute.xlu0 %5985 }
0x17a7   :  { %v3626_v28 = vsel %vm1045_vm7, %v3625_v26, %v5983_v23  ;;  %v3415_v4 = vsel %vm1045_vm7, %v3414_v25, %v5982_v24  ;;  %v5988_v29 = vunpack.i.h.bf16 %v5986_v27  ;;  %v5987_v30 = vunpack.i.l.bf16 %v5986_v27 }
0x17a9   :  { %v3416_v31 = vsel %vm1047_vm8, %v3415_v4, %v5987_v30  ;;  %v3627_v32 = vsel %vm1047_vm8, %v3626_v28, %v5988_v29 }
0x17aa   :  { %v3628_v33 = vpack.c.bf16 %v3627_v32, %v3416_v31 }
0x17ac   :  { %5769 = vmatmul.mubr.msk.bf16.vlgmr.msra.gmra.mrb[116].mxu1 %vm232_vm1, %v3628_v33 }
0x17ad   :  { %5782 = vmatprep.mubr.msk.bf16.mxu1 %vm6287_vm0, %v6286_v10 }
0x187f   :  { %v3688_v42 = vpop.f32.mrb[116].mxu1 }
0x1880   :  { %v3689_v40 = vadd.f32 %v5144_v34, %v3688_v42  ;;  %v5770_v35 = vpop.f32.mrb[117].mxu1 }
0x1881   :  { %v3691_v37 = vpop.f32.mrb[118].mxu1 }
0x1882   :  { %v3695_v38 = vadd.f32 %v3689_v40, %v6994_v58  ;;  %v3692_v39 = vadd.f32 %v5144_v34, %v3691_v37  ;;  %v5771_v41 = vpop.f32.mrb[119].mxu1 }
0x1884   :  { %v3696_v43 = vadd.f32 %v3692_v39, %v6996_v59  ;;  %v3699_v44 = vsel %vm232_vm1, %v3695_v38, 0.0  ;;  %v6024_v59 = vld [vmem:[%s7493_s6 + $0x10] sm:$0xff]  }
0x1885   :  { %3700 = vadd.xlane.f32.xlu1 %v3699_v44  ;;  %5773 = vmatpush3.bf16.msra.mxu0 %v6024_v59 }
0x1886   :  { %v3702_v45 = vsel %vm232_vm1, %v3696_v43, 0.0  ;;  %5774 = vmatprep.subr.bf16.mxu0 %v6286_v10 }
0x1887   :  { %3703 = vadd.xlane.f32.xlu0 %v3702_v45 }
0x1889   :  { %5775 = vmatpush3.bf16.msra.mxu0 %v6025_v56 }
0x188a   :  { %5786 = vmatprep.subr.bf16.mxu0 %v6286_v10 }
0x1912   :  { %v3701_v46 = vpop.xlane.xlu1 %3700 }
0x1913   :  { %v3705_v54 = vmul.f32 0.03125, %v3701_v46 }
0x1914   :  { %v3704_v55 = vpop.xlane.xlu0 %3703 }
0x1915   :  { %v3707_v47 = vsub.f32 %v3695_v38, %v3705_v54  ;;  %v3706_v48 = vmul.f32 0.03125, %v3704_v55 }
0x1917   :  { %v3708_v49 = vsub.f32 %v3696_v43, %v3706_v48  ;;  %v3709_v50 = vmul.f32 %v3707_v47, %v3707_v47 }
0x1919   :  { %v3711_v53 = vsel %vm232_vm1, %v3709_v50, 0.0  ;;  %v3710_v58 = vmul.f32 %v3708_v49, %v3708_v49 }
0x191a   :  { %3712 = vadd.xlane.f32.xlu0 %v3711_v53 }
0x191b   :  { %v3714_v52 = vsel %vm232_vm1, %v3710_v58, 0.0 }
0x191c   :  { %3715 = vadd.xlane.f32.xlu1 %v3714_v52 }
0x192d   :  { %3856 = vrot.lane.b32.xlu1 %v6503_v36, %s6298_s3 }
0x1930   :  { %3805 = vrot.lane.b32.xlu0 %v6503_v36, %s6295_s1 }
0x1931   :  { %3956 = vrot.lane.b32.xlu1 %v6503_v36, %s6297_s20 }
0x1934   :  { %3906 = vrot.lane.b32.xlu0 %v6503_v36, %s6296_s8 }
0x1938   :  { %4005 = vrot.lane.b32.xlu0 %v6775_v6, %s6295_s1 }
0x19a7   :  { %v3713_v57 = vpop.xlane.xlu0 %3712 }
0x19a8   :  { %v3717_v60 = vmul.f32 0.03125, %v3713_v57 }
0x19a9   :  { %v3716_v61 = vpop.xlane.xlu1 %3715 }
0x19aa   :  { %v3719_v62 = vadd.f32 1e-06, %v3717_v60  ;;  %v3718_v63 = vmul.f32 0.03125, %v3716_v61 }
0x19ab   :  { %v3806_v0 = vpop.permute.xlu0 %3805 }
0x19ac   :  { %6142 = vrsqrt.f32 %v3719_v62  ;;  %v3720_v1 = vadd.f32 1e-06, %v3718_v63  ;;  %v3811_v2 = vsel %vm347_vm5, %v3806_v0, 0 }
0x19ad   :  { %5781 = vmatpush3.bf16.xpose.msra.mxu1 %v3811_v2  ;;  %v3857_v15 = vpop.permute.xlu1 %3856 }
0x19ae   :  { %6144 = vrsqrt.f32 %v3720_v1  ;;  %5792 = vmatprep.subr.bf16.mxu1 %v6286_v10  ;;  %v3862_v17 = vsel %vm347_vm5, %v3857_v15, 0 }
0x19af   :  { %v3907_v25 = vpop.permute.xlu0 %3906 }
0x19b0   :  { %v3912_v27 = vsel %vm347_vm5, %v3907_v25, 0 }
0x19b1   :  { %v3957_v4 = vpop.permute.xlu1 %3956 }
0x19b2   :  { %v3962_v32 = vsel %vm347_vm5, %v3957_v4, 0 }
0x19b3   :  { %v4006_v29 = vpop.permute.xlu0 %4005 }
0x19b4   :  { %v4011_v33 = vsel %vm347_vm5, %v4006_v29, 0 }
0x19b6   :  { %v6143_v3 = vpop.eup %6142 }
0x19b7   :  { %v3723_v8 = vmul.f32 %v6143_v3, %v3707_v47 }
0x19b8   :  { %v6145_v51 = vpop.eup %6144 }
0x19b9   :  { %v3729_v5 = vmul.f32 %v5148_v7, %v3723_v8  ;;  %v3724_v9 = vmul.f32 %v6145_v51, %v3708_v49 }
0x19bb   :  { %v3730_v12 = vmul.f32 %v5148_v7, %v3724_v9  ;;  %v7240_v13 = vadd.f32 %v5149_v11, %v3729_v5 }
0x19bd   :  { %v7242_v14 = vadd.f32 %v5149_v11, %v3730_v12 }
0x19bf   :  { %v3737_v16 = vpack.c.bf16 %v7242_v14, %v7240_v13 }
0x19c1   :  { %5777 = vmatmul.mubr.msk.bf16.vlgmr.msra.gmra.mrb[112].mxu0 %vm232_vm1, %v3737_v16 }
0x19c2   :  { %5787 = vmatpush3.bf16.xpose.msra.mxu0 %v3862_v17  ;;  %5788 = vmatprep.mubr.msk.bf16.mxu0 %vm6287_vm0, %v6286_v10 }
0x19c3   :  { %5798 = vmatprep.subr.bf16.mxu0 %v6286_v10 }
0x1a94   :  { %v3797_v19 = vpop.f32.mrb[112].mxu0 }
0x1a95   :  { %v5778_v20 = vpop.f32.mrb[113].mxu0  ;;  %v3798_v22 = vadd.f32 %v5154_v18, %v3797_v19 }
0x1a96   :  { %v3800_v21 = vpop.f32.mrb[114].mxu0 }
0x1a97   :  { %v3801_v23 = vadd.f32 %v5154_v18, %v3800_v21  ;;  %v5779_v24 = vpop.f32.mrb[115].mxu0 }
0x1a99   :  { %v3804_v26 = vpack.c.bf16 %v3801_v23, %v3798_v22 }
0x1a9b   :  { %3904 = vrot.lane.b32.xlu0 %v3804_v26, %s6294_s27  ;;  %3854 = vrot.lane.b32.xlu1 %v3804_v26, %s6288_s26  ;;  %v4004_v28 = vrot.slane %v3804_v26, 4 }
0x1a9c   :  { %5783 = vmatmul.mubr.msk.bf16.vlgmr.msra.gmra.mrb[120].mxu1 %vm347_vm5, %v3804_v26 }
0x1a9d   :  { %5793 = vmatpush3.bf16.xpose.msra.mxu1 %v3912_v27  ;;  %5794 = vmatprep.mubr.msk.bf16.mxu1 %vm6287_vm0, %v6286_v10 }
0x1a9e   :  { %5804 = vmatprep.subr.bf16.mxu1 %v6286_v10 }
0x1a9f   :  { %3954 = vrot.lane.b32.xlu1 %v3804_v26, %s6292_s24  ;;  %4053 = vrot.lane.b32.xlu0 %v4004_v28, %s6288_s26 }
0x1aa3   :  { %4055 = vrot.lane.b32.xlu1 %v6775_v6, %s6298_s3  ;;  %4155 = vrot.lane.b32.xlu0 %v6775_v6, %s6297_s20 }
0x1aa7   :  { %4105 = vrot.lane.b32.xlu1 %v6775_v6, %s6296_s8  ;;  %4153 = vrot.lane.b32.xlu0 %v4004_v28, %s6292_s24  ;;  %s6302_s8 = smov [#allocation8]  }
0x1aab   :  { %4103 = vrot.lane.b32.xlu1 %v4004_v28, %s6294_s27  ;;  %4295 = vrot.lane.b32.xlu0 %v6503_v36, %s6301_s29 }
0x1aaf   :  { %4345 = vrot.lane.b32.xlu1 %v6503_v36, %s7524_s22 }
0x1b0d   :  { %v3855_v30 = vpop.permute.xlu1 %3854  ;;  %v3905_v31 = vpop.permute.xlu0 %3904 }
0x1b0e   :  { %5789 = vmatmul.mubr.msk.bf16.vlgmr.msra.gmra.mrb[116].mxu0 %vm347_vm5, %v3855_v30  ;;  %5795 = vmatmul.mubr.msk.bf16.vlgmr.msra.gmra.mrb[124].mxu1 %vm347_vm5, %v3905_v31 }
0x1b0f   :  { %5799 = vmatpush3.bf16.xpose.msra.mxu0 %v3962_v32  ;;  %5805 = vmatpush3.bf16.xpose.msra.mxu1 %v4011_v33 }
0x1b10   :  { %5800 = vmatprep.mubr.msk.bf16.mxu0 %vm6287_vm0, %v6286_v10  ;;  %5806 = vmatprep.mubr.msk.bf16.mxu1 %vm6287_vm0, %v6286_v10 }
0x1b11   :  { %v3955_v34 = vpop.permute.xlu1 %3954  ;;  %v4054_v42 = vpop.permute.xlu0 %4053  ;;  %5810 = vmatprep.subr.bf16.mxu0 %v6286_v10  ;;  %5816 = vmatprep.subr.bf16.mxu1 %v6286_v10 }
0x1b15   :  { %v4056_v40 = vpop.permute.xlu1 %4055  ;;  %v4156_v35 = vpop.permute.xlu0 %4155 }
0x1b16   :  { %v4061_v37 = vsel %vm347_vm5, %v4056_v40, 0  ;;  %5801 = vmatmul.mubr.msk.bf16.vlgmr.msra.gmra.mrb[120].mxu0 %vm347_vm5, %v3955_v34  ;;  %5807 = vmatmul.mubr.msk.bf16.vlgmr.msra.gmra.mrb[128].mxu1 %vm347_vm5, %v4004_v28  ;;  %v4161_v44 = vsel %vm347_vm5, %v4156_v35, 0 }
0x1b17   :  { %5811 = vmatpush3.bf16.xpose.msra.mxu0 %v4061_v37  ;;  %5812 = vmatprep.mubr.msk.bf16.mxu0 %vm6287_vm0, %v6286_v10 }
0x1b18   :  { %5822 = vmatprep.subr.bf16.mxu0 %v6286_v10  ;;  %5818 = vmatprep.mubr.msk.bf16.mxu1 %vm6287_vm0, %v6286_v10 }
0x1b19   :  { %v4106_v38 = vpop.permute.xlu1 %4105  ;;  %v4154_v39 = vpop.permute.xlu0 %4153 }
0x1b1a   :  { %v4111_v41 = vsel %vm347_vm5, %v4106_v38, 0 }
0x1b1b   :  { %5817 = vmatpush3.bf16.xpose.msra.mxu1 %v4111_v41 }
0x1b1c   :  { %5828 = vmatprep.subr.bf16.mxu1 %v6286_v10 }
0x1b1d   :  { %v4104_v43 = vpop.permute.xlu1 %4103  ;;  %v4296_v45 = vpop.permute.xlu0 %4295 }
0x1b1e   :  { %5813 = vmatmul.mubr.msk.bf16.vlgmr.msra.gmra.mrb[124].mxu0 %vm347_vm5, %v4054_v42  ;;  %v4301_v46 = vsel %vm840_vm6, %v4296_v45, 0 }
0x1b1f   :  { %5823 = vmatpush3.bf16.xpose.msra.mxu0 %v4161_v44  ;;  %5824 = vmatprep.mubr.msk.bf16.mxu0 %vm6287_vm0, %v6286_v10 }
0x1b20   :  { %5834 = vmatprep.subr.bf16.mxu0 %v6286_v10 }
0x1b21   :  { %v4346_v54 = vpop.permute.xlu1 %4345 }
0x1b22   :  { %5819 = vmatmul.mubr.msk.bf16.vlgmr.msra.gmra.mrb[132].mxu1 %vm347_vm5, %v4104_v43  ;;  %v4351_v55 = vsel %vm840_vm6, %v4346_v54, 0 }
0x1b23   :  { %5829 = vmatpush3.bf16.msra.mxu1 %v4301_v46  ;;  %5830 = vmatprep.mubr.msk.bf16.mxu1 %vm6287_vm0, %v6286_v10 }
0x1b24   :  { %5840 = vmatprep.subr.bf16.mxu1 %v6286_v10 }
0x1b26   :  { %5825 = vmatmul.mubr.msk.bf16.vlgmr.msra.gmra.mrb[128].mxu0 %vm347_vm5, %v4154_v39 }
0x1b27   :  { %5835 = vmatpush3.bf16.msra.mxu0 %v4351_v55  ;;  %5836 = vmatprep.mubr.msk.bf16.mxu0 %vm6287_vm0, %v6286_v10 }
0x1b28   :  { %5846 = vmatprep.subr.bf16.mxu0 %v6286_v10 }
0x1b6f   :  { %v3847_v47 = vpop.f32.mrb[120].mxu1 }
0x1b70   :  { %v5784_v48 = vpop.f32.mrb[121].mxu1  ;;  %v4203_v49 = vsel %vm347_vm5, %v3847_v47, -inf }
0x1b71   :  { %4204 = vmax.xlane.f32.xlu1 %v4203_v49  ;;  %v3850_v50 = vpop.f32.mrb[122].mxu1 }
0x1b72   :  { %v5785_v53 = vpop.f32.mrb[123].mxu1 }
0x1be1   :  { %v3898_v58 = vpop.f32.mrb[116].mxu0  ;;  %v3948_v52 = vpop.f32.mrb[124].mxu1 }
0x1be2   :  { %v5790_v59 = vpop.f32.mrb[117].mxu0  ;;  %v5796_v56 = vpop.f32.mrb[125].mxu1  ;;  %v4206_v57 = vsel %vm347_vm5, %v3898_v58, -inf  ;;  %v4209_v0 = vsel %vm347_vm5, %v3948_v52, -inf }
0x1be3   :  { %4207 = vmax.xlane.f32.xlu0 %v4206_v57  ;;  %v3901_v60 = vpop.f32.mrb[118].mxu0  ;;  %v3951_v61 = vpop.f32.mrb[126].mxu1 }
0x1be4   :  { %v5791_v62 = vpop.f32.mrb[119].mxu0  ;;  %v5797_v63 = vpop.f32.mrb[127].mxu1 }
0x1be7   :  { %4210 = vmax.xlane.f32.xlu0 %v4209_v0 }
0x1be9   :  { %v3998_v1 = vpop.f32.mrb[120].mxu0  ;;  %v7310_v2 = vpop.f32.mrb[128].mxu1 }
0x1bea   :  { %v5802_v3 = vpop.f32.mrb[121].mxu0  ;;  %v5808_v7 = vpop.f32.mrb[129].mxu1  ;;  %v4212_v8 = vsel %vm347_vm5, %v3998_v1, -inf  ;;  %v4215_v51 = vsel %vm347_vm5, %v7310_v2, -inf }
0x1beb   :  { %v4001_v5 = vpop.f32.mrb[122].mxu0  ;;  %4213 = vmax.xlane.f32.xlu1 %v4212_v8  ;;  %4216 = vmax.xlane.f32.xlu0 %v4215_v51  ;;  %v4050_v9 = vpop.f32.mrb[130].mxu1 }
0x1bec   :  { %v5803_v11 = vpop.f32.mrb[123].mxu0  ;;  %v5809_v12 = vpop.f32.mrb[131].mxu1 }
0x1bf1   :  { %v4097_v15 = vpop.f32.mrb[124].mxu0 }
0x1bf2   :  { %v5814_v16 = vpop.f32.mrb[125].mxu0  ;;  %v4218_v17 = vsel %vm347_vm5, %v4097_v15, -inf }
0x1bf3   :  { %v4100_v18 = vpop.f32.mrb[126].mxu0  ;;  %4219 = vmax.xlane.f32.xlu1 %v4218_v17 }
0x1bf4   :  { %v5815_v19 = vpop.f32.mrb[127].mxu0 }
0x1bf5   :  { %v4147_v20 = vpop.f32.mrb[132].mxu1 }
0x1bf6   :  { %v5820_v21 = vpop.f32.mrb[133].mxu1  ;;  %v4221_v22 = vsel %vm347_vm5, %v4147_v20, -inf }
0x1bf7   :  { %4222 = vmax.xlane.f32.xlu0 %v4221_v22  ;;  %v4150_v23 = vpop.f32.mrb[134].mxu1 }
0x1bf8   :  { %v5821_v24 = vpop.f32.mrb[135].mxu1 }
0x1bf9   :  { %v4197_v25 = vpop.f32.mrb[128].mxu0 }
0x1bfa   :  { %v5826_v26 = vpop.f32.mrb[129].mxu0  ;;  %v4224_v27 = vsel %vm347_vm5, %v4197_v25, -inf }
0x1bfb   :  { %v4200_v28 = vpop.f32.mrb[130].mxu0  ;;  %4225 = vmax.xlane.f32.xlu1 %v4224_v27 }
0x1bfc   :  { %v5827_v4 = vpop.f32.mrb[131].mxu0 }
0x1bfe   :  { %v4205_v29 = vpop.xlane.xlu1 %4204 }
0x1bff   :  { %v4227_v30 = vsub.f32 %v3847_v47, %v4205_v29 }
0x1c01   :  { %v4235_v31 = vmul.f32 1.442695, %v4227_v30 }
0x1c03   :  { %6146 = vpow2.f32 %v4235_v31 }
0x1c0c   :  { %4393 = vrot.lane.b32.xlu1 %v6503_v36, %s7523_s21 }
0x1c0d   :  { %4443 = vrot.lane.b32.xlu0 %v6503_v36, %s7522_s19  ;;  %v7322_v32 = vpop.eup %6146 }
0x1c0e   :  { %v4251_v33 = vsel %vm347_vm5, %v7322_v32, 0.0 }
0x1c2c   :  { %4252 = vadd.xlane.f32.xlu0 %v4251_v33 }
0x1c70   :  { %v4208_v34 = vpop.xlane.xlu0 %4207 }
0x1c71   :  { %v4228_v42 = vsub.f32 %v3898_v58, %v4208_v34 }
0x1c73   :  { %v4237_v40 = vmul.f32 1.442695, %v4228_v42 }
0x1c74   :  { %v4211_v35 = vpop.xlane.xlu0 %4210 }
0x1c75   :  { %6148 = vpow2.f32 %v4237_v40  ;;  %v4229_v37 = vsub.f32 %v3948_v52, %v4211_v35 }
0x1c77   :  { %v4239_v38 = vmul.f32 1.442695, %v4229_v37 }
0x1c78   :  { %v4214_v44 = vpop.xlane.xlu1 %4213  ;;  %v4217_v46 = vpop.xlane.xlu0 %4216 }
0x1c79   :  { %6150 = vpow2.f32 %v4239_v38  ;;  %v4230_v45 = vsub.f32 %v3998_v1, %v4214_v44  ;;  %v4231_v55 = vsub.f32 %v7310_v2, %v4217_v46 }
0x1c7b   :  { %v4241_v47 = vmul.f32 1.442695, %v4230_v45  ;;  %v4243_v53 = vmul.f32 1.442695, %v4231_v55 }
0x1c7d   :  { %6152 = vpow2.f32 %v4241_v47 }
0x1c7e   :  { %6154 = vpow2.f32 %v4243_v53 }
0x1c7f   :  { %v6149_v39 = vpop.eup %6148 }
0x1c80   :  { %v4254_v36 = vsel %vm347_vm5, %v6149_v39, 0.0  ;;  %v4220_v54 = vpop.xlane.xlu1 %4219 }
0x1c81   :  { %4255 = vadd.xlane.f32.xlu1 %v4254_v36  ;;  %v4232_v48 = vsub.f32 %v4097_v15, %v4220_v54 }
0x1c83   :  { %v7327_v41 = vpop.eup %6150  ;;  %v4245_v52 = vmul.f32 1.442695, %v4232_v48 }
0x1c84   :  { %v4257_v43 = vsel %vm347_vm5, %v7327_v41, 0.0  ;;  %v4223_v49 = vpop.xlane.xlu0 %4222 }
0x1c85   :  { %4258 = vadd.xlane.f32.xlu0 %v4257_v43  ;;  %v4233_v58 = vsub.f32 %v4147_v20, %v4223_v49  ;;  %6156 = vpow2.f32 %v4245_v52 }
0x1c87   :  { %v4247_v56 = vmul.f32 1.442695, %v4233_v58  ;;  %v6153_v60 = vpop.eup %6152 }
0x1c88   :  { %v4226_v50 = vpop.xlane.xlu1 %4225  ;;  %v7336_v61 = vpop.eup %6154  ;;  %v4260_v62 = vsel %vm347_vm5, %v6153_v60, 0.0 }
0x1c89   :  { %v4234_v59 = vsub.f32 %v4197_v25, %v4226_v50  ;;  %6158 = vpow2.f32 %v4247_v56  ;;  %v4263_v2 = vsel %vm347_vm5, %v7336_v61, 0.0  ;;  %v4444_v51 = vpop.permute.xlu0 %4443 }
0x1c8b   :  { %v4249_v57 = vmul.f32 1.442695, %v4234_v59 }
0x1c8c   :  { %v4394_v5 = vpop.permute.xlu1 %4393 }
0x1c8d   :  { %6160 = vpow2.f32 %v4249_v57  ;;  %v4399_v19 = vsel %vm840_vm6, %v4394_v5, 0 }
0x1c8f   :  { %v6157_v63 = vpop.eup %6156 }
0x1c90   :  { %v4266_v1 = vsel %vm347_vm5, %v6157_v63, 0.0 }
0x1c92   :  { %4506 = vrot.lane.b32.xlu1 %v6775_v6, %s6301_s29 }
0x1c93   :  { %v7339_v0 = vpop.eup %6158 }
0x1c94   :  { %v4269_v8 = vsel %vm347_vm5, %v7339_v0, 0.0 }
0x1c97   :  { %v7344_v3 = vpop.eup %6160 }
0x1c98   :  { %v4272_v7 = vsel %vm347_vm5, %v7344_v3, 0.0 }
0x1c9b   :  { %4556 = vrot.lane.b32.xlu0 %v6775_v6, %s7524_s22 }
0x1cb6   :  { %4261 = vadd.xlane.f32.xlu1 %v4260_v62 }
0x1cb9   :  { %v4253_v9 = vpop.xlane.xlu0 %4252 }
0x1cba   :  { %4267 = vadd.xlane.f32.xlu1 %v4266_v1  ;;  %4264 = vadd.xlane.f32.xlu0 %v4263_v2  ;;  %6162 = vrcp.f32 %v4253_v9 }
0x1cbe   :  { %4273 = vadd.xlane.f32.xlu1 %v4272_v7  ;;  %4270 = vadd.xlane.f32.xlu0 %v4269_v8  ;;  %v6026_v8 = vld [vmem:[%s7497_s10 + $0x30] sm:$0xff]  }
0x1cc4   :  { %v6163_v12 = vpop.eup %6162 }
0x1cc5   :  { %v4283_v16 = vmul.f32 %v6163_v12, %v7322_v32  ;;  %v6027_v12 = vld [vmem:[%s7497_s10 + $0x38] sm:$0xff]   ;;  %s5027_s10 = sshll.u32 %s6302_s8, 4  ;;  %s5028_s10 = int_to_ptr.vmem [resolvable:$true] %s5027_s10 }
0x1cc6   :  { %s6252_s20 = scalar_lea.vmem %s5028_s10, 256  ;;  %p6257_p11 = scmp.lt.s32.totalorder %s5028_s10, %s5028_s10 }
0x1cc7   :  { %p6253_p10 = scmp.ne.s32.totalorder %s5028_s10, %s6252_s20  ;;  %p6258_p12 = scmp.lt.s32.totalorder %s6252_s20, %s6252_s20 }
0x1cc9   :  { %p6259_p13 = por %p6258_p12, %p6257_p11 }
0x1ccb   :  { %p6260_p0 = pnand %p6259_p13, %p6253_p10 }
0x1ccf   :  { %4604 = vrot.lane.b32.xlu1 %v6775_v6, %s7523_s21 }
0x1cd4   :  { %4654 = vrot.lane.b32.xlu0 %v6775_v6, %s7522_s19  ;;  %v4449_v6 = vsel %vm840_vm6, %v4444_v51, 0 }
0x1d0e   :  { %v4256_v11 = vpop.xlane.xlu1 %4255 }
0x1d0f   :  { %6164 = vrcp.f32 %v4256_v11 }
0x1d12   :  { %v4259_v21 = vpop.xlane.xlu0 %4258  ;;  %v4507_v22 = vpop.permute.xlu1 %4506 }
0x1d13   :  { %6166 = vrcp.f32 %v4259_v21  ;;  %v4512_v42 = vsel %vm840_vm6, %v4507_v22, 0 }
0x1d16   :  { %v4557_v23 = vpop.permute.xlu0 %4556 }
0x1d17   :  { %v4562_v38 = vsel %vm840_vm6, %v4557_v23, 0 }
0x1d19   :  { %v6165_v15 = vpop.eup %6164 }
0x1d1a   :  { %v4284_v17 = vmul.f32 %v6165_v15, %v6149_v39 }
0x1d1c   :  { %v4291_v18 = vpack.c.bf16 %v4284_v17, %v4283_v16 }
0x1d1d   :  { %v6167_v4 = vpop.eup %6166 }
0x1d1e   :  { %5831 = vmatmul.mubr.msk.bf16.vlgmr.msra.gmra.mrb[136].mxu1 %vm347_vm5, %v4291_v18  ;;  %v4344_v20 = vrot.slane %v4291_v18, 4  ;;  %v4285_v30 = vmul.f32 %v6167_v4, %v7327_v41 }
0x1d1f   :  { %5841 = vmatpush3.bf16.msra.mxu1 %v4399_v19  ;;  %5842 = vmatprep.mubr.msk.bf16.mxu1 %vm6287_vm0, %v6286_v10 }
0x1d20   :  { %5837 = vmatmul.mubr.msk.bf16.vlgmr.msra.gmra.mrb[132].mxu0 %vm347_vm5, %v4344_v20  ;;  %5852 = vmatprep.subr.bf16.mxu1 %v6286_v10 }
0x1d21   :  { %5847 = vmatpush3.bf16.msra.mxu0 %v4449_v6  ;;  %5848 = vmatprep.mubr.msk.bf16.mxu0 %vm6287_vm0, %v6286_v10 }
0x1d22   :  { %5858 = vmatprep.subr.bf16.mxu0 %v6286_v10 }
0x1d43   :  { %v4262_v24 = vpop.xlane.xlu1 %4261 }
0x1d44   :  { %6168 = vrcp.f32 %v4262_v24 }
0x1d47   :  { %v4268_v25 = vpop.xlane.xlu1 %4267  ;;  %v4265_v26 = vpop.xlane.xlu0 %4264 }
0x1d48   :  { %6170 = vrcp.f32 %v4268_v25 }
0x1d49   :  { %6172 = vrcp.f32 %v4265_v26 }
0x1d4b   :  { %v4274_v27 = vpop.xlane.xlu1 %4273  ;;  %v4271_v28 = vpop.xlane.xlu0 %4270 }
0x1d4c   :  { %6174 = vrcp.f32 %v4274_v27 }
0x1d4d   :  { %6176 = vrcp.f32 %v4271_v28 }
0x1d4e   :  { %v6169_v29 = vpop.eup %6168 }
0x1d4f   :  { %v4286_v31 = vmul.f32 %v6169_v29, %v6153_v60  ;;  %v4605_v43 = vpop.permute.xlu1 %4604  ;;  %v4655_v44 = vpop.permute.xlu0 %4654 }
0x1d50   :  { %v4610_v54 = vsel %vm840_vm6, %v4605_v43, 0  ;;  %v4660_v47 = vsel %vm840_vm6, %v4655_v44, 0  ;;  %v5178_v44 = vld [vmem:[%s7498_s11 + $0x3] ss:$0 sm:$0xff] }
0x1d51   :  { %v4292_v32 = vpack.c.bf16 %v4286_v31, %v4285_v30 }
0x1d52   :  { %v6171_v33 = vpop.eup %6170 }
0x1d53   :  { %v6173_v34 = vpop.eup %6172  ;;  %v4288_v40 = vmul.f32 %v6171_v33, %v6157_v63  ;;  %5843 = vmatmul.mubr.msk.bf16.vlgmr.msra.gmra.mrb[140].mxu1 %vm347_vm5, %v4292_v32  ;;  %v4442_v35 = vrot.slane %v4292_v32, 4 }
0x1d54   :  { %v4287_v37 = vmul.f32 %v6173_v34, %v7336_v61  ;;  %5853 = vmatpush3.bf16.msra.mxu1 %v4512_v42  ;;  %5854 = vmatprep.mubr.msk.bf16.mxu1 %vm6287_vm0, %v6286_v10 }
0x1d55   :  { %5849 = vmatmul.mubr.msk.bf16.vlgmr.msra.gmra.mrb[136].mxu0 %vm347_vm5, %v4442_v35  ;;  %5864 = vmatprep.subr.bf16.mxu1 %v6286_v10 }
0x1d56   :  { %5859 = vmatpush3.bf16.msra.mxu0 %v4562_v38  ;;  %5860 = vmatprep.mubr.msk.bf16.mxu0 %vm6287_vm0, %v6286_v10  ;;  %v6175_v39 = vpop.eup %6174  ;;  %v4293_v36 = vpack.c.bf16 %v4288_v40, %v4287_v37 }
0x1d57   :  { %5870 = vmatprep.subr.bf16.mxu0 %v6286_v10  ;;  %v6177_v41 = vpop.eup %6176  ;;  %v4290_v45 = vmul.f32 %v6175_v39, %v7344_v3 }
0x1d58   :  { %v4289_v46 = vmul.f32 %v6177_v41, %v7339_v0  ;;  %v4555_v55 = vrot.slane %v4293_v36, 4 }
0x1d5a   :  { %v4294_v48 = vpack.c.bf16 %v4290_v45, %v4289_v46 }
0x1d5b   :  { %5855 = vmatmul.mubr.msk.bf16.vlgmr.msra.gmra.mrb[144].mxu1 %vm347_vm5, %v4293_v36 }
0x1d5c   :  { %5865 = vmatpush3.bf16.msra.mxu1 %v4610_v54  ;;  %5866 = vmatprep.mubr.msk.bf16.mxu1 %vm6287_vm0, %v6286_v10  ;;  %v4653_v49 = vrot.slane %v4294_v48, 4 }
0x1d5d   :  { %5861 = vmatmul.mubr.msk.bf16.vlgmr.msra.gmra.mrb[140].mxu0 %vm347_vm5, %v4555_v55  ;;  %5876 = vmatprep.subr.bf16.mxu1 %v6286_v10 }
0x1d5e   :  { %5871 = vmatpush3.bf16.msra.mxu0 %v4660_v47  ;;  %5872 = vmatprep.mubr.msk.bf16.mxu0 %vm6287_vm0, %v6286_v10 }
0x1d5f   :  { %5884 = vmatprep.subr.bf16.mxu0 %v6286_v10 }
0x1d63   :  { %5867 = vmatmul.mubr.msk.bf16.vlgmr.msra.gmra.mrb[148].mxu1 %vm347_vm5, %v4294_v48 }
0x1d64   :  { %5880 = vmatprep.mubr.msk.bf16.mxu1 %vm6287_vm0, %v6286_v10  ;;  %5877 = vmatpush3.bf16.msra.mxu1 %v6026_v8 }
0x1d65   :  { %5873 = vmatmul.mubr.msk.bf16.vlgmr.msra.gmra.mrb[144].mxu0 %vm347_vm5, %v4653_v49  ;;  %5878 = vmatprep.subr.bf16.mxu1 %v6286_v10 }
0x1d66   :  { %5888 = vmatprep.mubr.msk.bf16.mxu0 %vm6287_vm0, %v6286_v10 }
0x1d68   :  { %5879 = vmatpush3.bf16.msra.mxu1 %v6027_v12 }
0x1d69   :  { %5892 = vmatprep.subr.bf16.mxu1 %v6286_v10 }
0x1df1   :  { %v4337_v50 = vpop.f32.mrb[136].mxu1 }
0x1df2   :  { %v5832_v53 = vpop.f32.mrb[137].mxu1 }
0x1df3   :  { %v4340_v58 = vpop.f32.mrb[138].mxu1  ;;  %v4387_v52 = vpop.f32.mrb[132].mxu0 }
0x1df4   :  { %v5833_v59 = vpop.f32.mrb[139].mxu1  ;;  %v5838_v56 = vpop.f32.mrb[133].mxu0 }
0x1df5   :  { %v4390_v57 = vpop.f32.mrb[134].mxu0 }
0x1df6   :  { %v5839_v60 = vpop.f32.mrb[135].mxu0 }
0x1e26   :  { %v4435_v61 = vpop.f32.mrb[140].mxu1 }
0x1e27   :  { %v5844_v62 = vpop.f32.mrb[141].mxu1 }
0x1e28   :  { %v4438_v63 = vpop.f32.mrb[142].mxu1  ;;  %v4485_v0 = vpop.f32.mrb[136].mxu0 }
0x1e29   :  { %v5845_v1 = vpop.f32.mrb[143].mxu1  ;;  %v5850_v2 = vpop.f32.mrb[137].mxu0 }
0x1e2a   :  { %v4488_v3 = vpop.f32.mrb[138].mxu0  ;;  %v6029_v1 = vld [vmem:[%s7499_s12 + $0x18] sm:$0xff]   ;;  %v6030_v2 = vld [vmem:[%s7501_s14 + $0x20] sm:$0xff]  }
0x1e2b   :  { %v5851_v7 = vpop.f32.mrb[139].mxu0  ;;  %v6031_v3 = vld [vmem:[%s7501_s14 + $0x28] sm:$0xff]  }
0x1e2e   :  { %v4548_v51 = vpop.f32.mrb[144].mxu1 }
0x1e2f   :  { %v5856_v5 = vpop.f32.mrb[145].mxu1 }
0x1e30   :  { %v4551_v9 = vpop.f32.mrb[146].mxu1  ;;  %v4598_v11 = vpop.f32.mrb[140].mxu0 }
0x1e31   :  { %v5989_v15 = vpack.i.bf16 %v4598_v11, %v4387_v52  ;;  %v5857_v16 = vpop.f32.mrb[147].mxu1  ;;  %v5862_v17 = vpop.f32.mrb[141].mxu0 }
0x1e32   :  { %v4601_v18 = vpop.f32.mrb[142].mxu0  ;;  %v5182_v16 = vld [vmem:[%s7503_s16 + $0x4] ss:$0 sm:$0xff] }
0x1e33   :  { %5990 = vrot.lane.b32.xlu1 %v5989_v15, %s7522_s19  ;;  %v5863_v19 = vpop.f32.mrb[143].mxu0 }
0x1e36   :  { %v4646_v20 = vpop.f32.mrb[148].mxu1 }
0x1e37   :  { %v5994_v6 = vpack.i.bf16 %v4646_v20, %v4435_v61  ;;  %v5868_v21 = vpop.f32.mrb[149].mxu1  ;;  %v5183_v20 = vld [vmem:[%s7504_s17 + $0x4] ss:$0 sm:$0xff] }
0x1e38   :  { %v4649_v22 = vpop.f32.mrb[150].mxu1  ;;  %v4696_v23 = vpop.f32.mrb[144].mxu0 }
0x1e39   :  { %v5999_v24 = vpack.i.bf16 %v4696_v23, %v4485_v0  ;;  %v5874_v25 = vpop.f32.mrb[145].mxu0  ;;  %5995 = vrot.lane.b32.xlu0 %v5994_v6, %s7523_s21  ;;  %v5869_v26 = vpop.f32.mrb[151].mxu1 }
0x1e3a   :  { %v4699_v27 = vpop.f32.mrb[146].mxu0  ;;  %v6033_v25 = vld [vmem:[%s7501_s14 + $0x38] sm:$0xff]   ;;  %v5188_v26 = vld [vmem:[%s7500_s13 + $0x1] ss:$0 sm:$0xff] }
0x1e3b   :  { %6000 = vrot.lane.b32.xlu1 %v5999_v24, %s7524_s22  ;;  %v5875_v28 = vpop.f32.mrb[147].mxu0  ;;  %v6032_v24 = vld [vmem:[%s7501_s14 + $0x30] sm:$0xff]  }
0x1ea5   :  { %v5991_v4 = vpop.permute.xlu1 %5990 }
0x1ea6   :  { %v5993_v29 = vunpack.i.h.bf16 %v5991_v4  ;;  %v5992_v30 = vunpack.i.l.bf16 %v5991_v4 }
0x1ea8   :  { %v4503_v34 = vsel %vm347_vm5, %v4337_v50, %v5992_v30  ;;  %v4714_v42 = vsel %vm347_vm5, %v4548_v51, %v5993_v29 }
0x1eab   :  { %v5996_v31 = vpop.permute.xlu0 %5995 }
0x1eac   :  { %v5998_v32 = vunpack.i.h.bf16 %v5996_v31  ;;  %v5997_v33 = vunpack.i.l.bf16 %v5996_v31 }
0x1ead   :  { %v6001_v40 = vpop.permute.xlu1 %6000 }
0x1eae   :  { %v4715_v35 = vsel %vm1045_vm7, %v4714_v42, %v5998_v32  ;;  %v4504_v37 = vsel %vm1045_vm7, %v4503_v34, %v5997_v33  ;;  %v6003_v38 = vunpack.i.h.bf16 %v6001_v40  ;;  %v6002_v39 = vunpack.i.l.bf16 %v6001_v40 }
0x1eb0   :  { %v4505_v36 = vsel %vm1047_vm8, %v4504_v37, %v6002_v39  ;;  %v4716_v41 = vsel %vm1047_vm8, %v4715_v35, %v6003_v38 }
0x1eb1   :  { %v4717_v43 = vpack.c.bf16 %v4716_v41, %v4505_v36 }
0x1eb3   :  { %5881 = vmatmul.mubr.msk.bf16.vlgmr.msra.gmra.mrb[152].mxu1 %vm232_vm1, %v4717_v43 }
0x1eb4   :  { %5900 = vmatprep.mubr.msk.bf16.mxu1 %vm6287_vm0, %v6286_v10  ;;  %5893 = vmatpush3.bf16.msra.mxu1 %v6030_v2 }
0x1eb5   :  { %5894 = vmatprep.subr.bf16.mxu1 %v6286_v10 }
0x1eb8   :  { %5895 = vmatpush3.bf16.msra.mxu1 %v6031_v3 }
0x1eb9   :  { %5896 = vmatprep.subr.bf16.mxu1 %v6286_v10 }
0x1ebc   :  { %5897 = vmatpush3.bf16.msra.mxu1 %v6032_v24 }
0x1ebd   :  { %5898 = vmatprep.subr.bf16.mxu1 %v6286_v10 }
0x1ec0   :  { %5899 = vmatpush3.bf16.msra.mxu1 %v6033_v25 }
0x1f86   :  { %v4777_v45 = vpop.f32.mrb[152].mxu1 }
0x1f87   :  { %v4778_v46 = vadd.f32 %v5178_v44, %v4777_v45  ;;  %v5882_v54 = vpop.f32.mrb[153].mxu1 }
0x1f88   :  { %v4780_v55 = vpop.f32.mrb[154].mxu1 }
0x1f89   :  { %v4784_v47 = vadd.f32 %v4778_v46, %v7240_v13  ;;  %v4781_v48 = vadd.f32 %v5178_v44, %v4780_v55  ;;  %v5883_v49 = vpop.f32.mrb[155].mxu1 }
0x1f8b   :  { %v4785_v50 = vadd.f32 %v4781_v48, %v7242_v14  ;;  %v4788_v53 = vsel %vm232_vm1, %v4784_v47, 0.0  ;;  %v6028_v14 = vld [vmem:[%s7499_s12 + $0x10] sm:$0xff]  }
0x1f8c   :  { %4789 = vadd.xlane.f32.xlu0 %v4788_v53  ;;  %5885 = vmatpush3.bf16.msra.mxu0 %v6028_v14  ;;  %v5207_v14 = vld [vmem:[%s7504_s17 + $0x5] ss:$0 sm:$0xff] }
0x1f8d   :  { %v4791_v58 = vsel %vm232_vm1, %v4785_v50, 0.0  ;;  %5886 = vmatprep.subr.bf16.mxu0 %v6286_v10  ;;  %v5200_v10 = vld [vmem:[%s7502_s15 + $0x1] ss:$0 sm:$0xff] }
0x1f8e   :  { %4792 = vadd.xlane.f32.xlu1 %v4791_v58 }
0x1f90   :  { %5887 = vmatpush3.bf16.msra.mxu0 %v6029_v1 }
0x2019   :  { %v4790_v52 = vpop.xlane.xlu0 %4789 }
0x201a   :  { %v4794_v59 = vmul.f32 0.03125, %v4790_v52 }
0x201b   :  { %v4793_v56 = vpop.xlane.xlu1 %4792 }
0x201c   :  { %v4796_v57 = vsub.f32 %v4784_v47, %v4794_v59  ;;  %v4795_v60 = vmul.f32 0.03125, %v4793_v56 }
0x201e   :  { %v4797_v61 = vsub.f32 %v4785_v50, %v4795_v60  ;;  %v4798_v62 = vmul.f32 %v4796_v57, %v4796_v57 }
0x2020   :  { %v4800_v63 = vsel %vm232_vm1, %v4798_v62, 0.0  ;;  %v4799_v13 = vmul.f32 %v4797_v61, %v4797_v61 }
0x2021   :  { %4801 = vadd.xlane.f32.xlu0 %v4800_v63  ;;  %v5206_v63 = vld [vmem:[%s7503_s16 + $0x5] ss:$0 sm:$0xff] }
0x2022   :  { %v4803_v0 = vsel %vm232_vm1, %v4799_v13, 0.0 }
0x2025   :  { %4804 = vadd.xlane.f32.xlu0 %v4803_v0 }
0x20ae   :  { %v4802_v7 = vpop.xlane.xlu0 %4801 }
0x20af   :  { %v4806_v8 = vmul.f32 0.03125, %v4802_v7 }
0x20b1   :  { %v4808_v51 = vadd.f32 1e-06, %v4806_v8 }
0x20b2   :  { %v4805_v5 = vpop.xlane.xlu0 %4804 }
0x20b3   :  { %6178 = vrsqrt.f32 %v4808_v51  ;;  %v4807_v9 = vmul.f32 0.03125, %v4805_v5 }
0x20b5   :  { %v4809_v11 = vadd.f32 1e-06, %v4807_v9 }
0x20b7   :  { %6180 = vrsqrt.f32 %v4809_v11 }
0x20bd   :  { %v6179_v12 = vpop.eup %6178 }
0x20be   :  { %v4812_v15 = vmul.f32 %v6179_v12, %v4796_v57 }
0x20c0   :  { %v4818_v18 = vmul.f32 %v5182_v16, %v4812_v15 }
0x20c1   :  { %v6181_v17 = vpop.eup %6180 }
0x20c2   :  { %v4813_v19 = vmul.f32 %v6181_v17, %v4797_v61  ;;  %v4824_v21 = vadd.f32 %v5183_v20, %v4818_v18 }
0x20c4   :  { %v4819_v6 = vmul.f32 %v5182_v16, %v4813_v19 }
0x20c6   :  { %v4825_v22 = vadd.f32 %v5183_v20, %v4819_v6 }
0x20c8   :  { %v4826_v23 = vpack.c.bf16 %v4825_v22, %v4824_v21 }
0x20ca   :  { %5889 = vmatmul.mubr.msk.bf16.vlgmr.msra.gmra.mrb[148].mxu0 %vm232_vm1, %v4826_v23 }
0x219d   :  { %v4886_v27 = vpop.f32.mrb[148].mxu0 }
0x219e   :  { %v4887_v28 = vadd.f32 %v5188_v26, %v4886_v27  ;;  %v5890_v4 = vpop.f32.mrb[149].mxu0 }
0x219f   :  { %v4889_v29 = vpop.f32.mrb[150].mxu0 }
0x21a0   :  { %v4890_v30 = vadd.f32 %v5188_v26, %v4889_v29  ;;  %v5891_v31 = vpop.f32.mrb[151].mxu0  ;;  %v4893_v32 = vmax.f32 %v4887_v28, 0.0 }
0x21a2   :  { %v4894_v33 = vmax.f32 %v4890_v30, 0.0 }
0x21a4   :  { %v4895_v34 = vpack.c.bf16 %v4894_v33, %v4893_v32 }
0x21a6   :  { %5901 = vmatmul.mubr.msk.bf16.vlgmr.msra.gmra.mrb[156].mxu1 %vm124_vm2, %v4895_v34 }
0x2279   :  { %v4971_v42 = vpop.f32.mrb[156].mxu1 }
0x227a   :  { %v4972_v40 = vadd.f32 %v5200_v10, %v4971_v42  ;;  %v5902_v35 = vpop.f32.mrb[157].mxu1 }
0x227b   :  { %v4974_v37 = vpop.f32.mrb[158].mxu1 }
0x227c   :  { %v4978_v38 = vadd.f32 %v4972_v40, %v4824_v21  ;;  %v4975_v39 = vadd.f32 %v5200_v10, %v4974_v37  ;;  %v5903_v36 = vpop.f32.mrb[159].mxu1 }
0x227e   :  { %v4979_v41 = vadd.f32 %v4975_v39, %v4825_v22  ;;  %v4982_v43 = vsel %vm232_vm1, %v4978_v38, 0.0 }
0x227f   :  { %4983 = vadd.xlane.f32.xlu1 %v4982_v43 }
0x2280   :  { %v4985_v44 = vsel %vm232_vm1, %v4979_v41, 0.0 }
0x2281   :  { %4986 = vadd.xlane.f32.xlu0 %v4985_v44 }
0x230c   :  { %v4984_v45 = vpop.xlane.xlu1 %4983 }
0x230d   :  { %v4988_v46 = vmul.f32 0.03125, %v4984_v45 }
0x230e   :  { %v4987_v54 = vpop.xlane.xlu0 %4986 }
0x230f   :  { %v4990_v55 = vsub.f32 %v4978_v38, %v4988_v46  ;;  %v4989_v47 = vmul.f32 0.03125, %v4987_v54 }
0x2311   :  { %v4991_v48 = vsub.f32 %v4979_v41, %v4989_v47  ;;  %v4992_v49 = vmul.f32 %v4990_v55, %v4990_v55 }
0x2313   :  { %v4994_v50 = vsel %vm232_vm1, %v4992_v49, 0.0  ;;  %v4993_v53 = vmul.f32 %v4991_v48, %v4991_v48 }
0x2314   :  { %4995 = vadd.xlane.f32.xlu1 %v4994_v50 }
0x2315   :  { %v4997_v58 = vsel %vm232_vm1, %v4993_v53, 0.0 }
0x2316   :  { %4998 = vadd.xlane.f32.xlu0 %v4997_v58 }
0x23a1   :  { %v4996_v52 = vpop.xlane.xlu1 %4995 }
0x23a2   :  { %v5000_v59 = vmul.f32 0.03125, %v4996_v52 }
0x23a3   :  { %v4999_v56 = vpop.xlane.xlu0 %4998 }
0x23a4   :  { %v5002_v57 = vadd.f32 1e-06, %v5000_v59  ;;  %v5001_v60 = vmul.f32 0.03125, %v4999_v56 }
0x23a6   :  { %6182 = vrsqrt.f32 %v5002_v57  ;;  %v5003_v61 = vadd.f32 1e-06, %v5001_v60 }
0x23a8   :  { %6184 = vrsqrt.f32 %v5003_v61 }
0x23b0   :  { %v6183_v62 = vpop.eup %6182 }
0x23b1   :  { %v5006_v13 = vmul.f32 %v6183_v62, %v4990_v55 }
0x23b2   :  { %v6185_v0 = vpop.eup %6184 }
0x23b3   :  { %v5007_v1 = vmul.f32 %v6185_v0, %v4991_v48  ;;  %v5012_v2 = vmul.f32 %v5206_v63, %v5006_v13 }
0x23b5   :  { %v5013_v3 = vmul.f32 %v5206_v63, %v5007_v1  ;;  %v5018_v7 = vadd.f32 %v5207_v14, %v5012_v2 }
0x23b7   :  { %v5019_v8 = vadd.f32 %v5207_v14, %v5013_v3  ;;  %5020 = vst.msk [vmem:[#allocation8] sm:$0xff] %vm232_vm1, %v5018_v7 }
0x23b9   :  { %5021 = vst.msk [vmem:[#allocation8 + $0x8] sm:$0xff] %vm232_vm1, %v5019_v8 }
0x23ba   :  { %6263 = shalt.err (!%p6260_p0)
}
0x23bb   :  { %s6264_s11 = scalar_lea.hbm %s7505_s18, 256 }
0x23bc   :  { %p6265_p1 = scmp.ne.s32.totalorder %s7505_s18, %s6264_s11  ;;  %p6268_p2 = scmp.lt.u32.totalorder %s6264_s11, %s7505_s18 }
0x23be   :  { %p6270_p3 = pnand %p6268_p2, %p6265_p1 }
0x23c0   :  { %6273 = shalt.err (!%p6270_p3)
}
0x23c1   :  { %s7525_s22 = smov 128  }
0x23c2   :  { %5033 = dma.vmem_to_hbm [thread:$0]  %s5028_s10, 256, %s7505_s18, [#allocation4], %s7525_s22, %s7525_s22, %s7522_s19  }
0x23c3   :  { %6278 = dma.done.wait [#allocation4], 256  }
0x23c4   :  { %6279 = vsyncadd [#allocation4], 4294967040 }
0x23c5   :  { %5037 = vsyncpa [#allocation3], 1 }
0x23c6   :  { %5038 = vsyncpa [#allocation6], 1 }
0x23c7   :  { %5039 = vsyncpa [#allocation4], 1 }

</bundles_post_ra>
